<compile_context>
chip_gen: v5e
topology: v5e:2x2
jax: 0.10.0
libtpu: 0.0.40
codegen_flags: <defaults>
</compile_context>

<pallas_src>
import functools

import numpy as np
import jax
import jax.numpy as jnp
from jax.experimental import pallas as pl
from jax.experimental.pallas import tpu as pltpu

_BN_EPS = 1e-5


# --------------------------------------------------------------------------
# PyTorch bilinear (align_corners=False) interpolation matrix (n_out, n_in)
# --------------------------------------------------------------------------
def _resize_matrix(n_in, n_out):
    if n_in == n_out:
        return np.eye(n_out, dtype=np.float32)
    R = np.zeros((n_out, n_in), dtype=np.float32)
    scale = n_in / n_out
    for i in range(n_out):
        src = max((i + 0.5) * scale - 0.5, 0.0)
        i0 = min(int(np.floor(src)), n_in - 1)
        i1 = min(i0 + 1, n_in - 1)
        w1 = src - i0
        R[i, i0] += 1.0 - w1
        R[i, i1] += w1
    return R


# --------------------------------------------------------------------------
# Static per-branch plan: selection / mask / resize matrices + geometry.
#
# The branch conv1 has stride = dilation = padding = s (this is how Down_mr
# builds its DoubleConvs), so it only ever reads pooled pixels whose
# coordinates are multiples of s: it is equivalent to a plain 3x3 / stride-1 /
# pad-1 conv on the stride-s subsample of the pooled image.  The whole
# pool -> subsample -> pad -> flatten chain is a fixed gather, expressed as
# four 0/1 "pooling phase" selection matrices that are max-combined in-kernel.
# --------------------------------------------------------------------------
def _branch_plan(H, W, s, Hout, Wout):
    Hp, Wp = H // 2, W // 2                    # pooled spatial
    H1 = -(-Hp // s)                           # conv1/conv2 output spatial
    W1 = -(-Wp // s)
    Hc, Wc = H1 + 4, W1 + 4                    # zero-ringed canvas
    Lc = Hc * Wc
    tail = 2 * Wc + 2                          # max flat tap shift
    Ltot = Lc + tail
    L2 = Lc - tail

    # pool(2x2) + subsample(s) + pad(2) + flatten:
    #   canvas[u, v] = max_{a,b} x[2*s*(u-2)+a, 2*s*(v-2)+b]  in the data box.
    E = np.zeros((4, H * W, Ltot), np.float32)
    for u in range(2, H1 + 2):
        for v in range(2, W1 + 2):
            j = u * Wc + v
            for a in range(2):
                for b in range(2):
                    hy = 2 * s * (u - 2) + a
                    wx = 2 * s * (v - 2) + b
                    if hy < H and wx < W:
                        E[a * 2 + b, hy * W + wx, j] = 1.0

    # conv1-output validity mask: zeroes wrap/border garbage so the canvas
    # doubles as conv2's zero-padding ring.
    m = np.zeros((Hc, Wc), np.float32)
    m[1:H1 + 1, 1:W1 + 1] = 1.0
    mask = m.reshape(1, Lc)

    # Fused "gather valid conv2 outputs + bilinear resize to (Hout, Wout)".
    Rh = _resize_matrix(H1, Hout)              # (Hout, H1)
    Rw = _resize_matrix(W1, Wout)              # (Wout, W1)
    Rf = np.zeros((L2, Hout * Wout), np.float32)
    for yy in range(H1):
        for xx in range(W1):
            Rf[yy * Wc + xx, :] = np.outer(Rh[:, yy], Rw[:, xx]).reshape(-1)

    return dict(Wc=Wc, Lc=Lc, L2=L2, Ltot=Ltot, E=E, mask=mask, Rf=Rf)


# --------------------------------------------------------------------------
# Fused branch kernel (one grid step = one batch element, all in VMEM):
#   pool+subsample+pad (4 selection dots, max-combined)
#   -> conv1 (9 flat-shift dots) + folded BN + ReLU + mask
#   -> conv2 (9 flat-shift dots) + folded BN + ReLU
#   -> bilinear resize (1 dot)
# --------------------------------------------------------------------------
def _branch_kernel(x_ref, e_ref, w1_ref, s1_ref, b1_ref, w2_ref, s2_ref,
                   b2_ref, m_ref, r_ref, o_ref, *, Wc, Lc, L2):
    cmid = w1_ref.shape[1]
    xb = x_ref[0]                                          # (Cin, H*W) bf16

    # MaxPool2d(2) + stride-s subsample + zero-pad, as exact 0/1 selections.
    p0 = jnp.dot(xb, e_ref[0], preferred_element_type=jnp.float32)
    p1 = jnp.dot(xb, e_ref[1], preferred_element_type=jnp.float32)
    p2 = jnp.dot(xb, e_ref[2], preferred_element_type=jnp.float32)
    p3 = jnp.dot(xb, e_ref[3], preferred_element_type=jnp.float32)
    canvas = jnp.maximum(jnp.maximum(p0, p1),
                         jnp.maximum(p2, p3)).astype(jnp.bfloat16)  # (Cin, Ltot)

    # conv1: 9 shifted lane slices of the flattened canvas, f32 accumulate.
    acc1 = jnp.zeros((cmid, Lc), jnp.float32)
    for t in range(9):
        sh = (t // 3) * Wc + (t % 3)
        acc1 = acc1 + jnp.dot(w1_ref[t], canvas[:, sh:sh + Lc],
                              preferred_element_type=jnp.float32)
    h = jnp.maximum(acc1 * s1_ref[...] + b1_ref[...], 0.0) * m_ref[...]
    h = h.astype(jnp.bfloat16)                             # (Cmid, Lc)

    # conv2 (3x3, stride 1, pad 1): the masked canvas already carries the
    # zero padding ring, so it is the same flat-shift accumulation.
    acc2 = jnp.zeros((cmid, L2), jnp.float32)
    for t in range(9):
        sh = (t // 3) * Wc + (t % 3)
        acc2 = acc2 + jnp.dot(w2_ref[t], h[:, sh:sh + L2],
                              preferred_element_type=jnp.float32)
    o2 = jnp.maximum(acc2 * s2_ref[...] + b2_ref[...], 0.0)

    # Valid-output gather + bilinear upsample, fused into one matmul.
    o_ref[0] = jnp.dot(o2.astype(jnp.bfloat16), r_ref[...],
                       preferred_element_type=jnp.float32).astype(o_ref.dtype)


def _branch_forward(x_flat, p, plan, Hout, Wout):
    """x_flat: (N, Cin, H*W) bf16 -> (N, Cmid, Hout*Wout) f32."""
    N, Cin, HW = x_flat.shape
    Cmid = p["w1"].shape[0]
    Wc, Lc, L2, Ltot = plan["Wc"], plan["Lc"], plan["L2"], plan["Ltot"]

    w1t = jnp.transpose(p["w1"], (2, 3, 0, 1)).reshape(9, Cmid, Cin)
    w2t = jnp.transpose(p["w2"], (2, 3, 0, 1)).reshape(9, Cmid, Cmid)
    args = (
        x_flat,
        jnp.asarray(plan["E"], jnp.bfloat16),
        w1t.astype(jnp.bfloat16),
        p["s1"].reshape(Cmid, 1).astype(jnp.float32),
        p["b1"].reshape(Cmid, 1).astype(jnp.float32),
        w2t.astype(jnp.bfloat16),
        p["s2"].reshape(Cmid, 1).astype(jnp.float32),
        p["b2"].reshape(Cmid, 1).astype(jnp.float32),
        jnp.asarray(plan["mask"], jnp.float32),
        jnp.asarray(plan["Rf"], jnp.bfloat16),
    )
    kern = functools.partial(_branch_kernel, Wc=Wc, Lc=Lc, L2=L2)
    return pl.pallas_call(
        kern,
        out_shape=jax.ShapeDtypeStruct((N, Cmid, Hout * Wout), jnp.float32),
        grid=(N,),
        in_specs=[
            pl.BlockSpec((1, Cin, HW), lambda n: (n, 0, 0)),
            pl.BlockSpec((4, HW, Ltot), lambda n: (0, 0, 0)),
            pl.BlockSpec((9, Cmid, Cin), lambda n: (0, 0, 0)),
            pl.BlockSpec((Cmid, 1), lambda n: (0, 0)),
            pl.BlockSpec((Cmid, 1), lambda n: (0, 0)),
            pl.BlockSpec((9, Cmid, Cmid), lambda n: (0, 0, 0)),
            pl.BlockSpec((Cmid, 1), lambda n: (0, 0)),
            pl.BlockSpec((Cmid, 1), lambda n: (0, 0)),
            pl.BlockSpec((1, Lc), lambda n: (0, 0)),
            pl.BlockSpec((L2, Hout * Wout), lambda n: (0, 0)),
        ],
        out_specs=pl.BlockSpec((1, Cmid, Hout * Wout), lambda n: (n, 0, 0)),
        compiler_params=pltpu.CompilerParams(
            dimension_semantics=("parallel",)),
    )(*args)


def make_down_mr_forward(in_channels, out_channels, H, W):
    """Build the Down_mr forward fn (static plans precomputed host-side)."""
    Hout, Wout = H // 2, W // 2                 # ds0 output spatial
    plans = tuple(_branch_plan(H, W, s, Hout, Wout) for s in (1, 2, 4))

    def forward(x_nchw, params):
        N, Cin, Hx, Wx = x_nchw.shape
        x_flat = x_nchw.reshape(N, Cin, Hx * Wx).astype(jnp.bfloat16)
        outs = [
            _branch_forward(x_flat, params[name], plan, Hout, Wout)
            for name, plan in zip(("ds0", "ds1", "ds2"), plans)
        ]
        out = jnp.concatenate(outs, axis=1)     # (N, 3*Cmid, Hout*Wout)
        return out.reshape(N, -1, Hout, Wout)   # NCHW, no final transpose

    return forward


# --------------------------------------------------------------------------
# Parameters (BN folded to per-channel scale/bias, inference mode)
# --------------------------------------------------------------------------
def init_double_conv(key, cin, cout):
    keys = jax.random.split(key, 12)

    def conv_params(k, cin_, cout_):
        w = 0.2 * jax.random.normal(k[0], (cout_, cin_, 3, 3), jnp.float32)
        b = 0.05 * jax.random.normal(k[1], (cout_,), jnp.float32)
        gamma = 1.0 + 0.1 * jax.random.normal(k[2], (cout_,), jnp.float32)
        beta = 0.05 * jax.random.normal(k[3], (cout_,), jnp.float32)
        mean = 0.05 * jax.random.normal(k[4], (cout_,), jnp.float32)
        var = 1.0 + 0.1 * jax.random.uniform(k[5], (cout_,), jnp.float32)
        scale = gamma / jnp.sqrt(var + _BN_EPS)
        bias = beta + scale * (b - mean)
        return w, scale, bias

    w1, s1, b1 = conv_params(keys[0:6], cin, cout)
    w2, s2, b2 = conv_params(keys[6:12], cout, cout)
    return dict(w1=w1, s1=s1, b1=b1, w2=w2, s2=s2, b2=b2)


# --------------------------------------------------------------------------
# Pure-JAX reference (loose numerical self-check; f32 everywhere)
# --------------------------------------------------------------------------
def _reference_forward(x, params):
    hi = jax.lax.Precision.HIGHEST

    def conv_bn_relu(h, w, scale, bias, stride, dilation, padding):
        out = jax.lax.conv_general_dilated(
            h, w, window_strides=(stride, stride),
            padding=[(padding, padding), (padding, padding)],
            rhs_dilation=(dilation, dilation),
            dimension_numbers=("NCHW", "OIHW", "NCHW"),
            precision=hi)
        out = out * scale[None, :, None, None] + bias[None, :, None, None]
        return jnp.maximum(out, 0.0)

    def dconv(h, p, s, d, pad):
        h = conv_bn_relu(h, p["w1"], p["s1"], p["b1"], s, d, pad)
        return conv_bn_relu(h, p["w2"], p["s2"], p["b2"], 1, 1, 1)

    xp = jax.lax.reduce_window(x, -jnp.inf, jax.lax.max,
                               (1, 1, 2, 2), (1, 1, 2, 2), "VALID")
    o1 = dconv(xp, params["ds0"], 1, 1, 1)
    o2 = dconv(xp, params["ds1"], 2, 2, 2)
    o3 = dconv(xp, params["ds2"], 4, 4, 4)
    Ho, Wo = o1.shape[2], o1.shape[3]

    def up(o):
        Rh = jnp.asarray(_resize_matrix(o.shape[2], Ho))
        Rw = jnp.asarray(_resize_matrix(o.shape[3], Wo))
        return jnp.einsum("oh,pw,nchw->ncop", Rh, Rw, o, precision=hi)

    return jnp.concatenate([o1, up(o2), up(o3)], axis=1)


# --------------------------------------------------------------------------
if __name__ == "__main__":
    key = jax.random.PRNGKey(0)
    kx, k0, k1, k2 = jax.random.split(key, 4)

    N, Cin, H, W = 2, 4, 16, 16
    out_channels = 12
    oc = int(out_channels / 3)  # per-branch channels, as in the PyTorch module

    x = jax.random.normal(kx, (N, Cin, H, W), jnp.float32)
    params = {
        "ds0": init_double_conv(k0, Cin, oc),
        "ds1": init_double_conv(k1, Cin, oc),
        "ds2": init_double_conv(k2, Cin, oc),
    }

    forward = make_down_mr_forward(Cin, out_channels, H, W)
    fwd = jax.jit(forward)
    out = jax.block_until_ready(fwd(x, params))
    assert out.shape == (N, 3 * oc, H // 2, W // 2), out.shape
    assert bool(jnp.all(jnp.isfinite(out)))

    # Loose self-check against a pure-JAX f32 reference (kernel path uses bf16
    # MXU inputs, so only a generous tolerance is expected to hold).
    ref = jax.block_until_ready(jax.jit(_reference_forward)(x, params))
    err = float(jnp.max(jnp.abs(out - ref)))
    ref_mag = float(jnp.max(jnp.abs(ref)))
    assert err <= 0.1 * ref_mag + 0.1, (err, ref_mag)

    print("KERNEL_OK")
</pallas_src>

<mosaic_0001>
module attributes {stable_mosaic.version = 11 : i64} {
  func.func @_branch_kernel(%arg0: i32, %arg1: memref<1x4x256xbf16, #tpu.memory_space<vmem>>, %arg2: memref<4x256x170xbf16, #tpu.memory_space<vmem>>, %arg3: memref<9x4x4xbf16, #tpu.memory_space<vmem>>, %arg4: memref<4x1xf32, #tpu.memory_space<vmem>>, %arg5: memref<4x1xf32, #tpu.memory_space<vmem>>, %arg6: memref<9x4x4xbf16, #tpu.memory_space<vmem>>, %arg7: memref<4x1xf32, #tpu.memory_space<vmem>>, %arg8: memref<4x1xf32, #tpu.memory_space<vmem>>, %arg9: memref<1x144xf32, #tpu.memory_space<vmem>>, %arg10: memref<118x64xbf16, #tpu.memory_space<vmem>>, %arg11: memref<1x4x64xf32, #tpu.memory_space<vmem>>) attributes {dimension_semantics = [#tpu.dimension_semantics<parallel>], iteration_bounds = array<i64: 2>, scalar_prefetch = 0 : i64, scratch_operands = 0 : i64, tpu.core_type = #tpu.core_type<tc>, window_params = [{transform_indices = @transform_0, window_bounds = array<i64: 1, 4, 256>}, {pipeline_mode = #tpu.pipeline_mode<synchronous>, transform_indices = @transform_1, window_bounds = array<i64: 4, 256, 170>}, {pipeline_mode = #tpu.pipeline_mode<synchronous>, transform_indices = @transform_2, window_bounds = array<i64: 9, 4, 4>}, {pipeline_mode = #tpu.pipeline_mode<synchronous>, transform_indices = @transform_3, window_bounds = array<i64: 4, 1>}, {pipeline_mode = #tpu.pipeline_mode<synchronous>, transform_indices = @transform_4, window_bounds = array<i64: 4, 1>}, {pipeline_mode = #tpu.pipeline_mode<synchronous>, transform_indices = @transform_5, window_bounds = array<i64: 9, 4, 4>}, {pipeline_mode = #tpu.pipeline_mode<synchronous>, transform_indices = @transform_6, window_bounds = array<i64: 4, 1>}, {pipeline_mode = #tpu.pipeline_mode<synchronous>, transform_indices = @transform_7, window_bounds = array<i64: 4, 1>}, {pipeline_mode = #tpu.pipeline_mode<synchronous>, transform_indices = @transform_8, window_bounds = array<i64: 1, 144>}, {pipeline_mode = #tpu.pipeline_mode<synchronous>, transform_indices = @transform_9, window_bounds = array<i64: 118, 64>}, {transform_indices = @transform_10, window_bounds = array<i64: 1, 4, 64>}]} {
    %c0 = arith.constant 0 : index
    %c0_0 = arith.constant 0 : index
    %c0_1 = arith.constant 0 : index
    %0 = vector.load %arg1[%c0, %c0_0, %c0_1] : memref<1x4x256xbf16, #tpu.memory_space<vmem>>, vector<1x4x256xbf16>
    %1 = vector.shape_cast %0 : vector<1x4x256xbf16> to vector<4x256xbf16>
    %c0_2 = arith.constant 0 : index
    %c0_3 = arith.constant 0 : index
    %c0_4 = arith.constant 0 : index
    %2 = vector.load %arg2[%c0_2, %c0_3, %c0_4] : memref<4x256x170xbf16, #tpu.memory_space<vmem>>, vector<1x256x170xbf16>
    %3 = vector.shape_cast %2 : vector<1x256x170xbf16> to vector<256x170xbf16>
    %cst = arith.constant dense<0.000000e+00> : vector<4x170xf32>
    %4 = tpu.matmul %1, %3, %cst {dimension_numbers = #tpu.dot_dimension_numbers<[1], [0], [0], [1], [0, 0, 1, 1], [], []>} : vector<4x256xbf16>, vector<256x170xbf16>, vector<4x170xf32> -> vector<4x170xf32>
    %c1 = arith.constant 1 : index
    %c0_5 = arith.constant 0 : index
    %c0_6 = arith.constant 0 : index
    %5 = vector.load %arg2[%c1, %c0_5, %c0_6] : memref<4x256x170xbf16, #tpu.memory_space<vmem>>, vector<1x256x170xbf16>
    %6 = vector.shape_cast %5 : vector<1x256x170xbf16> to vector<256x170xbf16>
    %cst_7 = arith.constant dense<0.000000e+00> : vector<4x170xf32>
    %7 = tpu.matmul %1, %6, %cst_7 {dimension_numbers = #tpu.dot_dimension_numbers<[1], [0], [0], [1], [0, 0, 1, 1], [], []>} : vector<4x256xbf16>, vector<256x170xbf16>, vector<4x170xf32> -> vector<4x170xf32>
    %c2 = arith.constant 2 : index
    %c0_8 = arith.constant 0 : index
    %c0_9 = arith.constant 0 : index
    %8 = vector.load %arg2[%c2, %c0_8, %c0_9] : memref<4x256x170xbf16, #tpu.memory_space<vmem>>, vector<1x256x170xbf16>
    %9 = vector.shape_cast %8 : vector<1x256x170xbf16> to vector<256x170xbf16>
    %cst_10 = arith.constant dense<0.000000e+00> : vector<4x170xf32>
    %10 = tpu.matmul %1, %9, %cst_10 {dimension_numbers = #tpu.dot_dimension_numbers<[1], [0], [0], [1], [0, 0, 1, 1], [], []>} : vector<4x256xbf16>, vector<256x170xbf16>, vector<4x170xf32> -> vector<4x170xf32>
    %c3 = arith.constant 3 : index
    %c0_11 = arith.constant 0 : index
    %c0_12 = arith.constant 0 : index
    %11 = vector.load %arg2[%c3, %c0_11, %c0_12] : memref<4x256x170xbf16, #tpu.memory_space<vmem>>, vector<1x256x170xbf16>
    %12 = vector.shape_cast %11 : vector<1x256x170xbf16> to vector<256x170xbf16>
    %cst_13 = arith.constant dense<0.000000e+00> : vector<4x170xf32>
    %13 = tpu.matmul %1, %12, %cst_13 {dimension_numbers = #tpu.dot_dimension_numbers<[1], [0], [0], [1], [0, 0, 1, 1], [], []>} : vector<4x256xbf16>, vector<256x170xbf16>, vector<4x170xf32> -> vector<4x170xf32>
    %14 = arith.maximumf %4, %7 : vector<4x170xf32>
    %15 = arith.maximumf %10, %13 : vector<4x170xf32>
    %16 = arith.maximumf %14, %15 : vector<4x170xf32>
    %17 = arith.truncf %16 : vector<4x170xf32> to vector<4x170xbf16>
    %cst_14 = arith.constant 0.000000e+00 : f32
    %18 = vector.broadcast %cst_14 : f32 to vector<4x144xf32>
    %c0_15 = arith.constant 0 : index
    %c0_16 = arith.constant 0 : index
    %c0_17 = arith.constant 0 : index
    %19 = vector.load %arg3[%c0_15, %c0_16, %c0_17] : memref<9x4x4xbf16, #tpu.memory_space<vmem>>, vector<1x4x4xbf16>
    %20 = vector.shape_cast %19 : vector<1x4x4xbf16> to vector<4x4xbf16>
    %21 = vector.extract_strided_slice %17 {offsets = [0, 0], sizes = [4, 144], strides = [1, 1]} : vector<4x170xbf16> to vector<4x144xbf16>
    %cst_18 = arith.constant dense<0.000000e+00> : vector<4x144xf32>
    %22 = tpu.matmul %20, %21, %cst_18 {dimension_numbers = #tpu.dot_dimension_numbers<[1], [0], [0], [1], [0, 0, 1, 1], [], []>} : vector<4x4xbf16>, vector<4x144xbf16>, vector<4x144xf32> -> vector<4x144xf32>
    %23 = arith.addf %18, %22 : vector<4x144xf32>
    %c1_19 = arith.constant 1 : index
    %c0_20 = arith.constant 0 : index
    %c0_21 = arith.constant 0 : index
    %24 = vector.load %arg3[%c1_19, %c0_20, %c0_21] : memref<9x4x4xbf16, #tpu.memory_space<vmem>>, vector<1x4x4xbf16>
    %25 = vector.shape_cast %24 : vector<1x4x4xbf16> to vector<4x4xbf16>
    %26 = vector.extract_strided_slice %17 {offsets = [0, 1], sizes = [4, 144], strides = [1, 1]} : vector<4x170xbf16> to vector<4x144xbf16>
    %cst_22 = arith.constant dense<0.000000e+00> : vector<4x144xf32>
    %27 = tpu.matmul %25, %26, %cst_22 {dimension_numbers = #tpu.dot_dimension_numbers<[1], [0], [0], [1], [0, 0, 1, 1], [], []>} : vector<4x4xbf16>, vector<4x144xbf16>, vector<4x144xf32> -> vector<4x144xf32>
    %28 = arith.addf %23, %27 : vector<4x144xf32>
    %c2_23 = arith.constant 2 : index
    %c0_24 = arith.constant 0 : index
    %c0_25 = arith.constant 0 : index
    %29 = vector.load %arg3[%c2_23, %c0_24, %c0_25] : memref<9x4x4xbf16, #tpu.memory_space<vmem>>, vector<1x4x4xbf16>
    %30 = vector.shape_cast %29 : vector<1x4x4xbf16> to vector<4x4xbf16>
    %31 = vector.extract_strided_slice %17 {offsets = [0, 2], sizes = [4, 144], strides = [1, 1]} : vector<4x170xbf16> to vector<4x144xbf16>
    %cst_26 = arith.constant dense<0.000000e+00> : vector<4x144xf32>
    %32 = tpu.matmul %30, %31, %cst_26 {dimension_numbers = #tpu.dot_dimension_numbers<[1], [0], [0], [1], [0, 0, 1, 1], [], []>} : vector<4x4xbf16>, vector<4x144xbf16>, vector<4x144xf32> -> vector<4x144xf32>
    %33 = arith.addf %28, %32 : vector<4x144xf32>
    %c3_27 = arith.constant 3 : index
    %c0_28 = arith.constant 0 : index
    %c0_29 = arith.constant 0 : index
    %34 = vector.load %arg3[%c3_27, %c0_28, %c0_29] : memref<9x4x4xbf16, #tpu.memory_space<vmem>>, vector<1x4x4xbf16>
    %35 = vector.shape_cast %34 : vector<1x4x4xbf16> to vector<4x4xbf16>
    %36 = vector.extract_strided_slice %17 {offsets = [0, 12], sizes = [4, 144], strides = [1, 1]} : vector<4x170xbf16> to vector<4x144xbf16>
    %cst_30 = arith.constant dense<0.000000e+00> : vector<4x144xf32>
    %37 = tpu.matmul %35, %36, %cst_30 {dimension_numbers = #tpu.dot_dimension_numbers<[1], [0], [0], [1], [0, 0, 1, 1], [], []>} : vector<4x4xbf16>, vector<4x144xbf16>, vector<4x144xf32> -> vector<4x144xf32>
    %38 = arith.addf %33, %37 : vector<4x144xf32>
    %c4 = arith.constant 4 : index
    %c0_31 = arith.constant 0 : index
    %c0_32 = arith.constant 0 : index
    %39 = vector.load %arg3[%c4, %c0_31, %c0_32] : memref<9x4x4xbf16, #tpu.memory_space<vmem>>, vector<1x4x4xbf16>
    %40 = vector.shape_cast %39 : vector<1x4x4xbf16> to vector<4x4xbf16>
    %41 = vector.extract_strided_slice %17 {offsets = [0, 13], sizes = [4, 144], strides = [1, 1]} : vector<4x170xbf16> to vector<4x144xbf16>
    %cst_33 = arith.constant dense<0.000000e+00> : vector<4x144xf32>
    %42 = tpu.matmul %40, %41, %cst_33 {dimension_numbers = #tpu.dot_dimension_numbers<[1], [0], [0], [1], [0, 0, 1, 1], [], []>} : vector<4x4xbf16>, vector<4x144xbf16>, vector<4x144xf32> -> vector<4x144xf32>
    %43 = arith.addf %38, %42 : vector<4x144xf32>
    %c5 = arith.constant 5 : index
    %c0_34 = arith.constant 0 : index
    %c0_35 = arith.constant 0 : index
    %44 = vector.load %arg3[%c5, %c0_34, %c0_35] : memref<9x4x4xbf16, #tpu.memory_space<vmem>>, vector<1x4x4xbf16>
    %45 = vector.shape_cast %44 : vector<1x4x4xbf16> to vector<4x4xbf16>
    %46 = vector.extract_strided_slice %17 {offsets = [0, 14], sizes = [4, 144], strides = [1, 1]} : vector<4x170xbf16> to vector<4x144xbf16>
    %cst_36 = arith.constant dense<0.000000e+00> : vector<4x144xf32>
    %47 = tpu.matmul %45, %46, %cst_36 {dimension_numbers = #tpu.dot_dimension_numbers<[1], [0], [0], [1], [0, 0, 1, 1], [], []>} : vector<4x4xbf16>, vector<4x144xbf16>, vector<4x144xf32> -> vector<4x144xf32>
    %48 = arith.addf %43, %47 : vector<4x144xf32>
    %c6 = arith.constant 6 : index
    %c0_37 = arith.constant 0 : index
    %c0_38 = arith.constant 0 : index
    %49 = vector.load %arg3[%c6, %c0_37, %c0_38] : memref<9x4x4xbf16, #tpu.memory_space<vmem>>, vector<1x4x4xbf16>
    %50 = vector.shape_cast %49 : vector<1x4x4xbf16> to vector<4x4xbf16>
    %51 = vector.extract_strided_slice %17 {offsets = [0, 24], sizes = [4, 144], strides = [1, 1]} : vector<4x170xbf16> to vector<4x144xbf16>
    %cst_39 = arith.constant dense<0.000000e+00> : vector<4x144xf32>
    %52 = tpu.matmul %50, %51, %cst_39 {dimension_numbers = #tpu.dot_dimension_numbers<[1], [0], [0], [1], [0, 0, 1, 1], [], []>} : vector<4x4xbf16>, vector<4x144xbf16>, vector<4x144xf32> -> vector<4x144xf32>
    %53 = arith.addf %48, %52 : vector<4x144xf32>
    %c7 = arith.constant 7 : index
    %c0_40 = arith.constant 0 : index
    %c0_41 = arith.constant 0 : index
    %54 = vector.load %arg3[%c7, %c0_40, %c0_41] : memref<9x4x4xbf16, #tpu.memory_space<vmem>>, vector<1x4x4xbf16>
    %55 = vector.shape_cast %54 : vector<1x4x4xbf16> to vector<4x4xbf16>
    %56 = vector.extract_strided_slice %17 {offsets = [0, 25], sizes = [4, 144], strides = [1, 1]} : vector<4x170xbf16> to vector<4x144xbf16>
    %cst_42 = arith.constant dense<0.000000e+00> : vector<4x144xf32>
    %57 = tpu.matmul %55, %56, %cst_42 {dimension_numbers = #tpu.dot_dimension_numbers<[1], [0], [0], [1], [0, 0, 1, 1], [], []>} : vector<4x4xbf16>, vector<4x144xbf16>, vector<4x144xf32> -> vector<4x144xf32>
    %58 = arith.addf %53, %57 : vector<4x144xf32>
    %c8 = arith.constant 8 : index
    %c0_43 = arith.constant 0 : index
    %c0_44 = arith.constant 0 : index
    %59 = vector.load %arg3[%c8, %c0_43, %c0_44] : memref<9x4x4xbf16, #tpu.memory_space<vmem>>, vector<1x4x4xbf16>
    %60 = vector.shape_cast %59 : vector<1x4x4xbf16> to vector<4x4xbf16>
    %61 = vector.extract_strided_slice %17 {offsets = [0, 26], sizes = [4, 144], strides = [1, 1]} : vector<4x170xbf16> to vector<4x144xbf16>
    %cst_45 = arith.constant dense<0.000000e+00> : vector<4x144xf32>
    %62 = tpu.matmul %60, %61, %cst_45 {dimension_numbers = #tpu.dot_dimension_numbers<[1], [0], [0], [1], [0, 0, 1, 1], [], []>} : vector<4x4xbf16>, vector<4x144xbf16>, vector<4x144xf32> -> vector<4x144xf32>
    %63 = arith.addf %58, %62 : vector<4x144xf32>
    %c0_46 = arith.constant 0 : index
    %c0_47 = arith.constant 0 : index
    %64 = vector.load %arg4[%c0_46, %c0_47] : memref<4x1xf32, #tpu.memory_space<vmem>>, vector<4x1xf32>
    %65 = vector.broadcast %64 : vector<4x1xf32> to vector<4x144xf32>
    %66 = arith.mulf %63, %65 : vector<4x144xf32>
    %c0_48 = arith.constant 0 : index
    %c0_49 = arith.constant 0 : index
    %67 = vector.load %arg5[%c0_48, %c0_49] : memref<4x1xf32, #tpu.memory_space<vmem>>, vector<4x1xf32>
    %68 = vector.broadcast %67 : vector<4x1xf32> to vector<4x144xf32>
    %69 = arith.addf %66, %68 : vector<4x144xf32>
    %cst_50 = arith.constant 0.000000e+00 : f32
    %70 = vector.broadcast %cst_50 : f32 to vector<4x144xf32>
    %71 = arith.maximumf %69, %70 : vector<4x144xf32>
    %c0_51 = arith.constant 0 : index
    %c0_52 = arith.constant 0 : index
    %72 = vector.load %arg9[%c0_51, %c0_52] : memref<1x144xf32, #tpu.memory_space<vmem>>, vector<1x144xf32>
    %73 = vector.broadcast %72 : vector<1x144xf32> to vector<4x144xf32>
    %74 = arith.mulf %71, %73 : vector<4x144xf32>
    %75 = arith.truncf %74 : vector<4x144xf32> to vector<4x144xbf16>
    %cst_53 = arith.constant 0.000000e+00 : f32
    %76 = vector.broadcast %cst_53 : f32 to vector<4x118xf32>
    %c0_54 = arith.constant 0 : index
    %c0_55 = arith.constant 0 : index
    %c0_56 = arith.constant 0 : index
    %77 = vector.load %arg6[%c0_54, %c0_55, %c0_56] : memref<9x4x4xbf16, #tpu.memory_space<vmem>>, vector<1x4x4xbf16>
    %78 = vector.shape_cast %77 : vector<1x4x4xbf16> to vector<4x4xbf16>
    %79 = vector.extract_strided_slice %75 {offsets = [0, 0], sizes = [4, 118], strides = [1, 1]} : vector<4x144xbf16> to vector<4x118xbf16>
    %cst_57 = arith.constant dense<0.000000e+00> : vector<4x118xf32>
    %80 = tpu.matmul %78, %79, %cst_57 {dimension_numbers = #tpu.dot_dimension_numbers<[1], [0], [0], [1], [0, 0, 1, 1], [], []>} : vector<4x4xbf16>, vector<4x118xbf16>, vector<4x118xf32> -> vector<4x118xf32>
    %81 = arith.addf %76, %80 : vector<4x118xf32>
    %c1_58 = arith.constant 1 : index
    %c0_59 = arith.constant 0 : index
    %c0_60 = arith.constant 0 : index
    %82 = vector.load %arg6[%c1_58, %c0_59, %c0_60] : memref<9x4x4xbf16, #tpu.memory_space<vmem>>, vector<1x4x4xbf16>
    %83 = vector.shape_cast %82 : vector<1x4x4xbf16> to vector<4x4xbf16>
    %84 = vector.extract_strided_slice %75 {offsets = [0, 1], sizes = [4, 118], strides = [1, 1]} : vector<4x144xbf16> to vector<4x118xbf16>
    %cst_61 = arith.constant dense<0.000000e+00> : vector<4x118xf32>
    %85 = tpu.matmul %83, %84, %cst_61 {dimension_numbers = #tpu.dot_dimension_numbers<[1], [0], [0], [1], [0, 0, 1, 1], [], []>} : vector<4x4xbf16>, vector<4x118xbf16>, vector<4x118xf32> -> vector<4x118xf32>
    %86 = arith.addf %81, %85 : vector<4x118xf32>
    %c2_62 = arith.constant 2 : index
    %c0_63 = arith.constant 0 : index
    %c0_64 = arith.constant 0 : index
    %87 = vector.load %arg6[%c2_62, %c0_63, %c0_64] : memref<9x4x4xbf16, #tpu.memory_space<vmem>>, vector<1x4x4xbf16>
    %88 = vector.shape_cast %87 : vector<1x4x4xbf16> to vector<4x4xbf16>
    %89 = vector.extract_strided_slice %75 {offsets = [0, 2], sizes = [4, 118], strides = [1, 1]} : vector<4x144xbf16> to vector<4x118xbf16>
    %cst_65 = arith.constant dense<0.000000e+00> : vector<4x118xf32>
    %90 = tpu.matmul %88, %89, %cst_65 {dimension_numbers = #tpu.dot_dimension_numbers<[1], [0], [0], [1], [0, 0, 1, 1], [], []>} : vector<4x4xbf16>, vector<4x118xbf16>, vector<4x118xf32> -> vector<4x118xf32>
    %91 = arith.addf %86, %90 : vector<4x118xf32>
    %c3_66 = arith.constant 3 : index
    %c0_67 = arith.constant 0 : index
    %c0_68 = arith.constant 0 : index
    %92 = vector.load %arg6[%c3_66, %c0_67, %c0_68] : memref<9x4x4xbf16, #tpu.memory_space<vmem>>, vector<1x4x4xbf16>
    %93 = vector.shape_cast %92 : vector<1x4x4xbf16> to vector<4x4xbf16>
    %94 = vector.extract_strided_slice %75 {offsets = [0, 12], sizes = [4, 118], strides = [1, 1]} : vector<4x144xbf16> to vector<4x118xbf16>
    %cst_69 = arith.constant dense<0.000000e+00> : vector<4x118xf32>
    %95 = tpu.matmul %93, %94, %cst_69 {dimension_numbers = #tpu.dot_dimension_numbers<[1], [0], [0], [1], [0, 0, 1, 1], [], []>} : vector<4x4xbf16>, vector<4x118xbf16>, vector<4x118xf32> -> vector<4x118xf32>
    %96 = arith.addf %91, %95 : vector<4x118xf32>
    %c4_70 = arith.constant 4 : index
    %c0_71 = arith.constant 0 : index
    %c0_72 = arith.constant 0 : index
    %97 = vector.load %arg6[%c4_70, %c0_71, %c0_72] : memref<9x4x4xbf16, #tpu.memory_space<vmem>>, vector<1x4x4xbf16>
    %98 = vector.shape_cast %97 : vector<1x4x4xbf16> to vector<4x4xbf16>
    %99 = vector.extract_strided_slice %75 {offsets = [0, 13], sizes = [4, 118], strides = [1, 1]} : vector<4x144xbf16> to vector<4x118xbf16>
    %cst_73 = arith.constant dense<0.000000e+00> : vector<4x118xf32>
    %100 = tpu.matmul %98, %99, %cst_73 {dimension_numbers = #tpu.dot_dimension_numbers<[1], [0], [0], [1], [0, 0, 1, 1], [], []>} : vector<4x4xbf16>, vector<4x118xbf16>, vector<4x118xf32> -> vector<4x118xf32>
    %101 = arith.addf %96, %100 : vector<4x118xf32>
    %c5_74 = arith.constant 5 : index
    %c0_75 = arith.constant 0 : index
    %c0_76 = arith.constant 0 : index
    %102 = vector.load %arg6[%c5_74, %c0_75, %c0_76] : memref<9x4x4xbf16, #tpu.memory_space<vmem>>, vector<1x4x4xbf16>
    %103 = vector.shape_cast %102 : vector<1x4x4xbf16> to vector<4x4xbf16>
    %104 = vector.extract_strided_slice %75 {offsets = [0, 14], sizes = [4, 118], strides = [1, 1]} : vector<4x144xbf16> to vector<4x118xbf16>
    %cst_77 = arith.constant dense<0.000000e+00> : vector<4x118xf32>
    %105 = tpu.matmul %103, %104, %cst_77 {dimension_numbers = #tpu.dot_dimension_numbers<[1], [0], [0], [1], [0, 0, 1, 1], [], []>} : vector<4x4xbf16>, vector<4x118xbf16>, vector<4x118xf32> -> vector<4x118xf32>
    %106 = arith.addf %101, %105 : vector<4x118xf32>
    %c6_78 = arith.constant 6 : index
    %c0_79 = arith.constant 0 : index
    %c0_80 = arith.constant 0 : index
    %107 = vector.load %arg6[%c6_78, %c0_79, %c0_80] : memref<9x4x4xbf16, #tpu.memory_space<vmem>>, vector<1x4x4xbf16>
    %108 = vector.shape_cast %107 : vector<1x4x4xbf16> to vector<4x4xbf16>
    %109 = vector.extract_strided_slice %75 {offsets = [0, 24], sizes = [4, 118], strides = [1, 1]} : vector<4x144xbf16> to vector<4x118xbf16>
    %cst_81 = arith.constant dense<0.000000e+00> : vector<4x118xf32>
    %110 = tpu.matmul %108, %109, %cst_81 {dimension_numbers = #tpu.dot_dimension_numbers<[1], [0], [0], [1], [0, 0, 1, 1], [], []>} : vector<4x4xbf16>, vector<4x118xbf16>, vector<4x118xf32> -> vector<4x118xf32>
    %111 = arith.addf %106, %110 : vector<4x118xf32>
    %c7_82 = arith.constant 7 : index
    %c0_83 = arith.constant 0 : index
    %c0_84 = arith.constant 0 : index
    %112 = vector.load %arg6[%c7_82, %c0_83, %c0_84] : memref<9x4x4xbf16, #tpu.memory_space<vmem>>, vector<1x4x4xbf16>
    %113 = vector.shape_cast %112 : vector<1x4x4xbf16> to vector<4x4xbf16>
    %114 = vector.extract_strided_slice %75 {offsets = [0, 25], sizes = [4, 118], strides = [1, 1]} : vector<4x144xbf16> to vector<4x118xbf16>
    %cst_85 = arith.constant dense<0.000000e+00> : vector<4x118xf32>
    %115 = tpu.matmul %113, %114, %cst_85 {dimension_numbers = #tpu.dot_dimension_numbers<[1], [0], [0], [1], [0, 0, 1, 1], [], []>} : vector<4x4xbf16>, vector<4x118xbf16>, vector<4x118xf32> -> vector<4x118xf32>
    %116 = arith.addf %111, %115 : vector<4x118xf32>
    %c8_86 = arith.constant 8 : index
    %c0_87 = arith.constant 0 : index
    %c0_88 = arith.constant 0 : index
    %117 = vector.load %arg6[%c8_86, %c0_87, %c0_88] : memref<9x4x4xbf16, #tpu.memory_space<vmem>>, vector<1x4x4xbf16>
    %118 = vector.shape_cast %117 : vector<1x4x4xbf16> to vector<4x4xbf16>
    %119 = vector.extract_strided_slice %75 {offsets = [0, 26], sizes = [4, 118], strides = [1, 1]} : vector<4x144xbf16> to vector<4x118xbf16>
    %cst_89 = arith.constant dense<0.000000e+00> : vector<4x118xf32>
    %120 = tpu.matmul %118, %119, %cst_89 {dimension_numbers = #tpu.dot_dimension_numbers<[1], [0], [0], [1], [0, 0, 1, 1], [], []>} : vector<4x4xbf16>, vector<4x118xbf16>, vector<4x118xf32> -> vector<4x118xf32>
    %121 = arith.addf %116, %120 : vector<4x118xf32>
    %c0_90 = arith.constant 0 : index
    %c0_91 = arith.constant 0 : index
    %122 = vector.load %arg7[%c0_90, %c0_91] : memref<4x1xf32, #tpu.memory_space<vmem>>, vector<4x1xf32>
    %123 = vector.broadcast %122 : vector<4x1xf32> to vector<4x118xf32>
    %124 = arith.mulf %121, %123 : vector<4x118xf32>
    %c0_92 = arith.constant 0 : index
    %c0_93 = arith.constant 0 : index
    %125 = vector.load %arg8[%c0_92, %c0_93] : memref<4x1xf32, #tpu.memory_space<vmem>>, vector<4x1xf32>
    %126 = vector.broadcast %125 : vector<4x1xf32> to vector<4x118xf32>
    %127 = arith.addf %124, %126 : vector<4x118xf32>
    %cst_94 = arith.constant 0.000000e+00 : f32
    %128 = vector.broadcast %cst_94 : f32 to vector<4x118xf32>
    %129 = arith.maximumf %127, %128 : vector<4x118xf32>
    %130 = arith.truncf %129 : vector<4x118xf32> to vector<4x118xbf16>
    %c0_95 = arith.constant 0 : index
    %c0_96 = arith.constant 0 : index
    %131 = vector.load %arg10[%c0_95, %c0_96] : memref<118x64xbf16, #tpu.memory_space<vmem>>, vector<118x64xbf16>
    %cst_97 = arith.constant dense<0.000000e+00> : vector<4x64xf32>
    %132 = tpu.matmul %130, %131, %cst_97 {dimension_numbers = #tpu.dot_dimension_numbers<[1], [0], [0], [1], [0, 0, 1, 1], [], []>} : vector<4x118xbf16>, vector<118x64xbf16>, vector<4x64xf32> -> vector<4x64xf32>
    %c0_98 = arith.constant 0 : index
    %c0_99 = arith.constant 0 : index
    %c0_100 = arith.constant 0 : index
    %133 = vector.load %arg11[%c0_98, %c0_99, %c0_100] : memref<1x4x64xf32, #tpu.memory_space<vmem>>, vector<1x4x64xf32>
    %134 = vector.shape_cast %133 : vector<1x4x64xf32> to vector<4x64xf32>
    %135 = vector.shape_cast %132 : vector<4x64xf32> to vector<1x4x64xf32>
    tpu.vector_store %arg11[%c0_98, %c0_99, %c0_100], %135 {strides = array<i32>} : memref<1x4x64xf32, #tpu.memory_space<vmem>>, vector<1x4x64xf32>,
    return
  }
  func.func @transform_0(%arg0: i32) -> (i32, i32, i32) {
    %c0_i32 = arith.constant 0 : i32
    %c0_i32_0 = arith.constant 0 : i32
    %c0_i32_1 = arith.constant 0 : i32
    return %arg0, %c0_i32, %c0_i32_0 : i32, i32, i32
  }
  func.func @transform_1(%arg0: i32) -> (i32, i32, i32) {
    %c0_i32 = arith.constant 0 : i32
    %c0_i32_0 = arith.constant 0 : i32
    %c0_i32_1 = arith.constant 0 : i32
    %c0_i32_2 = arith.constant 0 : i32
    return %c0_i32, %c0_i32_0, %c0_i32_1 : i32, i32, i32
  }
  func.func @transform_2(%arg0: i32) -> (i32, i32, i32) {
    %c0_i32 = arith.constant 0 : i32
    %c0_i32_0 = arith.constant 0 : i32
    %c0_i32_1 = arith.constant 0 : i32
    %c0_i32_2 = arith.constant 0 : i32
    return %c0_i32, %c0_i32_0, %c0_i32_1 : i32, i32, i32
  }
  func.func @transform_3(%arg0: i32) -> (i32, i32) {
    %c0_i32 = arith.constant 0 : i32
    %c0_i32_0 = arith.constant 0 : i32
    %c0_i32_1 = arith.constant 0 : i32
    return %c0_i32, %c0_i32_0 : i32, i32
  }
  func.func @transform_4(%arg0: i32) -> (i32, i32) {
    %c0_i32 = arith.constant 0 : i32
    %c0_i32_0 = arith.constant 0 : i32
    %c0_i32_1 = arith.constant 0 : i32
    return %c0_i32, %c0_i32_0 : i32, i32
  }
  func.func @transform_5(%arg0: i32) -> (i32, i32, i32) {
    %c0_i32 = arith.constant 0 : i32
    %c0_i32_0 = arith.constant 0 : i32
    %c0_i32_1 = arith.constant 0 : i32
    %c0_i32_2 = arith.constant 0 : i32
    return %c0_i32, %c0_i32_0, %c0_i32_1 : i32, i32, i32
  }
  func.func @transform_6(%arg0: i32) -> (i32, i32) {
    %c0_i32 = arith.constant 0 : i32
    %c0_i32_0 = arith.constant 0 : i32
    %c0_i32_1 = arith.constant 0 : i32
    return %c0_i32, %c0_i32_0 : i32, i32
  }
  func.func @transform_7(%arg0: i32) -> (i32, i32) {
    %c0_i32 = arith.constant 0 : i32
    %c0_i32_0 = arith.constant 0 : i32
    %c0_i32_1 = arith.constant 0 : i32
    return %c0_i32, %c0_i32_0 : i32, i32
  }
  func.func @transform_8(%arg0: i32) -> (i32, i32) {
    %c0_i32 = arith.constant 0 : i32
    %c0_i32_0 = arith.constant 0 : i32
    %c0_i32_1 = arith.constant 0 : i32
    return %c0_i32, %c0_i32_0 : i32, i32
  }
  func.func @transform_9(%arg0: i32) -> (i32, i32) {
    %c0_i32 = arith.constant 0 : i32
    %c0_i32_0 = arith.constant 0 : i32
    %c0_i32_1 = arith.constant 0 : i32
    return %c0_i32, %c0_i32_0 : i32, i32
  }
  func.func @transform_10(%arg0: i32) -> (i32, i32, i32) {
    %c0_i32 = arith.constant 0 : i32
    %c0_i32_0 = arith.constant 0 : i32
    %c0_i32_1 = arith.constant 0 : i32
    return %arg0, %c0_i32, %c0_i32_0 : i32, i32, i32
  }
}

module attributes {stable_mosaic.version = 11 : i64} {
  func.func @_branch_kernel(%arg0: i32, %arg1: memref<1x4x256xbf16, #tpu.memory_space<vmem>>, %arg2: memref<4x256x82xbf16, #tpu.memory_space<vmem>>, %arg3: memref<9x4x4xbf16, #tpu.memory_space<vmem>>, %arg4: memref<4x1xf32, #tpu.memory_space<vmem>>, %arg5: memref<4x1xf32, #tpu.memory_space<vmem>>, %arg6: memref<9x4x4xbf16, #tpu.memory_space<vmem>>, %arg7: memref<4x1xf32, #tpu.memory_space<vmem>>, %arg8: memref<4x1xf32, #tpu.memory_space<vmem>>, %arg9: memref<1x64xf32, #tpu.memory_space<vmem>>, %arg10: memref<46x64xbf16, #tpu.memory_space<vmem>>, %arg11: memref<1x4x64xf32, #tpu.memory_space<vmem>>) attributes {dimension_semantics = [#tpu.dimension_semantics<parallel>], iteration_bounds = array<i64: 2>, scalar_prefetch = 0 : i64, scratch_operands = 0 : i64, tpu.core_type = #tpu.core_type<tc>, window_params = [{transform_indices = @transform_0, window_bounds = array<i64: 1, 4, 256>}, {pipeline_mode = #tpu.pipeline_mode<synchronous>, transform_indices = @transform_1, window_bounds = array<i64: 4, 256, 82>}, {pipeline_mode = #tpu.pipeline_mode<synchronous>, transform_indices = @transform_2, window_bounds = array<i64: 9, 4, 4>}, {pipeline_mode = #tpu.pipeline_mode<synchronous>, transform_indices = @transform_3, window_bounds = array<i64: 4, 1>}, {pipeline_mode = #tpu.pipeline_mode<synchronous>, transform_indices = @transform_4, window_bounds = array<i64: 4, 1>}, {pipeline_mode = #tpu.pipeline_mode<synchronous>, transform_indices = @transform_5, window_bounds = array<i64: 9, 4, 4>}, {pipeline_mode = #tpu.pipeline_mode<synchronous>, transform_indices = @transform_6, window_bounds = array<i64: 4, 1>}, {pipeline_mode = #tpu.pipeline_mode<synchronous>, transform_indices = @transform_7, window_bounds = array<i64: 4, 1>}, {pipeline_mode = #tpu.pipeline_mode<synchronous>, transform_indices = @transform_8, window_bounds = array<i64: 1, 64>}, {pipeline_mode = #tpu.pipeline_mode<synchronous>, transform_indices = @transform_9, window_bounds = array<i64: 46, 64>}, {transform_indices = @transform_10, window_bounds = array<i64: 1, 4, 64>}]} {
    %c0 = arith.constant 0 : index
    %c0_0 = arith.constant 0 : index
    %c0_1 = arith.constant 0 : index
    %0 = vector.load %arg1[%c0, %c0_0, %c0_1] : memref<1x4x256xbf16, #tpu.memory_space<vmem>>, vector<1x4x256xbf16>
    %1 = vector.shape_cast %0 : vector<1x4x256xbf16> to vector<4x256xbf16>
    %c0_2 = arith.constant 0 : index
    %c0_3 = arith.constant 0 : index
    %c0_4 = arith.constant 0 : index
    %2 = vector.load %arg2[%c0_2, %c0_3, %c0_4] : memref<4x256x82xbf16, #tpu.memory_space<vmem>>, vector<1x256x82xbf16>
    %3 = vector.shape_cast %2 : vector<1x256x82xbf16> to vector<256x82xbf16>
    %cst = arith.constant dense<0.000000e+00> : vector<4x82xf32>
    %4 = tpu.matmul %1, %3, %cst {dimension_numbers = #tpu.dot_dimension_numbers<[1], [0], [0], [1], [0, 0, 1, 1], [], []>} : vector<4x256xbf16>, vector<256x82xbf16>, vector<4x82xf32> -> vector<4x82xf32>
    %c1 = arith.constant 1 : index
    %c0_5 = arith.constant 0 : index
    %c0_6 = arith.constant 0 : index
    %5 = vector.load %arg2[%c1, %c0_5, %c0_6] : memref<4x256x82xbf16, #tpu.memory_space<vmem>>, vector<1x256x82xbf16>
    %6 = vector.shape_cast %5 : vector<1x256x82xbf16> to vector<256x82xbf16>
    %cst_7 = arith.constant dense<0.000000e+00> : vector<4x82xf32>
    %7 = tpu.matmul %1, %6, %cst_7 {dimension_numbers = #tpu.dot_dimension_numbers<[1], [0], [0], [1], [0, 0, 1, 1], [], []>} : vector<4x256xbf16>, vector<256x82xbf16>, vector<4x82xf32> -> vector<4x82xf32>
    %c2 = arith.constant 2 : index
    %c0_8 = arith.constant 0 : index
    %c0_9 = arith.constant 0 : index
    %8 = vector.load %arg2[%c2, %c0_8, %c0_9] : memref<4x256x82xbf16, #tpu.memory_space<vmem>>, vector<1x256x82xbf16>
    %9 = vector.shape_cast %8 : vector<1x256x82xbf16> to vector<256x82xbf16>
    %cst_10 = arith.constant dense<0.000000e+00> : vector<4x82xf32>
    %10 = tpu.matmul %1, %9, %cst_10 {dimension_numbers = #tpu.dot_dimension_numbers<[1], [0], [0], [1], [0, 0, 1, 1], [], []>} : vector<4x256xbf16>, vector<256x82xbf16>, vector<4x82xf32> -> vector<4x82xf32>
    %c3 = arith.constant 3 : index
    %c0_11 = arith.constant 0 : index
    %c0_12 = arith.constant 0 : index
    %11 = vector.load %arg2[%c3, %c0_11, %c0_12] : memref<4x256x82xbf16, #tpu.memory_space<vmem>>, vector<1x256x82xbf16>
    %12 = vector.shape_cast %11 : vector<1x256x82xbf16> to vector<256x82xbf16>
    %cst_13 = arith.constant dense<0.000000e+00> : vector<4x82xf32>
    %13 = tpu.matmul %1, %12, %cst_13 {dimension_numbers = #tpu.dot_dimension_numbers<[1], [0], [0], [1], [0, 0, 1, 1], [], []>} : vector<4x256xbf16>, vector<256x82xbf16>, vector<4x82xf32> -> vector<4x82xf32>
    %14 = arith.maximumf %4, %7 : vector<4x82xf32>
    %15 = arith.maximumf %10, %13 : vector<4x82xf32>
    %16 = arith.maximumf %14, %15 : vector<4x82xf32>
    %17 = arith.truncf %16 : vector<4x82xf32> to vector<4x82xbf16>
    %cst_14 = arith.constant 0.000000e+00 : f32
    %18 = vector.broadcast %cst_14 : f32 to vector<4x64xf32>
    %c0_15 = arith.constant 0 : index
    %c0_16 = arith.constant 0 : index
    %c0_17 = arith.constant 0 : index
    %19 = vector.load %arg3[%c0_15, %c0_16, %c0_17] : memref<9x4x4xbf16, #tpu.memory_space<vmem>>, vector<1x4x4xbf16>
    %20 = vector.shape_cast %19 : vector<1x4x4xbf16> to vector<4x4xbf16>
    %21 = vector.extract_strided_slice %17 {offsets = [0, 0], sizes = [4, 64], strides = [1, 1]} : vector<4x82xbf16> to vector<4x64xbf16>
    %cst_18 = arith.constant dense<0.000000e+00> : vector<4x64xf32>
    %22 = tpu.matmul %20, %21, %cst_18 {dimension_numbers = #tpu.dot_dimension_numbers<[1], [0], [0], [1], [0, 0, 1, 1], [], []>} : vector<4x4xbf16>, vector<4x64xbf16>, vector<4x64xf32> -> vector<4x64xf32>
    %23 = arith.addf %18, %22 : vector<4x64xf32>
    %c1_19 = arith.constant 1 : index
    %c0_20 = arith.constant 0 : index
    %c0_21 = arith.constant 0 : index
    %24 = vector.load %arg3[%c1_19, %c0_20, %c0_21] : memref<9x4x4xbf16, #tpu.memory_space<vmem>>, vector<1x4x4xbf16>
    %25 = vector.shape_cast %24 : vector<1x4x4xbf16> to vector<4x4xbf16>
    %26 = vector.extract_strided_slice %17 {offsets = [0, 1], sizes = [4, 64], strides = [1, 1]} : vector<4x82xbf16> to vector<4x64xbf16>
    %cst_22 = arith.constant dense<0.000000e+00> : vector<4x64xf32>
    %27 = tpu.matmul %25, %26, %cst_22 {dimension_numbers = #tpu.dot_dimension_numbers<[1], [0], [0], [1], [0, 0, 1, 1], [], []>} : vector<4x4xbf16>, vector<4x64xbf16>, vector<4x64xf32> -> vector<4x64xf32>
    %28 = arith.addf %23, %27 : vector<4x64xf32>
    %c2_23 = arith.constant 2 : index
    %c0_24 = arith.constant 0 : index
    %c0_25 = arith.constant 0 : index
    %29 = vector.load %arg3[%c2_23, %c0_24, %c0_25] : memref<9x4x4xbf16, #tpu.memory_space<vmem>>, vector<1x4x4xbf16>
    %30 = vector.shape_cast %29 : vector<1x4x4xbf16> to vector<4x4xbf16>
    %31 = vector.extract_strided_slice %17 {offsets = [0, 2], sizes = [4, 64], strides = [1, 1]} : vector<4x82xbf16> to vector<4x64xbf16>
    %cst_26 = arith.constant dense<0.000000e+00> : vector<4x64xf32>
    %32 = tpu.matmul %30, %31, %cst_26 {dimension_numbers = #tpu.dot_dimension_numbers<[1], [0], [0], [1], [0, 0, 1, 1], [], []>} : vector<4x4xbf16>, vector<4x64xbf16>, vector<4x64xf32> -> vector<4x64xf32>
    %33 = arith.addf %28, %32 : vector<4x64xf32>
    %c3_27 = arith.constant 3 : index
    %c0_28 = arith.constant 0 : index
    %c0_29 = arith.constant 0 : index
    %34 = vector.load %arg3[%c3_27, %c0_28, %c0_29] : memref<9x4x4xbf16, #tpu.memory_space<vmem>>, vector<1x4x4xbf16>
    %35 = vector.shape_cast %34 : vector<1x4x4xbf16> to vector<4x4xbf16>
    %36 = vector.extract_strided_slice %17 {offsets = [0, 8], sizes = [4, 64], strides = [1, 1]} : vector<4x82xbf16> to vector<4x64xbf16>
    %cst_30 = arith.constant dense<0.000000e+00> : vector<4x64xf32>
    %37 = tpu.matmul %35, %36, %cst_30 {dimension_numbers = #tpu.dot_dimension_numbers<[1], [0], [0], [1], [0, 0, 1, 1], [], []>} : vector<4x4xbf16>, vector<4x64xbf16>, vector<4x64xf32> -> vector<4x64xf32>
    %38 = arith.addf %33, %37 : vector<4x64xf32>
    %c4 = arith.constant 4 : index
    %c0_31 = arith.constant 0 : index
    %c0_32 = arith.constant 0 : index
    %39 = vector.load %arg3[%c4, %c0_31, %c0_32] : memref<9x4x4xbf16, #tpu.memory_space<vmem>>, vector<1x4x4xbf16>
    %40 = vector.shape_cast %39 : vector<1x4x4xbf16> to vector<4x4xbf16>
    %41 = vector.extract_strided_slice %17 {offsets = [0, 9], sizes = [4, 64], strides = [1, 1]} : vector<4x82xbf16> to vector<4x64xbf16>
    %cst_33 = arith.constant dense<0.000000e+00> : vector<4x64xf32>
    %42 = tpu.matmul %40, %41, %cst_33 {dimension_numbers = #tpu.dot_dimension_numbers<[1], [0], [0], [1], [0, 0, 1, 1], [], []>} : vector<4x4xbf16>, vector<4x64xbf16>, vector<4x64xf32> -> vector<4x64xf32>
    %43 = arith.addf %38, %42 : vector<4x64xf32>
    %c5 = arith.constant 5 : index
    %c0_34 = arith.constant 0 : index
    %c0_35 = arith.constant 0 : index
    %44 = vector.load %arg3[%c5, %c0_34, %c0_35] : memref<9x4x4xbf16, #tpu.memory_space<vmem>>, vector<1x4x4xbf16>
    %45 = vector.shape_cast %44 : vector<1x4x4xbf16> to vector<4x4xbf16>
    %46 = vector.extract_strided_slice %17 {offsets = [0, 10], sizes = [4, 64], strides = [1, 1]} : vector<4x82xbf16> to vector<4x64xbf16>
    %cst_36 = arith.constant dense<0.000000e+00> : vector<4x64xf32>
    %47 = tpu.matmul %45, %46, %cst_36 {dimension_numbers = #tpu.dot_dimension_numbers<[1], [0], [0], [1], [0, 0, 1, 1], [], []>} : vector<4x4xbf16>, vector<4x64xbf16>, vector<4x64xf32> -> vector<4x64xf32>
    %48 = arith.addf %43, %47 : vector<4x64xf32>
    %c6 = arith.constant 6 : index
    %c0_37 = arith.constant 0 : index
    %c0_38 = arith.constant 0 : index
    %49 = vector.load %arg3[%c6, %c0_37, %c0_38] : memref<9x4x4xbf16, #tpu.memory_space<vmem>>, vector<1x4x4xbf16>
    %50 = vector.shape_cast %49 : vector<1x4x4xbf16> to vector<4x4xbf16>
    %51 = vector.extract_strided_slice %17 {offsets = [0, 16], sizes = [4, 64], strides = [1, 1]} : vector<4x82xbf16> to vector<4x64xbf16>
    %cst_39 = arith.constant dense<0.000000e+00> : vector<4x64xf32>
    %52 = tpu.matmul %50, %51, %cst_39 {dimension_numbers = #tpu.dot_dimension_numbers<[1], [0], [0], [1], [0, 0, 1, 1], [], []>} : vector<4x4xbf16>, vector<4x64xbf16>, vector<4x64xf32> -> vector<4x64xf32>
    %53 = arith.addf %48, %52 : vector<4x64xf32>
    %c7 = arith.constant 7 : index
    %c0_40 = arith.constant 0 : index
    %c0_41 = arith.constant 0 : index
    %54 = vector.load %arg3[%c7, %c0_40, %c0_41] : memref<9x4x4xbf16, #tpu.memory_space<vmem>>, vector<1x4x4xbf16>
    %55 = vector.shape_cast %54 : vector<1x4x4xbf16> to vector<4x4xbf16>
    %56 = vector.extract_strided_slice %17 {offsets = [0, 17], sizes = [4, 64], strides = [1, 1]} : vector<4x82xbf16> to vector<4x64xbf16>
    %cst_42 = arith.constant dense<0.000000e+00> : vector<4x64xf32>
    %57 = tpu.matmul %55, %56, %cst_42 {dimension_numbers = #tpu.dot_dimension_numbers<[1], [0], [0], [1], [0, 0, 1, 1], [], []>} : vector<4x4xbf16>, vector<4x64xbf16>, vector<4x64xf32> -> vector<4x64xf32>
    %58 = arith.addf %53, %57 : vector<4x64xf32>
    %c8 = arith.constant 8 : index
    %c0_43 = arith.constant 0 : index
    %c0_44 = arith.constant 0 : index
    %59 = vector.load %arg3[%c8, %c0_43, %c0_44] : memref<9x4x4xbf16, #tpu.memory_space<vmem>>, vector<1x4x4xbf16>
    %60 = vector.shape_cast %59 : vector<1x4x4xbf16> to vector<4x4xbf16>
    %61 = vector.extract_strided_slice %17 {offsets = [0, 18], sizes = [4, 64], strides = [1, 1]} : vector<4x82xbf16> to vector<4x64xbf16>
    %cst_45 = arith.constant dense<0.000000e+00> : vector<4x64xf32>
    %62 = tpu.matmul %60, %61, %cst_45 {dimension_numbers = #tpu.dot_dimension_numbers<[1], [0], [0], [1], [0, 0, 1, 1], [], []>} : vector<4x4xbf16>, vector<4x64xbf16>, vector<4x64xf32> -> vector<4x64xf32>
    %63 = arith.addf %58, %62 : vector<4x64xf32>
    %c0_46 = arith.constant 0 : index
    %c0_47 = arith.constant 0 : index
    %64 = vector.load %arg4[%c0_46, %c0_47] : memref<4x1xf32, #tpu.memory_space<vmem>>, vector<4x1xf32>
    %65 = vector.broadcast %64 : vector<4x1xf32> to vector<4x64xf32>
    %66 = arith.mulf %63, %65 : vector<4x64xf32>
    %c0_48 = arith.constant 0 : index
    %c0_49 = arith.constant 0 : index
    %67 = vector.load %arg5[%c0_48, %c0_49] : memref<4x1xf32, #tpu.memory_space<vmem>>, vector<4x1xf32>
    %68 = vector.broadcast %67 : vector<4x1xf32> to vector<4x64xf32>
    %69 = arith.addf %66, %68 : vector<4x64xf32>
    %cst_50 = arith.constant 0.000000e+00 : f32
    %70 = vector.broadcast %cst_50 : f32 to vector<4x64xf32>
    %71 = arith.maximumf %69, %70 : vector<4x64xf32>
    %c0_51 = arith.constant 0 : index
    %c0_52 = arith.constant 0 : index
    %72 = vector.load %arg9[%c0_51, %c0_52] : memref<1x64xf32, #tpu.memory_space<vmem>>, vector<1x64xf32>
    %73 = vector.broadcast %72 : vector<1x64xf32> to vector<4x64xf32>
    %74 = arith.mulf %71, %73 : vector<4x64xf32>
    %75 = arith.truncf %74 : vector<4x64xf32> to vector<4x64xbf16>
    %cst_53 = arith.constant 0.000000e+00 : f32
    %76 = vector.broadcast %cst_53 : f32 to vector<4x46xf32>
    %c0_54 = arith.constant 0 : index
    %c0_55 = arith.constant 0 : index
    %c0_56 = arith.constant 0 : index
    %77 = vector.load %arg6[%c0_54, %c0_55, %c0_56] : memref<9x4x4xbf16, #tpu.memory_space<vmem>>, vector<1x4x4xbf16>
    %78 = vector.shape_cast %77 : vector<1x4x4xbf16> to vector<4x4xbf16>
    %79 = vector.extract_strided_slice %75 {offsets = [0, 0], sizes = [4, 46], strides = [1, 1]} : vector<4x64xbf16> to vector<4x46xbf16>
    %cst_57 = arith.constant dense<0.000000e+00> : vector<4x46xf32>
    %80 = tpu.matmul %78, %79, %cst_57 {dimension_numbers = #tpu.dot_dimension_numbers<[1], [0], [0], [1], [0, 0, 1, 1], [], []>} : vector<4x4xbf16>, vector<4x46xbf16>, vector<4x46xf32> -> vector<4x46xf32>
    %81 = arith.addf %76, %80 : vector<4x46xf32>
    %c1_58 = arith.constant 1 : index
    %c0_59 = arith.constant 0 : index
    %c0_60 = arith.constant 0 : index
    %82 = vector.load %arg6[%c1_58, %c0_59, %c0_60] : memref<9x4x4xbf16, #tpu.memory_space<vmem>>, vector<1x4x4xbf16>
    %83 = vector.shape_cast %82 : vector<1x4x4xbf16> to vector<4x4xbf16>
    %84 = vector.extract_strided_slice %75 {offsets = [0, 1], sizes = [4, 46], strides = [1, 1]} : vector<4x64xbf16> to vector<4x46xbf16>
    %cst_61 = arith.constant dense<0.000000e+00> : vector<4x46xf32>
    %85 = tpu.matmul %83, %84, %cst_61 {dimension_numbers = #tpu.dot_dimension_numbers<[1], [0], [0], [1], [0, 0, 1, 1], [], []>} : vector<4x4xbf16>, vector<4x46xbf16>, vector<4x46xf32> -> vector<4x46xf32>
    %86 = arith.addf %81, %85 : vector<4x46xf32>
    %c2_62 = arith.constant 2 : index
    %c0_63 = arith.constant 0 : index
    %c0_64 = arith.constant 0 : index
    %87 = vector.load %arg6[%c2_62, %c0_63, %c0_64] : memref<9x4x4xbf16, #tpu.memory_space<vmem>>, vector<1x4x4xbf16>
    %88 = vector.shape_cast %87 : vector<1x4x4xbf16> to vector<4x4xbf16>
    %89 = vector.extract_strided_slice %75 {offsets = [0, 2], sizes = [4, 46], strides = [1, 1]} : vector<4x64xbf16> to vector<4x46xbf16>
    %cst_65 = arith.constant dense<0.000000e+00> : vector<4x46xf32>
    %90 = tpu.matmul %88, %89, %cst_65 {dimension_numbers = #tpu.dot_dimension_numbers<[1], [0], [0], [1], [0, 0, 1, 1], [], []>} : vector<4x4xbf16>, vector<4x46xbf16>, vector<4x46xf32> -> vector<4x46xf32>
    %91 = arith.addf %86, %90 : vector<4x46xf32>
    %c3_66 = arith.constant 3 : index
    %c0_67 = arith.constant 0 : index
    %c0_68 = arith.constant 0 : index
    %92 = vector.load %arg6[%c3_66, %c0_67, %c0_68] : memref<9x4x4xbf16, #tpu.memory_space<vmem>>, vector<1x4x4xbf16>
    %93 = vector.shape_cast %92 : vector<1x4x4xbf16> to vector<4x4xbf16>
    %94 = vector.extract_strided_slice %75 {offsets = [0, 8], sizes = [4, 46], strides = [1, 1]} : vector<4x64xbf16> to vector<4x46xbf16>
    %cst_69 = arith.constant dense<0.000000e+00> : vector<4x46xf32>
    %95 = tpu.matmul %93, %94, %cst_69 {dimension_numbers = #tpu.dot_dimension_numbers<[1], [0], [0], [1], [0, 0, 1, 1], [], []>} : vector<4x4xbf16>, vector<4x46xbf16>, vector<4x46xf32> -> vector<4x46xf32>
    %96 = arith.addf %91, %95 : vector<4x46xf32>
    %c4_70 = arith.constant 4 : index
    %c0_71 = arith.constant 0 : index
    %c0_72 = arith.constant 0 : index
    %97 = vector.load %arg6[%c4_70, %c0_71, %c0_72] : memref<9x4x4xbf16, #tpu.memory_space<vmem>>, vector<1x4x4xbf16>
    %98 = vector.shape_cast %97 : vector<1x4x4xbf16> to vector<4x4xbf16>
    %99 = vector.extract_strided_slice %75 {offsets = [0, 9], sizes = [4, 46], strides = [1, 1]} : vector<4x64xbf16> to vector<4x46xbf16>
    %cst_73 = arith.constant dense<0.000000e+00> : vector<4x46xf32>
    %100 = tpu.matmul %98, %99, %cst_73 {dimension_numbers = #tpu.dot_dimension_numbers<[1], [0], [0], [1], [0, 0, 1, 1], [], []>} : vector<4x4xbf16>, vector<4x46xbf16>, vector<4x46xf32> -> vector<4x46xf32>
    %101 = arith.addf %96, %100 : vector<4x46xf32>
    %c5_74 = arith.constant 5 : index
    %c0_75 = arith.constant 0 : index
    %c0_76 = arith.constant 0 : index
    %102 = vector.load %arg6[%c5_74, %c0_75, %c0_76] : memref<9x4x4xbf16, #tpu.memory_space<vmem>>, vector<1x4x4xbf16>
    %103 = vector.shape_cast %102 : vector<1x4x4xbf16> to vector<4x4xbf16>
    %104 = vector.extract_strided_slice %75 {offsets = [0, 10], sizes = [4, 46], strides = [1, 1]} : vector<4x64xbf16> to vector<4x46xbf16>
    %cst_77 = arith.constant dense<0.000000e+00> : vector<4x46xf32>
    %105 = tpu.matmul %103, %104, %cst_77 {dimension_numbers = #tpu.dot_dimension_numbers<[1], [0], [0], [1], [0, 0, 1, 1], [], []>} : vector<4x4xbf16>, vector<4x46xbf16>, vector<4x46xf32> -> vector<4x46xf32>
    %106 = arith.addf %101, %105 : vector<4x46xf32>
    %c6_78 = arith.constant 6 : index
    %c0_79 = arith.constant 0 : index
    %c0_80 = arith.constant 0 : index
    %107 = vector.load %arg6[%c6_78, %c0_79, %c0_80] : memref<9x4x4xbf16, #tpu.memory_space<vmem>>, vector<1x4x4xbf16>
    %108 = vector.shape_cast %107 : vector<1x4x4xbf16> to vector<4x4xbf16>
    %109 = vector.extract_strided_slice %75 {offsets = [0, 16], sizes = [4, 46], strides = [1, 1]} : vector<4x64xbf16> to vector<4x46xbf16>
    %cst_81 = arith.constant dense<0.000000e+00> : vector<4x46xf32>
    %110 = tpu.matmul %108, %109, %cst_81 {dimension_numbers = #tpu.dot_dimension_numbers<[1], [0], [0], [1], [0, 0, 1, 1], [], []>} : vector<4x4xbf16>, vector<4x46xbf16>, vector<4x46xf32> -> vector<4x46xf32>
    %111 = arith.addf %106, %110 : vector<4x46xf32>
    %c7_82 = arith.constant 7 : index
    %c0_83 = arith.constant 0 : index
    %c0_84 = arith.constant 0 : index
    %112 = vector.load %arg6[%c7_82, %c0_83, %c0_84] : memref<9x4x4xbf16, #tpu.memory_space<vmem>>, vector<1x4x4xbf16>
    %113 = vector.shape_cast %112 : vector<1x4x4xbf16> to vector<4x4xbf16>
    %114 = vector.extract_strided_slice %75 {offsets = [0, 17], sizes = [4, 46], strides = [1, 1]} : vector<4x64xbf16> to vector<4x46xbf16>
    %cst_85 = arith.constant dense<0.000000e+00> : vector<4x46xf32>
    %115 = tpu.matmul %113, %114, %cst_85 {dimension_numbers = #tpu.dot_dimension_numbers<[1], [0], [0], [1], [0, 0, 1, 1], [], []>} : vector<4x4xbf16>, vector<4x46xbf16>, vector<4x46xf32> -> vector<4x46xf32>
    %116 = arith.addf %111, %115 : vector<4x46xf32>
    %c8_86 = arith.constant 8 : index
    %c0_87 = arith.constant 0 : index
    %c0_88 = arith.constant 0 : index
    %117 = vector.load %arg6[%c8_86, %c0_87, %c0_88] : memref<9x4x4xbf16, #tpu.memory_space<vmem>>, vector<1x4x4xbf16>
    %118 = vector.shape_cast %117 : vector<1x4x4xbf16> to vector<4x4xbf16>
    %119 = vector.extract_strided_slice %75 {offsets = [0, 18], sizes = [4, 46], strides = [1, 1]} : vector<4x64xbf16> to vector<4x46xbf16>
    %cst_89 = arith.constant dense<0.000000e+00> : vector<4x46xf32>
    %120 = tpu.matmul %118, %119, %cst_89 {dimension_numbers = #tpu.dot_dimension_numbers<[1], [0], [0], [1], [0, 0, 1, 1], [], []>} : vector<4x4xbf16>, vector<4x46xbf16>, vector<4x46xf32> -> vector<4x46xf32>
    %121 = arith.addf %116, %120 : vector<4x46xf32>
    %c0_90 = arith.constant 0 : index
    %c0_91 = arith.constant 0 : index
    %122 = vector.load %arg7[%c0_90, %c0_91] : memref<4x1xf32, #tpu.memory_space<vmem>>, vector<4x1xf32>
    %123 = vector.broadcast %122 : vector<4x1xf32> to vector<4x46xf32>
    %124 = arith.mulf %121, %123 : vector<4x46xf32>
    %c0_92 = arith.constant 0 : index
    %c0_93 = arith.constant 0 : index
    %125 = vector.load %arg8[%c0_92, %c0_93] : memref<4x1xf32, #tpu.memory_space<vmem>>, vector<4x1xf32>
    %126 = vector.broadcast %125 : vector<4x1xf32> to vector<4x46xf32>
    %127 = arith.addf %124, %126 : vector<4x46xf32>
    %cst_94 = arith.constant 0.000000e+00 : f32
    %128 = vector.broadcast %cst_94 : f32 to vector<4x46xf32>
    %129 = arith.maximumf %127, %128 : vector<4x46xf32>
    %130 = arith.truncf %129 : vector<4x46xf32> to vector<4x46xbf16>
    %c0_95 = arith.constant 0 : index
    %c0_96 = arith.constant 0 : index
    %131 = vector.load %arg10[%c0_95, %c0_96] : memref<46x64xbf16, #tpu.memory_space<vmem>>, vector<46x64xbf16>
    %cst_97 = arith.constant dense<0.000000e+00> : vector<4x64xf32>
    %132 = tpu.matmul %130, %131, %cst_97 {dimension_numbers = #tpu.dot_dimension_numbers<[1], [0], [0], [1], [0, 0, 1, 1], [], []>} : vector<4x46xbf16>, vector<46x64xbf16>, vector<4x64xf32> -> vector<4x64xf32>
    %c0_98 = arith.constant 0 : index
    %c0_99 = arith.constant 0 : index
    %c0_100 = arith.constant 0 : index
    %133 = vector.load %arg11[%c0_98, %c0_99, %c0_100] : memref<1x4x64xf32, #tpu.memory_space<vmem>>, vector<1x4x64xf32>
    %134 = vector.shape_cast %133 : vector<1x4x64xf32> to vector<4x64xf32>
    %135 = vector.shape_cast %132 : vector<4x64xf32> to vector<1x4x64xf32>
    tpu.vector_store %arg11[%c0_98, %c0_99, %c0_100], %135 {strides = array<i32>} : memref<1x4x64xf32, #tpu.memory_space<vmem>>, vector<1x4x64xf32>,
    return
  }
  func.func @transform_0(%arg0: i32) -> (i32, i32, i32) {
    %c0_i32 = arith.constant 0 : i32
    %c0_i32_0 = arith.constant 0 : i32
    %c0_i32_1 = arith.constant 0 : i32
    return %arg0, %c0_i32, %c0_i32_0 : i32, i32, i32
  }
  func.func @transform_1(%arg0: i32) -> (i32, i32, i32) {
    %c0_i32 = arith.constant 0 : i32
    %c0_i32_0 = arith.constant 0 : i32
    %c0_i32_1 = arith.constant 0 : i32
    %c0_i32_2 = arith.constant 0 : i32
    return %c0_i32, %c0_i32_0, %c0_i32_1 : i32, i32, i32
  }
  func.func @transform_2(%arg0: i32) -> (i32, i32, i32) {
    %c0_i32 = arith.constant 0 : i32
    %c0_i32_0 = arith.constant 0 : i32
    %c0_i32_1 = arith.constant 0 : i32
    %c0_i32_2 = arith.constant 0 : i32
    return %c0_i32, %c0_i32_0, %c0_i32_1 : i32, i32, i32
  }
  func.func @transform_3(%arg0: i32) -> (i32, i32) {
    %c0_i32 = arith.constant 0 : i32
    %c0_i32_0 = arith.constant 0 : i32
    %c0_i32_1 = arith.constant 0 : i32
    return %c0_i32, %c0_i32_0 : i32, i32
  }
  func.func @transform_4(%arg0: i32) -> (i32, i32) {
    %c0_i32 = arith.constant 0 : i32
    %c0_i32_0 = arith.constant 0 : i32
    %c0_i32_1 = arith.constant 0 : i32
    return %c0_i32, %c0_i32_0 : i32, i32
  }
  func.func @transform_5(%arg0: i32) -> (i32, i32, i32) {
    %c0_i32 = arith.constant 0 : i32
    %c0_i32_0 = arith.constant 0 : i32
    %c0_i32_1 = arith.constant 0 : i32
    %c0_i32_2 = arith.constant 0 : i32
    return %c0_i32, %c0_i32_0, %c0_i32_1 : i32, i32, i32
  }
  func.func @transform_6(%arg0: i32) -> (i32, i32) {
    %c0_i32 = arith.constant 0 : i32
    %c0_i32_0 = arith.constant 0 : i32
    %c0_i32_1 = arith.constant 0 : i32
    return %c0_i32, %c0_i32_0 : i32, i32
  }
  func.func @transform_7(%arg0: i32) -> (i32, i32) {
    %c0_i32 = arith.constant 0 : i32
    %c0_i32_0 = arith.constant 0 : i32
    %c0_i32_1 = arith.constant 0 : i32
    return %c0_i32, %c0_i32_0 : i32, i32
  }
  func.func @transform_8(%arg0: i32) -> (i32, i32) {
    %c0_i32 = arith.constant 0 : i32
    %c0_i32_0 = arith.constant 0 : i32
    %c0_i32_1 = arith.constant 0 : i32
    return %c0_i32, %c0_i32_0 : i32, i32
  }
  func.func @transform_9(%arg0: i32) -> (i32, i32) {
    %c0_i32 = arith.constant 0 : i32
    %c0_i32_0 = arith.constant 0 : i32
    %c0_i32_1 = arith.constant 0 : i32
    return %c0_i32, %c0_i32_0 : i32, i32
  }
  func.func @transform_10(%arg0: i32) -> (i32, i32, i32) {
    %c0_i32 = arith.constant 0 : i32
    %c0_i32_0 = arith.constant 0 : i32
    %c0_i32_1 = arith.constant 0 : i32
    return %arg0, %c0_i32, %c0_i32_0 : i32, i32, i32
  }
}

module attributes {stable_mosaic.version = 11 : i64} {
  func.func @_branch_kernel(%arg0: i32, %arg1: memref<1x4x256xbf16, #tpu.memory_space<vmem>>, %arg2: memref<4x256x50xbf16, #tpu.memory_space<vmem>>, %arg3: memref<9x4x4xbf16, #tpu.memory_space<vmem>>, %arg4: memref<4x1xf32, #tpu.memory_space<vmem>>, %arg5: memref<4x1xf32, #tpu.memory_space<vmem>>, %arg6: memref<9x4x4xbf16, #tpu.memory_space<vmem>>, %arg7: memref<4x1xf32, #tpu.memory_space<vmem>>, %arg8: memref<4x1xf32, #tpu.memory_space<vmem>>, %arg9: memref<1x36xf32, #tpu.memory_space<vmem>>, %arg10: memref<22x64xbf16, #tpu.memory_space<vmem>>, %arg11: memref<1x4x64xf32, #tpu.memory_space<vmem>>) attributes {dimension_semantics = [#tpu.dimension_semantics<parallel>], iteration_bounds = array<i64: 2>, scalar_prefetch = 0 : i64, scratch_operands = 0 : i64, tpu.core_type = #tpu.core_type<tc>, window_params = [{transform_indices = @transform_0, window_bounds = array<i64: 1, 4, 256>}, {pipeline_mode = #tpu.pipeline_mode<synchronous>, transform_indices = @transform_1, window_bounds = array<i64: 4, 256, 50>}, {pipeline_mode = #tpu.pipeline_mode<synchronous>, transform_indices = @transform_2, window_bounds = array<i64: 9, 4, 4>}, {pipeline_mode = #tpu.pipeline_mode<synchronous>, transform_indices = @transform_3, window_bounds = array<i64: 4, 1>}, {pipeline_mode = #tpu.pipeline_mode<synchronous>, transform_indices = @transform_4, window_bounds = array<i64: 4, 1>}, {pipeline_mode = #tpu.pipeline_mode<synchronous>, transform_indices = @transform_5, window_bounds = array<i64: 9, 4, 4>}, {pipeline_mode = #tpu.pipeline_mode<synchronous>, transform_indices = @transform_6, window_bounds = array<i64: 4, 1>}, {pipeline_mode = #tpu.pipeline_mode<synchronous>, transform_indices = @transform_7, window_bounds = array<i64: 4, 1>}, {pipeline_mode = #tpu.pipeline_mode<synchronous>, transform_indices = @transform_8, window_bounds = array<i64: 1, 36>}, {pipeline_mode = #tpu.pipeline_mode<synchronous>, transform_indices = @transform_9, window_bounds = array<i64: 22, 64>}, {transform_indices = @transform_10, window_bounds = array<i64: 1, 4, 64>}]} {
    %c0 = arith.constant 0 : index
    %c0_0 = arith.constant 0 : index
    %c0_1 = arith.constant 0 : index
    %0 = vector.load %arg1[%c0, %c0_0, %c0_1] : memref<1x4x256xbf16, #tpu.memory_space<vmem>>, vector<1x4x256xbf16>
    %1 = vector.shape_cast %0 : vector<1x4x256xbf16> to vector<4x256xbf16>
    %c0_2 = arith.constant 0 : index
    %c0_3 = arith.constant 0 : index
    %c0_4 = arith.constant 0 : index
    %2 = vector.load %arg2[%c0_2, %c0_3, %c0_4] : memref<4x256x50xbf16, #tpu.memory_space<vmem>>, vector<1x256x50xbf16>
    %3 = vector.shape_cast %2 : vector<1x256x50xbf16> to vector<256x50xbf16>
    %cst = arith.constant dense<0.000000e+00> : vector<4x50xf32>
    %4 = tpu.matmul %1, %3, %cst {dimension_numbers = #tpu.dot_dimension_numbers<[1], [0], [0], [1], [0, 0, 1, 1], [], []>} : vector<4x256xbf16>, vector<256x50xbf16>, vector<4x50xf32> -> vector<4x50xf32>
    %c1 = arith.constant 1 : index
    %c0_5 = arith.constant 0 : index
    %c0_6 = arith.constant 0 : index
    %5 = vector.load %arg2[%c1, %c0_5, %c0_6] : memref<4x256x50xbf16, #tpu.memory_space<vmem>>, vector<1x256x50xbf16>
    %6 = vector.shape_cast %5 : vector<1x256x50xbf16> to vector<256x50xbf16>
    %cst_7 = arith.constant dense<0.000000e+00> : vector<4x50xf32>
    %7 = tpu.matmul %1, %6, %cst_7 {dimension_numbers = #tpu.dot_dimension_numbers<[1], [0], [0], [1], [0, 0, 1, 1], [], []>} : vector<4x256xbf16>, vector<256x50xbf16>, vector<4x50xf32> -> vector<4x50xf32>
    %c2 = arith.constant 2 : index
    %c0_8 = arith.constant 0 : index
    %c0_9 = arith.constant 0 : index
    %8 = vector.load %arg2[%c2, %c0_8, %c0_9] : memref<4x256x50xbf16, #tpu.memory_space<vmem>>, vector<1x256x50xbf16>
    %9 = vector.shape_cast %8 : vector<1x256x50xbf16> to vector<256x50xbf16>
    %cst_10 = arith.constant dense<0.000000e+00> : vector<4x50xf32>
    %10 = tpu.matmul %1, %9, %cst_10 {dimension_numbers = #tpu.dot_dimension_numbers<[1], [0], [0], [1], [0, 0, 1, 1], [], []>} : vector<4x256xbf16>, vector<256x50xbf16>, vector<4x50xf32> -> vector<4x50xf32>
    %c3 = arith.constant 3 : index
    %c0_11 = arith.constant 0 : index
    %c0_12 = arith.constant 0 : index
    %11 = vector.load %arg2[%c3, %c0_11, %c0_12] : memref<4x256x50xbf16, #tpu.memory_space<vmem>>, vector<1x256x50xbf16>
    %12 = vector.shape_cast %11 : vector<1x256x50xbf16> to vector<256x50xbf16>
    %cst_13 = arith.constant dense<0.000000e+00> : vector<4x50xf32>
    %13 = tpu.matmul %1, %12, %cst_13 {dimension_numbers = #tpu.dot_dimension_numbers<[1], [0], [0], [1], [0, 0, 1, 1], [], []>} : vector<4x256xbf16>, vector<256x50xbf16>, vector<4x50xf32> -> vector<4x50xf32>
    %14 = arith.maximumf %4, %7 : vector<4x50xf32>
    %15 = arith.maximumf %10, %13 : vector<4x50xf32>
    %16 = arith.maximumf %14, %15 : vector<4x50xf32>
    %17 = arith.truncf %16 : vector<4x50xf32> to vector<4x50xbf16>
    %cst_14 = arith.constant 0.000000e+00 : f32
    %18 = vector.broadcast %cst_14 : f32 to vector<4x36xf32>
    %c0_15 = arith.constant 0 : index
    %c0_16 = arith.constant 0 : index
    %c0_17 = arith.constant 0 : index
    %19 = vector.load %arg3[%c0_15, %c0_16, %c0_17] : memref<9x4x4xbf16, #tpu.memory_space<vmem>>, vector<1x4x4xbf16>
    %20 = vector.shape_cast %19 : vector<1x4x4xbf16> to vector<4x4xbf16>
    %21 = vector.extract_strided_slice %17 {offsets = [0, 0], sizes = [4, 36], strides = [1, 1]} : vector<4x50xbf16> to vector<4x36xbf16>
    %cst_18 = arith.constant dense<0.000000e+00> : vector<4x36xf32>
    %22 = tpu.matmul %20, %21, %cst_18 {dimension_numbers = #tpu.dot_dimension_numbers<[1], [0], [0], [1], [0, 0, 1, 1], [], []>} : vector<4x4xbf16>, vector<4x36xbf16>, vector<4x36xf32> -> vector<4x36xf32>
    %23 = arith.addf %18, %22 : vector<4x36xf32>
    %c1_19 = arith.constant 1 : index
    %c0_20 = arith.constant 0 : index
    %c0_21 = arith.constant 0 : index
    %24 = vector.load %arg3[%c1_19, %c0_20, %c0_21] : memref<9x4x4xbf16, #tpu.memory_space<vmem>>, vector<1x4x4xbf16>
    %25 = vector.shape_cast %24 : vector<1x4x4xbf16> to vector<4x4xbf16>
    %26 = vector.extract_strided_slice %17 {offsets = [0, 1], sizes = [4, 36], strides = [1, 1]} : vector<4x50xbf16> to vector<4x36xbf16>
    %cst_22 = arith.constant dense<0.000000e+00> : vector<4x36xf32>
    %27 = tpu.matmul %25, %26, %cst_22 {dimension_numbers = #tpu.dot_dimension_numbers<[1], [0], [0], [1], [0, 0, 1, 1], [], []>} : vector<4x4xbf16>, vector<4x36xbf16>, vector<4x36xf32> -> vector<4x36xf32>
    %28 = arith.addf %23, %27 : vector<4x36xf32>
    %c2_23 = arith.constant 2 : index
    %c0_24 = arith.constant 0 : index
    %c0_25 = arith.constant 0 : index
    %29 = vector.load %arg3[%c2_23, %c0_24, %c0_25] : memref<9x4x4xbf16, #tpu.memory_space<vmem>>, vector<1x4x4xbf16>
    %30 = vector.shape_cast %29 : vector<1x4x4xbf16> to vector<4x4xbf16>
    %31 = vector.extract_strided_slice %17 {offsets = [0, 2], sizes = [4, 36], strides = [1, 1]} : vector<4x50xbf16> to vector<4x36xbf16>
    %cst_26 = arith.constant dense<0.000000e+00> : vector<4x36xf32>
    %32 = tpu.matmul %30, %31, %cst_26 {dimension_numbers = #tpu.dot_dimension_numbers<[1], [0], [0], [1], [0, 0, 1, 1], [], []>} : vector<4x4xbf16>, vector<4x36xbf16>, vector<4x36xf32> -> vector<4x36xf32>
    %33 = arith.addf %28, %32 : vector<4x36xf32>
    %c3_27 = arith.constant 3 : index
    %c0_28 = arith.constant 0 : index
    %c0_29 = arith.constant 0 : index
    %34 = vector.load %arg3[%c3_27, %c0_28, %c0_29] : memref<9x4x4xbf16, #tpu.memory_space<vmem>>, vector<1x4x4xbf16>
    %35 = vector.shape_cast %34 : vector<1x4x4xbf16> to vector<4x4xbf16>
    %36 = vector.extract_strided_slice %17 {offsets = [0, 6], sizes = [4, 36], strides = [1, 1]} : vector<4x50xbf16> to vector<4x36xbf16>
    %cst_30 = arith.constant dense<0.000000e+00> : vector<4x36xf32>
    %37 = tpu.matmul %35, %36, %cst_30 {dimension_numbers = #tpu.dot_dimension_numbers<[1], [0], [0], [1], [0, 0, 1, 1], [], []>} : vector<4x4xbf16>, vector<4x36xbf16>, vector<4x36xf32> -> vector<4x36xf32>
    %38 = arith.addf %33, %37 : vector<4x36xf32>
    %c4 = arith.constant 4 : index
    %c0_31 = arith.constant 0 : index
    %c0_32 = arith.constant 0 : index
    %39 = vector.load %arg3[%c4, %c0_31, %c0_32] : memref<9x4x4xbf16, #tpu.memory_space<vmem>>, vector<1x4x4xbf16>
    %40 = vector.shape_cast %39 : vector<1x4x4xbf16> to vector<4x4xbf16>
    %41 = vector.extract_strided_slice %17 {offsets = [0, 7], sizes = [4, 36], strides = [1, 1]} : vector<4x50xbf16> to vector<4x36xbf16>
    %cst_33 = arith.constant dense<0.000000e+00> : vector<4x36xf32>
    %42 = tpu.matmul %40, %41, %cst_33 {dimension_numbers = #tpu.dot_dimension_numbers<[1], [0], [0], [1], [0, 0, 1, 1], [], []>} : vector<4x4xbf16>, vector<4x36xbf16>, vector<4x36xf32> -> vector<4x36xf32>
    %43 = arith.addf %38, %42 : vector<4x36xf32>
    %c5 = arith.constant 5 : index
    %c0_34 = arith.constant 0 : index
    %c0_35 = arith.constant 0 : index
    %44 = vector.load %arg3[%c5, %c0_34, %c0_35] : memref<9x4x4xbf16, #tpu.memory_space<vmem>>, vector<1x4x4xbf16>
    %45 = vector.shape_cast %44 : vector<1x4x4xbf16> to vector<4x4xbf16>
    %46 = vector.extract_strided_slice %17 {offsets = [0, 8], sizes = [4, 36], strides = [1, 1]} : vector<4x50xbf16> to vector<4x36xbf16>
    %cst_36 = arith.constant dense<0.000000e+00> : vector<4x36xf32>
    %47 = tpu.matmul %45, %46, %cst_36 {dimension_numbers = #tpu.dot_dimension_numbers<[1], [0], [0], [1], [0, 0, 1, 1], [], []>} : vector<4x4xbf16>, vector<4x36xbf16>, vector<4x36xf32> -> vector<4x36xf32>
    %48 = arith.addf %43, %47 : vector<4x36xf32>
    %c6 = arith.constant 6 : index
    %c0_37 = arith.constant 0 : index
    %c0_38 = arith.constant 0 : index
    %49 = vector.load %arg3[%c6, %c0_37, %c0_38] : memref<9x4x4xbf16, #tpu.memory_space<vmem>>, vector<1x4x4xbf16>
    %50 = vector.shape_cast %49 : vector<1x4x4xbf16> to vector<4x4xbf16>
    %51 = vector.extract_strided_slice %17 {offsets = [0, 12], sizes = [4, 36], strides = [1, 1]} : vector<4x50xbf16> to vector<4x36xbf16>
    %cst_39 = arith.constant dense<0.000000e+00> : vector<4x36xf32>
    %52 = tpu.matmul %50, %51, %cst_39 {dimension_numbers = #tpu.dot_dimension_numbers<[1], [0], [0], [1], [0, 0, 1, 1], [], []>} : vector<4x4xbf16>, vector<4x36xbf16>, vector<4x36xf32> -> vector<4x36xf32>
    %53 = arith.addf %48, %52 : vector<4x36xf32>
    %c7 = arith.constant 7 : index
    %c0_40 = arith.constant 0 : index
    %c0_41 = arith.constant 0 : index
    %54 = vector.load %arg3[%c7, %c0_40, %c0_41] : memref<9x4x4xbf16, #tpu.memory_space<vmem>>, vector<1x4x4xbf16>
    %55 = vector.shape_cast %54 : vector<1x4x4xbf16> to vector<4x4xbf16>
    %56 = vector.extract_strided_slice %17 {offsets = [0, 13], sizes = [4, 36], strides = [1, 1]} : vector<4x50xbf16> to vector<4x36xbf16>
    %cst_42 = arith.constant dense<0.000000e+00> : vector<4x36xf32>
    %57 = tpu.matmul %55, %56, %cst_42 {dimension_numbers = #tpu.dot_dimension_numbers<[1], [0], [0], [1], [0, 0, 1, 1], [], []>} : vector<4x4xbf16>, vector<4x36xbf16>, vector<4x36xf32> -> vector<4x36xf32>
    %58 = arith.addf %53, %57 : vector<4x36xf32>
    %c8 = arith.constant 8 : index
    %c0_43 = arith.constant 0 : index
    %c0_44 = arith.constant 0 : index
    %59 = vector.load %arg3[%c8, %c0_43, %c0_44] : memref<9x4x4xbf16, #tpu.memory_space<vmem>>, vector<1x4x4xbf16>
    %60 = vector.shape_cast %59 : vector<1x4x4xbf16> to vector<4x4xbf16>
    %61 = vector.extract_strided_slice %17 {offsets = [0, 14], sizes = [4, 36], strides = [1, 1]} : vector<4x50xbf16> to vector<4x36xbf16>
    %cst_45 = arith.constant dense<0.000000e+00> : vector<4x36xf32>
    %62 = tpu.matmul %60, %61, %cst_45 {dimension_numbers = #tpu.dot_dimension_numbers<[1], [0], [0], [1], [0, 0, 1, 1], [], []>} : vector<4x4xbf16>, vector<4x36xbf16>, vector<4x36xf32> -> vector<4x36xf32>
    %63 = arith.addf %58, %62 : vector<4x36xf32>
    %c0_46 = arith.constant 0 : index
    %c0_47 = arith.constant 0 : index
    %64 = vector.load %arg4[%c0_46, %c0_47] : memref<4x1xf32, #tpu.memory_space<vmem>>, vector<4x1xf32>
    %65 = vector.broadcast %64 : vector<4x1xf32> to vector<4x36xf32>
    %66 = arith.mulf %63, %65 : vector<4x36xf32>
    %c0_48 = arith.constant 0 : index
    %c0_49 = arith.constant 0 : index
    %67 = vector.load %arg5[%c0_48, %c0_49] : memref<4x1xf32, #tpu.memory_space<vmem>>, vector<4x1xf32>
    %68 = vector.broadcast %67 : vector<4x1xf32> to vector<4x36xf32>
    %69 = arith.addf %66, %68 : vector<4x36xf32>
    %cst_50 = arith.constant 0.000000e+00 : f32
    %70 = vector.broadcast %cst_50 : f32 to vector<4x36xf32>
    %71 = arith.maximumf %69, %70 : vector<4x36xf32>
    %c0_51 = arith.constant 0 : index
    %c0_52 = arith.constant 0 : index
    %72 = vector.load %arg9[%c0_51, %c0_52] : memref<1x36xf32, #tpu.memory_space<vmem>>, vector<1x36xf32>
    %73 = vector.broadcast %72 : vector<1x36xf32> to vector<4x36xf32>
    %74 = arith.mulf %71, %73 : vector<4x36xf32>
    %75 = arith.truncf %74 : vector<4x36xf32> to vector<4x36xbf16>
    %cst_53 = arith.constant 0.000000e+00 : f32
    %76 = vector.broadcast %cst_53 : f32 to vector<4x22xf32>
    %c0_54 = arith.constant 0 : index
    %c0_55 = arith.constant 0 : index
    %c0_56 = arith.constant 0 : index
    %77 = vector.load %arg6[%c0_54, %c0_55, %c0_56] : memref<9x4x4xbf16, #tpu.memory_space<vmem>>, vector<1x4x4xbf16>
    %78 = vector.shape_cast %77 : vector<1x4x4xbf16> to vector<4x4xbf16>
    %79 = vector.extract_strided_slice %75 {offsets = [0, 0], sizes = [4, 22], strides = [1, 1]} : vector<4x36xbf16> to vector<4x22xbf16>
    %cst_57 = arith.constant dense<0.000000e+00> : vector<4x22xf32>
    %80 = tpu.matmul %78, %79, %cst_57 {dimension_numbers = #tpu.dot_dimension_numbers<[1], [0], [0], [1], [0, 0, 1, 1], [], []>} : vector<4x4xbf16>, vector<4x22xbf16>, vector<4x22xf32> -> vector<4x22xf32>
    %81 = arith.addf %76, %80 : vector<4x22xf32>
    %c1_58 = arith.constant 1 : index
    %c0_59 = arith.constant 0 : index
    %c0_60 = arith.constant 0 : index
    %82 = vector.load %arg6[%c1_58, %c0_59, %c0_60] : memref<9x4x4xbf16, #tpu.memory_space<vmem>>, vector<1x4x4xbf16>
    %83 = vector.shape_cast %82 : vector<1x4x4xbf16> to vector<4x4xbf16>
    %84 = vector.extract_strided_slice %75 {offsets = [0, 1], sizes = [4, 22], strides = [1, 1]} : vector<4x36xbf16> to vector<4x22xbf16>
    %cst_61 = arith.constant dense<0.000000e+00> : vector<4x22xf32>
    %85 = tpu.matmul %83, %84, %cst_61 {dimension_numbers = #tpu.dot_dimension_numbers<[1], [0], [0], [1], [0, 0, 1, 1], [], []>} : vector<4x4xbf16>, vector<4x22xbf16>, vector<4x22xf32> -> vector<4x22xf32>
    %86 = arith.addf %81, %85 : vector<4x22xf32>
    %c2_62 = arith.constant 2 : index
    %c0_63 = arith.constant 0 : index
    %c0_64 = arith.constant 0 : index
    %87 = vector.load %arg6[%c2_62, %c0_63, %c0_64] : memref<9x4x4xbf16, #tpu.memory_space<vmem>>, vector<1x4x4xbf16>
    %88 = vector.shape_cast %87 : vector<1x4x4xbf16> to vector<4x4xbf16>
    %89 = vector.extract_strided_slice %75 {offsets = [0, 2], sizes = [4, 22], strides = [1, 1]} : vector<4x36xbf16> to vector<4x22xbf16>
    %cst_65 = arith.constant dense<0.000000e+00> : vector<4x22xf32>
    %90 = tpu.matmul %88, %89, %cst_65 {dimension_numbers = #tpu.dot_dimension_numbers<[1], [0], [0], [1], [0, 0, 1, 1], [], []>} : vector<4x4xbf16>, vector<4x22xbf16>, vector<4x22xf32> -> vector<4x22xf32>
    %91 = arith.addf %86, %90 : vector<4x22xf32>
    %c3_66 = arith.constant 3 : index
    %c0_67 = arith.constant 0 : index
    %c0_68 = arith.constant 0 : index
    %92 = vector.load %arg6[%c3_66, %c0_67, %c0_68] : memref<9x4x4xbf16, #tpu.memory_space<vmem>>, vector<1x4x4xbf16>
    %93 = vector.shape_cast %92 : vector<1x4x4xbf16> to vector<4x4xbf16>
    %94 = vector.extract_strided_slice %75 {offsets = [0, 6], sizes = [4, 22], strides = [1, 1]} : vector<4x36xbf16> to vector<4x22xbf16>
    %cst_69 = arith.constant dense<0.000000e+00> : vector<4x22xf32>
    %95 = tpu.matmul %93, %94, %cst_69 {dimension_numbers = #tpu.dot_dimension_numbers<[1], [0], [0], [1], [0, 0, 1, 1], [], []>} : vector<4x4xbf16>, vector<4x22xbf16>, vector<4x22xf32> -> vector<4x22xf32>
    %96 = arith.addf %91, %95 : vector<4x22xf32>
    %c4_70 = arith.constant 4 : index
    %c0_71 = arith.constant 0 : index
    %c0_72 = arith.constant 0 : index
    %97 = vector.load %arg6[%c4_70, %c0_71, %c0_72] : memref<9x4x4xbf16, #tpu.memory_space<vmem>>, vector<1x4x4xbf16>
    %98 = vector.shape_cast %97 : vector<1x4x4xbf16> to vector<4x4xbf16>
    %99 = vector.extract_strided_slice %75 {offsets = [0, 7], sizes = [4, 22], strides = [1, 1]} : vector<4x36xbf16> to vector<4x22xbf16>
    %cst_73 = arith.constant dense<0.000000e+00> : vector<4x22xf32>
    %100 = tpu.matmul %98, %99, %cst_73 {dimension_numbers = #tpu.dot_dimension_numbers<[1], [0], [0], [1], [0, 0, 1, 1], [], []>} : vector<4x4xbf16>, vector<4x22xbf16>, vector<4x22xf32> -> vector<4x22xf32>
    %101 = arith.addf %96, %100 : vector<4x22xf32>
    %c5_74 = arith.constant 5 : index
    %c0_75 = arith.constant 0 : index
    %c0_76 = arith.constant 0 : index
    %102 = vector.load %arg6[%c5_74, %c0_75, %c0_76] : memref<9x4x4xbf16, #tpu.memory_space<vmem>>, vector<1x4x4xbf16>
    %103 = vector.shape_cast %102 : vector<1x4x4xbf16> to vector<4x4xbf16>
    %104 = vector.extract_strided_slice %75 {offsets = [0, 8], sizes = [4, 22], strides = [1, 1]} : vector<4x36xbf16> to vector<4x22xbf16>
    %cst_77 = arith.constant dense<0.000000e+00> : vector<4x22xf32>
    %105 = tpu.matmul %103, %104, %cst_77 {dimension_numbers = #tpu.dot_dimension_numbers<[1], [0], [0], [1], [0, 0, 1, 1], [], []>} : vector<4x4xbf16>, vector<4x22xbf16>, vector<4x22xf32> -> vector<4x22xf32>
    %106 = arith.addf %101, %105 : vector<4x22xf32>
    %c6_78 = arith.constant 6 : index
    %c0_79 = arith.constant 0 : index
    %c0_80 = arith.constant 0 : index
    %107 = vector.load %arg6[%c6_78, %c0_79, %c0_80] : memref<9x4x4xbf16, #tpu.memory_space<vmem>>, vector<1x4x4xbf16>
    %108 = vector.shape_cast %107 : vector<1x4x4xbf16> to vector<4x4xbf16>
    %109 = vector.extract_strided_slice %75 {offsets = [0, 12], sizes = [4, 22], strides = [1, 1]} : vector<4x36xbf16> to vector<4x22xbf16>
    %cst_81 = arith.constant dense<0.000000e+00> : vector<4x22xf32>
    %110 = tpu.matmul %108, %109, %cst_81 {dimension_numbers = #tpu.dot_dimension_numbers<[1], [0], [0], [1], [0, 0, 1, 1], [], []>} : vector<4x4xbf16>, vector<4x22xbf16>, vector<4x22xf32> -> vector<4x22xf32>
    %111 = arith.addf %106, %110 : vector<4x22xf32>
    %c7_82 = arith.constant 7 : index
    %c0_83 = arith.constant 0 : index
    %c0_84 = arith.constant 0 : index
    %112 = vector.load %arg6[%c7_82, %c0_83, %c0_84] : memref<9x4x4xbf16, #tpu.memory_space<vmem>>, vector<1x4x4xbf16>
    %113 = vector.shape_cast %112 : vector<1x4x4xbf16> to vector<4x4xbf16>
    %114 = vector.extract_strided_slice %75 {offsets = [0, 13], sizes = [4, 22], strides = [1, 1]} : vector<4x36xbf16> to vector<4x22xbf16>
    %cst_85 = arith.constant dense<0.000000e+00> : vector<4x22xf32>
    %115 = tpu.matmul %113, %114, %cst_85 {dimension_numbers = #tpu.dot_dimension_numbers<[1], [0], [0], [1], [0, 0, 1, 1], [], []>} : vector<4x4xbf16>, vector<4x22xbf16>, vector<4x22xf32> -> vector<4x22xf32>
    %116 = arith.addf %111, %115 : vector<4x22xf32>
    %c8_86 = arith.constant 8 : index
    %c0_87 = arith.constant 0 : index
    %c0_88 = arith.constant 0 : index
    %117 = vector.load %arg6[%c8_86, %c0_87, %c0_88] : memref<9x4x4xbf16, #tpu.memory_space<vmem>>, vector<1x4x4xbf16>
    %118 = vector.shape_cast %117 : vector<1x4x4xbf16> to vector<4x4xbf16>
    %119 = vector.extract_strided_slice %75 {offsets = [0, 14], sizes = [4, 22], strides = [1, 1]} : vector<4x36xbf16> to vector<4x22xbf16>
    %cst_89 = arith.constant dense<0.000000e+00> : vector<4x22xf32>
    %120 = tpu.matmul %118, %119, %cst_89 {dimension_numbers = #tpu.dot_dimension_numbers<[1], [0], [0], [1], [0, 0, 1, 1], [], []>} : vector<4x4xbf16>, vector<4x22xbf16>, vector<4x22xf32> -> vector<4x22xf32>
    %121 = arith.addf %116, %120 : vector<4x22xf32>
    %c0_90 = arith.constant 0 : index
    %c0_91 = arith.constant 0 : index
    %122 = vector.load %arg7[%c0_90, %c0_91] : memref<4x1xf32, #tpu.memory_space<vmem>>, vector<4x1xf32>
    %123 = vector.broadcast %122 : vector<4x1xf32> to vector<4x22xf32>
    %124 = arith.mulf %121, %123 : vector<4x22xf32>
    %c0_92 = arith.constant 0 : index
    %c0_93 = arith.constant 0 : index
    %125 = vector.load %arg8[%c0_92, %c0_93] : memref<4x1xf32, #tpu.memory_space<vmem>>, vector<4x1xf32>
    %126 = vector.broadcast %125 : vector<4x1xf32> to vector<4x22xf32>
    %127 = arith.addf %124, %126 : vector<4x22xf32>
    %cst_94 = arith.constant 0.000000e+00 : f32
    %128 = vector.broadcast %cst_94 : f32 to vector<4x22xf32>
    %129 = arith.maximumf %127, %128 : vector<4x22xf32>
    %130 = arith.truncf %129 : vector<4x22xf32> to vector<4x22xbf16>
    %c0_95 = arith.constant 0 : index
    %c0_96 = arith.constant 0 : index
    %131 = vector.load %arg10[%c0_95, %c0_96] : memref<22x64xbf16, #tpu.memory_space<vmem>>, vector<22x64xbf16>
    %cst_97 = arith.constant dense<0.000000e+00> : vector<4x64xf32>
    %132 = tpu.matmul %130, %131, %cst_97 {dimension_numbers = #tpu.dot_dimension_numbers<[1], [0], [0], [1], [0, 0, 1, 1], [], []>} : vector<4x22xbf16>, vector<22x64xbf16>, vector<4x64xf32> -> vector<4x64xf32>
    %c0_98 = arith.constant 0 : index
    %c0_99 = arith.constant 0 : index
    %c0_100 = arith.constant 0 : index
    %133 = vector.load %arg11[%c0_98, %c0_99, %c0_100] : memref<1x4x64xf32, #tpu.memory_space<vmem>>, vector<1x4x64xf32>
    %134 = vector.shape_cast %133 : vector<1x4x64xf32> to vector<4x64xf32>
    %135 = vector.shape_cast %132 : vector<4x64xf32> to vector<1x4x64xf32>
    tpu.vector_store %arg11[%c0_98, %c0_99, %c0_100], %135 {strides = array<i32>} : memref<1x4x64xf32, #tpu.memory_space<vmem>>, vector<1x4x64xf32>,
    return
  }
  func.func @transform_0(%arg0: i32) -> (i32, i32, i32) {
    %c0_i32 = arith.constant 0 : i32
    %c0_i32_0 = arith.constant 0 : i32
    %c0_i32_1 = arith.constant 0 : i32
    return %arg0, %c0_i32, %c0_i32_0 : i32, i32, i32
  }
  func.func @transform_1(%arg0: i32) -> (i32, i32, i32) {
    %c0_i32 = arith.constant 0 : i32
    %c0_i32_0 = arith.constant 0 : i32
    %c0_i32_1 = arith.constant 0 : i32
    %c0_i32_2 = arith.constant 0 : i32
    return %c0_i32, %c0_i32_0, %c0_i32_1 : i32, i32, i32
  }
  func.func @transform_2(%arg0: i32) -> (i32, i32, i32) {
    %c0_i32 = arith.constant 0 : i32
    %c0_i32_0 = arith.constant 0 : i32
    %c0_i32_1 = arith.constant 0 : i32
    %c0_i32_2 = arith.constant 0 : i32
    return %c0_i32, %c0_i32_0, %c0_i32_1 : i32, i32, i32
  }
  func.func @transform_3(%arg0: i32) -> (i32, i32) {
    %c0_i32 = arith.constant 0 : i32
    %c0_i32_0 = arith.constant 0 : i32
    %c0_i32_1 = arith.constant 0 : i32
    return %c0_i32, %c0_i32_0 : i32, i32
  }
  func.func @transform_4(%arg0: i32) -> (i32, i32) {
    %c0_i32 = arith.constant 0 : i32
    %c0_i32_0 = arith.constant 0 : i32
    %c0_i32_1 = arith.constant 0 : i32
    return %c0_i32, %c0_i32_0 : i32, i32
  }
  func.func @transform_5(%arg0: i32) -> (i32, i32, i32) {
    %c0_i32 = arith.constant 0 : i32
    %c0_i32_0 = arith.constant 0 : i32
    %c0_i32_1 = arith.constant 0 : i32
    %c0_i32_2 = arith.constant 0 : i32
    return %c0_i32, %c0_i32_0, %c0_i32_1 : i32, i32, i32
  }
  func.func @transform_6(%arg0: i32) -> (i32, i32) {
    %c0_i32 = arith.constant 0 : i32
    %c0_i32_0 = arith.constant 0 : i32
    %c0_i32_1 = arith.constant 0 : i32
    return %c0_i32, %c0_i32_0 : i32, i32
  }
  func.func @transform_7(%arg0: i32) -> (i32, i32) {
    %c0_i32 = arith.constant 0 : i32
    %c0_i32_0 = arith.constant 0 : i32
    %c0_i32_1 = arith.constant 0 : i32
    return %c0_i32, %c0_i32_0 : i32, i32
  }
  func.func @transform_8(%arg0: i32) -> (i32, i32) {
    %c0_i32 = arith.constant 0 : i32
    %c0_i32_0 = arith.constant 0 : i32
    %c0_i32_1 = arith.constant 0 : i32
    return %c0_i32, %c0_i32_0 : i32, i32
  }
  func.func @transform_9(%arg0: i32) -> (i32, i32) {
    %c0_i32 = arith.constant 0 : i32
    %c0_i32_0 = arith.constant 0 : i32
    %c0_i32_1 = arith.constant 0 : i32
    return %c0_i32, %c0_i32_0 : i32, i32
  }
  func.func @transform_10(%arg0: i32) -> (i32, i32, i32) {
    %c0_i32 = arith.constant 0 : i32
    %c0_i32_0 = arith.constant 0 : i32
    %c0_i32_1 = arith.constant 0 : i32
    return %arg0, %c0_i32, %c0_i32_0 : i32, i32, i32
  }
}

</mosaic_0001>

<bundles_post_ra>
// kernel: forward.4
= control target key start
LH: loop header
LB: loop body
LE: loop exit
PB: predicated region body
PF: predicated region fallthrough
CT: control target
= control target key end

     0   :  { %15 = vsyncpa [#allocation3], 0  ;;  %s2125_s13 = smov 0   ;;  %s2296_s0 = inlined_call_operand.vmem [shape: bf16[2,4,256], index: 0, kind: input, shape index: {}]   ;;  %s2297_s1 = inlined_call_operand.hbm [shape: bf16[4,256,82], index: 1, kind: input, shape index: {}]   ;;  %s2298_s2 = inlined_call_operand.vmem [shape: bf16[9,4,4], index: 2, kind: input, shape index: {}]   ;;  %s2299_s3 = inlined_call_operand.vmem [shape: f32[4,1], index: 3, kind: input, shape index: {}]   ;;  %s2300_s4 = inlined_call_operand.vmem [shape: f32[4,1], index: 4, kind: input, shape index: {}]   ;;  %s2301_s5 = inlined_call_operand.vmem [shape: bf16[9,4,4], index: 5, kind: input, shape index: {}]   ;;  %s2302_s6 = inlined_call_operand.vmem [shape: f32[4,1], index: 6, kind: input, shape index: {}]   ;;  %s2303_s7 = inlined_call_operand.vmem [shape: f32[4,1], index: 7, kind: input, shape index: {}]   ;;  %s2304_s8 = inlined_call_operand.vmem [shape: f32[1,64], index: 8, kind: input, shape index: {}]   ;;  %s2305_s9 = inlined_call_operand.vmem [shape: bf16[46,64], index: 9, kind: input, shape index: {}]   ;;  %s2306_s10 = inlined_call_operand.vmem [shape: f32[2,4,64], index: 10, kind: output, shape index: {}]  }
   0x1 LB: > { %s278_s16 = sshll.u32 %s2297_s1, 4  ;;  %s2134_s17 = sadd.s32 4294967295, %s2056_s13   ;;  %s2056_s13 = sphi %s2125_s13, %s21_s13   ;;  %s279_s16 = int_to_ptr.hbm [resolvable:$true] %s278_s16 }
   0x2   : > { %p1601_p0 = scmp.ge.s32.totalorder %s2056_s13, 1  ;;  %p267_p1 = scmp.lt.s32.totalorder %s2056_s13, 3 }
   0x3   : > { %p1990_p2 = scmp.eq.s32.totalorder %s2134_s17, 0  ;;  %s2058_s18 = smov [#allocation2]  }
   0x4   : > { %p268_p3 = pnand %p1601_p0, %p267_p1  ;;  %s280_s19 = sshll.u32 %s2058_s18, 4  ;;  %s281_s19 = int_to_ptr.vmem [resolvable:$true] %s280_s19 }
   0x5   : > { %s2059_s20 = smov 64   ;;  %s2060_s21 = smov 4  }
   0x6   : > { %p1986_p4 = pneg %p268_p3  ;;  %328 = sbr.rel (%p268_p3) target bundleno = 947 (0x3b3), region = 60 }
   0x8   : > { %p1987_p5 = pnand %p1990_p2, %p1986_p4 }
   0xa   : > { %1989 = dma.hbm_to_vmem [thread:$0]  (!%p1987_p5), %s279_s16, 8192, %s281_s19, [#allocation3], %s2059_s20, %s2059_s20, %s2060_s21  }
   0xb   : > { %2051 = dma.done.wait (%p1990_p2), [#allocation3], 8192  }
   0xc   : > { %2053 = vsyncadd (%p1990_p2), [#allocation3], 4294959104  ;;  %p366_p6 = scmp.lt.s32.totalorder %s2134_s17, 1  ;;  %v1922_v0 = vld [vmem:[#allocation2 + $0x38] sm:$0xff]  ;;  %v1921_v4 = vld [vmem:[#allocation2 + $0x30] sm:$0xff]  ;;  %vm1033_vm0 = vcmask 1041408  }
   0xd   : > { %v1930_v1 = vld [vmem:[#allocation2 + $0x78] sm:$0xff]  ;;  %511 = vmatpush.bf16.msra.mxu0 %v1922_v0  ;;  %v1929_v5 = vld [vmem:[#allocation2 + $0x70] sm:$0xff]  ;;  %v1920_v8 = vld [vmem:[#allocation2 + $0x28] sm:$0xff]  ;;  %s2061_s26 = smov 112   ;;  %s2062_s27 = smov 120   ;;  %vm1029_vm1 = vcmask 31744  }
   0xe   : > { %v1938_v2 = vld [vmem:[#allocation2 + $0xb8] sm:$0xff]  ;;  %524 = vmatpush.bf16.msra.mxu1 %v1930_v1  ;;  %v1937_v6 = vld [vmem:[#allocation2 + $0xb0] sm:$0xff]  ;;  %s2308_s17 = smov (!%p366_p6, %s2134_s17), 1  ;;  %v1928_v9 = vld [vmem:[#allocation2 + $0x68] sm:$0xff]  ;;  %s2063_s28 = smov 127   ;;  %vm1515_vm2 = vcmask 1046528  }
   0xf   : > { %v1946_v3 = vld [vmem:[#allocation2 + $0xf8] sm:$0xff]  ;;  %671 = vmatpush.bf16.msra.mxu2 %v1938_v2  ;;  %v1945_v7 = vld [vmem:[#allocation2 + $0xf0] sm:$0xff]  ;;  %v1936_v10 = vld [vmem:[#allocation2 + $0xa8] sm:$0xff]  ;;  %s1914_s22 = sshll.u32 %s2308_s17, 2  ;;  %s2064_s29 = smov 111   ;;  %vm1511_vm3 = vcmask 375808  }
  0x10   : > { %684 = vmatpush.bf16.msra.mxu3 %v1946_v3  ;;  %v1944_v11 = vld [vmem:[#allocation2 + $0xe8] sm:$0xff]  ;;  %v1919_v12 = vld [vmem:[#allocation2 + $0x20] sm:$0xff]  ;;  %s370_s25 = scalar_lea.vmem %s2296_s0, %s1914_s22  ;;  %v1918_v17 = vld [vmem:[#allocation2 + $0x18] sm:$0xff]  ;;  %s2065_s30 = smov 119   ;;  %vm1532_vm4 = vcmask 519168  }
  0x11   : > { %512 = vmatpush.bf16.msra.mxu0 %v1921_v4  ;;  %v1927_v13 = vld [vmem:[#allocation2 + $0x60] sm:$0xff]  ;;  %v2149_v16 = vld [vmem:[%s370_s25] sm:$0xf]  ;;  %v1917_v21 = vld [vmem:[#allocation2 + $0x10] sm:$0xff]  ;;  %s2066_s11 = smov 126   ;;  %s2067_s12 = smov 110  }
  0x12   : > { %525 = vmatpush.bf16.msra.mxu1 %v1929_v5  ;;  %v1935_v14 = vld [vmem:[#allocation2 + $0xa0] sm:$0xff]  ;;  %v1926_v18 = vld [vmem:[#allocation2 + $0x58] sm:$0xff]  ;;  %410 = vst [vmem:[#allocation1] ss:$4 sm:$0xff] %v2149_v16  ;;  %v1925_v22 = vld [vmem:[#allocation2 + $0x50] sm:$0xff]  ;;  %s2068_s14 = smov 118   ;;  %s374_s20 = scalar_lea.vmem %s2306_s10, %s1914_s22 }
  0x13   : > { %672 = vmatpush.bf16.msra.mxu2 %v1937_v6  ;;  %v1943_v15 = vld [vmem:[#allocation2 + $0xe0] sm:$0xff]  ;;  %v1934_v19 = vld [vmem:[#allocation2 + $0x98] sm:$0xff]  ;;  %v1933_v23 = vld [vmem:[#allocation2 + $0x90] sm:$0xff] }
  0x14   : > { %685 = vmatpush.bf16.msra.mxu3 %v1945_v7  ;;  %v1942_v20 = vld [vmem:[#allocation2 + $0xd8] sm:$0xff]  ;;  %v1941_v24 = vld [vmem:[#allocation2 + $0xd0] sm:$0xff]  ;;  %v1916_v27 = vld [vmem:[#allocation2 + $0x8] sm:$0xff] }
  0x15   : > { %513 = vmatpush.bf16.msra.mxu0 %v1920_v8  ;;  %v1924_v28 = vld [vmem:[#allocation2 + $0x48] sm:$0xff]  ;;  %v1915_v31 = vld [vmem:[#allocation2] sm:$0xff]  ;;  %v1954_v35 = vld [vmem:[#allocation2 + $0x138] sm:$0xff] }
  0x16   : > { %526 = vmatpush.bf16.msra.mxu1 %v1928_v9  ;;  %v1932_v29 = vld [vmem:[#allocation2 + $0x88] sm:$0xff]  ;;  %v1923_v32 = vld [vmem:[#allocation2 + $0x40] sm:$0xff]  ;;  %v1962_v36 = vld [vmem:[#allocation2 + $0x178] sm:$0xff] }
  0x17   : > { %673 = vmatpush.bf16.msra.mxu2 %v1936_v10  ;;  %v1940_v30 = vld [vmem:[#allocation2 + $0xc8] sm:$0xff]  ;;  %v1931_v33 = vld [vmem:[#allocation2 + $0x80] sm:$0xff]  ;;  %v1970_v37 = vld [vmem:[#allocation2 + $0x1b8] sm:$0xff] }
  0x18   : > { %686 = vmatpush.bf16.msra.mxu3 %v1944_v11  ;;  %v1939_v34 = vld [vmem:[#allocation2 + $0xc0] sm:$0xff]  ;;  %v1978_v38 = vld [vmem:[#allocation2 + $0x1f8] sm:$0xff]  ;;  %v1953_v41 = vld [vmem:[#allocation2 + $0x130] sm:$0xff] }
  0x19   : > { %514 = vmatpush.bf16.msra.mxu0 %v1919_v12  ;;  %v411_v25 = vld.sshfl [vmem:[#allocation1] sm:$0xff pattern:$0x73625140]  ;;  %v412_v26 = vld.sshfl [vmem:[#allocation1 + $0x8] sm:$0xff pattern:$0x73625140] }
  0x1a   : > { %527 = vmatpush.bf16.msra.mxu1 %v1927_v13  ;;  %570 = vst [vmem:[#allocation1] ss:$4 sm:$0xff] %v2149_v16  ;;  %v1961_v42 = vld [vmem:[#allocation2 + $0x170] sm:$0xff]  ;;  %v1952_v45 = vld [vmem:[#allocation2 + $0x128] sm:$0xff]  ;;  %v1951_v51 = vld [vmem:[#allocation2 + $0x120] sm:$0xff] }
  0x1b   : > { %674 = vmatpush.bf16.msra.mxu2 %v1935_v14  ;;  %v1969_v43 = vld [vmem:[#allocation2 + $0x1b0] sm:$0xff]  ;;  %v1960_v46 = vld [vmem:[#allocation2 + $0x168] sm:$0xff]  ;;  %v1959_v52 = vld [vmem:[#allocation2 + $0x160] sm:$0xff] }
  0x1c   : > { %687 = vmatpush.bf16.msra.mxu3 %v1943_v15  ;;  %v1977_v44 = vld [vmem:[#allocation2 + $0x1f0] sm:$0xff]  ;;  %v1968_v47 = vld [vmem:[#allocation2 + $0x1a8] sm:$0xff]  ;;  %v1967_v53 = vld [vmem:[#allocation2 + $0x1a0] sm:$0xff] }
  0x1d   : > { %515 = vmatpush.bf16.msra.mxu0 %v1918_v17  ;;  %v1976_v48 = vld [vmem:[#allocation2 + $0x1e8] sm:$0xff]  ;;  %v1975_v54 = vld [vmem:[#allocation2 + $0x1e0] sm:$0xff]  ;;  %v1950_v55 = vld [vmem:[#allocation2 + $0x118] sm:$0xff] }
  0x1e   : > { %528 = vmatpush.bf16.msra.mxu1 %v1926_v18  ;;  %v1958_v56 = vld [vmem:[#allocation2 + $0x158] sm:$0xff]  ;;  %v1949_v59 = vld [vmem:[#allocation2 + $0x110] sm:$0xff]  ;;  %v1948_v63 = vld [vmem:[#allocation2 + $0x108] sm:$0xff] }
  0x1f   : > { %675 = vmatpush.bf16.msra.mxu2 %v1934_v19  ;;  %v1966_v57 = vld [vmem:[#allocation2 + $0x198] sm:$0xff]  ;;  %v1957_v60 = vld [vmem:[#allocation2 + $0x150] sm:$0xff]  ;;  %v1956_v0 = vld [vmem:[#allocation2 + $0x148] sm:$0xff] }
  0x20   : > { %688 = vmatpush.bf16.msra.mxu3 %v1942_v20  ;;  %v1974_v58 = vld [vmem:[#allocation2 + $0x1d8] sm:$0xff]  ;;  %v1965_v61 = vld [vmem:[#allocation2 + $0x190] sm:$0xff]  ;;  %v1964_v1 = vld [vmem:[#allocation2 + $0x188] sm:$0xff] }
  0x21   : > { %516 = vmatpush.bf16.msra.mxu0 %v1917_v21  ;;  %v571_v39 = vld.sshfl [vmem:[#allocation1] sm:$0xff pattern:$0x73625140]  ;;  %v572_v40 = vld.sshfl [vmem:[#allocation1 + $0x8] sm:$0xff pattern:$0x73625140] }
  0x22   : > { %529 = vmatpush.bf16.msra.mxu1 %v1925_v22  ;;  %730 = vst [vmem:[#allocation1] ss:$4 sm:$0xff] %v2149_v16  ;;  %v1973_v62 = vld [vmem:[#allocation2 + $0x1d0] sm:$0xff]  ;;  %v1972_v2 = vld [vmem:[#allocation2 + $0x1c8] sm:$0xff]  ;;  %v1947_v3 = vld [vmem:[#allocation2 + $0x100] sm:$0xff] }
  0x23   : > { %676 = vmatpush.bf16.msra.mxu2 %v1933_v23  ;;  %v1955_v4 = vld [vmem:[#allocation2 + $0x140] sm:$0xff] }
  0x24   : > { %689 = vmatpush.bf16.msra.mxu3 %v1941_v24  ;;  %v1963_v5 = vld [vmem:[#allocation2 + $0x180] sm:$0xff] }
  0x25   : > { %517 = vmatpush.bf16.msra.mxu0 %v1916_v27  ;;  %v1971_v6 = vld [vmem:[#allocation2 + $0x1c0] sm:$0xff] }
  0x26   : > { %530 = vmatpush.bf16.msra.mxu1 %v1924_v28 }
  0x27   : > { %677 = vmatpush.bf16.msra.mxu2 %v1932_v29 }
  0x28   : > { %690 = vmatpush.bf16.msra.mxu3 %v1940_v30 }
  0x29   : > { %518 = vmatpush.bf16.msra.mxu0 %v1915_v31  ;;  %v731_v49 = vld.sshfl [vmem:[#allocation1] sm:$0xff pattern:$0x73625140]  ;;  %v732_v50 = vld.sshfl [vmem:[#allocation1 + $0x8] sm:$0xff pattern:$0x73625140] }
  0x2a   : > { %531 = vmatpush.bf16.msra.mxu1 %v1923_v32  ;;  %890 = vst [vmem:[#allocation1] ss:$4 sm:$0xff] %v2149_v16 }
  0x2b   : > { %678 = vmatpush.bf16.msra.mxu2 %v1931_v33 }
  0x2c   : > { %691 = vmatpush.bf16.msra.mxu3 %v1939_v34  ;;  %519 = vmatmul.bf16.vlgmr.msra.gmra.mxu0 %v411_v25 }
  0x2d   : > { %831 = vmatpush.bf16.msrb.mxu0 %v1954_v35  ;;  %532 = vmatmul.bf16.vlgmr.msra.gmra.mxu1 %v412_v26 }
  0x2e   : > { %844 = vmatpush.bf16.msrb.mxu1 %v1962_v36  ;;  %679 = vmatmul.bf16.vlgmr.msra.gmra.mxu2 %v571_v39  ;;  %v1021_v36 = vld [vmem:[%s2298_s2] sm:$0x3] }
  0x2f   : > { %991 = vmatpush.bf16.msrb.mxu2 %v1970_v37  ;;  %692 = vmatmul.bf16.vlgmr.msra.gmra.mxu3 %v572_v40 }
  0x30   : > { %1004 = vmatpush.bf16.msrb.mxu3 %v1978_v38 }
  0x31   : > { %832 = vmatpush.bf16.msrb.mxu0 %v1953_v41  ;;  %v891_v7 = vld.sshfl [vmem:[#allocation1] sm:$0xff pattern:$0x73625140]  ;;  %v892_v8 = vld.sshfl [vmem:[#allocation1 + $0x8] sm:$0xff pattern:$0x73625140] }
  0x32   : > { %845 = vmatpush.bf16.msrb.mxu1 %v1961_v42 }
  0x33   : > { %992 = vmatpush.bf16.msrb.mxu2 %v1969_v43 }
  0x34   : > { %1005 = vmatpush.bf16.msrb.mxu3 %v1977_v44  ;;  %v1870_v44 = vld [vmem:[%s2298_s2 + $0x6] sm:$0x3] }
  0x35   : > { %833 = vmatpush.bf16.msrb.mxu0 %v1952_v45  ;;  %v1865_v45 = vld [vmem:[%s2298_s2 + $0x2] sm:$0x3] }
  0x36   : > { %846 = vmatpush.bf16.msrb.mxu1 %v1960_v46  ;;  %v1244_v46 = vld [vmem:[%s2300_s4] sm:$0xf] }
  0x37   : > { %993 = vmatpush.bf16.msrb.mxu2 %v1968_v47  ;;  %v1237_v47 = vld [vmem:[%s2299_s3] sm:$0xf] }
  0x38   : > { %1006 = vmatpush.bf16.msrb.mxu3 %v1976_v48  ;;  %v2069_v48 = vmov 0  }
  0x39   : > { %834 = vmatpush.bf16.msrb.mxu0 %v1951_v51  ;;  %2013 = vset.pattern.permute.xlu0 %v2069_v48 }
  0x3a   : > { %847 = vmatpush.bf16.msrb.mxu1 %v1959_v52  ;;  %2012 = vset.pattern.permute.xlu2 %v2069_v48 }
  0x3b   : > { %994 = vmatpush.bf16.msrb.mxu2 %v1967_v53  ;;  %2014 = vset.pattern.permute.xlu1 %v2069_v48 }
  0x3c   : > { %1007 = vmatpush.bf16.msrb.mxu3 %v1975_v54  ;;  %v1868_v54 = vld [vmem:[%s2298_s2 + $0x4] sm:$0x3] }
  0x3d   : > { %835 = vmatpush.bf16.msrb.mxu0 %v1950_v55 }
  0x3e   : > { %848 = vmatpush.bf16.msrb.mxu1 %v1958_v56 }
  0x3f   : > { %995 = vmatpush.bf16.msrb.mxu2 %v1966_v57 }
  0x40   : > { %1008 = vmatpush.bf16.msrb.mxu3 %v1974_v58 }
  0x41   : > { %836 = vmatpush.bf16.msrb.mxu0 %v1949_v59  ;;  %v1878_v59 = vld [vmem:[%s2298_s2 + $0xe] sm:$0x3] }
  0x42   : > { %849 = vmatpush.bf16.msrb.mxu1 %v1957_v60  ;;  %v1872_v60 = vld [vmem:[%s2298_s2 + $0x8] sm:$0x3] }
  0x43   : > { %996 = vmatpush.bf16.msrb.mxu2 %v1965_v61  ;;  %v1874_v61 = vld [vmem:[%s2298_s2 + $0xa] sm:$0x3] }
  0x44   : > { %1009 = vmatpush.bf16.msrb.mxu3 %v1973_v62  ;;  %v1876_v62 = vld [vmem:[%s2298_s2 + $0xc] sm:$0x3] }
  0x45   : > { %837 = vmatpush.bf16.msrb.mxu0 %v1948_v63  ;;  %v1880_v63 = vld [vmem:[%s2298_s2 + $0x10] sm:$0x3] }
  0x46   : > { %850 = vmatpush.bf16.msrb.mxu1 %v1956_v0 }
  0x47   : > { %997 = vmatpush.bf16.msrb.mxu2 %v1964_v1 }
  0x48   : > { %1010 = vmatpush.bf16.msrb.mxu3 %v1972_v2 }
  0x49   : > { %838 = vmatpush.bf16.msrb.mxu0 %v1947_v3 }
  0x4a   : > { %851 = vmatpush.bf16.msrb.mxu1 %v1955_v4 }
  0x4b   : > { %998 = vmatpush.bf16.msrb.mxu2 %v1963_v5 }
  0x4c   : > { %1011 = vmatpush.bf16.msrb.mxu3 %v1971_v6  ;;  %839 = vmatmul.bf16.vlgmr.msrb.gmra.mxu0 %v731_v49 }
  0x4d   : > { %852 = vmatmul.bf16.vlgmr.msrb.gmra.mxu1 %v732_v50 }
  0x4e   : > { %999 = vmatmul.bf16.vlgmr.msrb.gmra.mxu2 %v891_v7 }
  0x4f   : > { %1012 = vmatmul.bf16.vlgmr.msrb.gmra.mxu3 %v892_v8 }
  0xa9   : > { %v520_v9 = vpop.f32.mrf.mxu0 }
  0xaa   : > { %v533_v10 = vpop.f32.mrf.mxu1 }
  0xab   : > { %v534_v19 = vadd.f32 %v533_v10, %v520_v9 }
  0xb1   : > { %v680_v11 = vpop.f32.mrf.mxu2  ;;  %v522_v13 = vpop.f32.mrf.mxu0 }
  0xb2   : > { %v693_v12 = vpop.f32.mrf.mxu3  ;;  %v535_v14 = vpop.f32.mrf.mxu1 }
  0xb3   : > { %v694_v20 = vadd.f32 %v693_v12, %v680_v11 }
  0xb5   : > { %v1017_v27 = vmax.f32 %v534_v19, %v694_v20 }
  0xb9   : > { %v682_v15 = vpop.f32.mrf.mxu2 }
  0xba   : > { %v695_v16 = vpop.f32.mrf.mxu3 }
  0xc9   : > { %v840_v17 = vpop.f32.mrf.mxu0 }
  0xca   : > { %v853_v18 = vpop.f32.mrf.mxu1 }
  0xcb   : > { %v854_v21 = vadd.f32 %v853_v18, %v840_v17 }
  0xd1   : > { %v1000_v22 = vpop.f32.mrf.mxu2  ;;  %v842_v25 = vpop.f32.mrf.mxu0 }
  0xd2   : > { %v1013_v23 = vpop.f32.mrf.mxu3  ;;  %v855_v26 = vpop.f32.mrf.mxu1 }
  0xd3   : > { %v1014_v24 = vadd.f32 %v1013_v23, %v1000_v22 }
  0xd5   : > { %v1018_v28 = vmax.f32 %v854_v21, %v1014_v24 }
  0xd7   : > { %v1019_v29 = vmax.f32 %v1017_v27, %v1018_v28  ;;  %v2015_v28 = vld [vmem:[%s2304_s8] ss:$0 sm:$0xff] }
  0xd9   : > { %v1020_v30 = vpack.c.bf16 %v1019_v29, %v1019_v29  ;;  %v1002_v31 = vpop.f32.mrf.mxu2 }
  0xda   : > { %v1015_v32 = vpop.f32.mrf.mxu3 }
  0xdb   : > { %v1025_v33 = vunpack.c.l.b16 %v1020_v30  ;;  %v1054_v34 = vsel %vm1033_vm0, %v1020_v30, 0 }
  0xdc   : > { %1063 = vmatpush.bf16.msra.mxu1 %v1054_v34 }
  0xdd   : > { %v1026_v35 = vpack.c.b16 %v1025_v33, %v1025_v33 }
  0xdf   : > { %1167 = vrot.lane.b32.xlu2 %v1026_v35, %s2061_s26  ;;  %1095 = vrot.lane.b32.xlu1 %v1026_v35, %s2062_s27 }
  0xe0   : > { %1027 = vrot.lane.b32.xlu0 %v1026_v35, %s2063_s28  ;;  %1867 = vmatmul.msk.bf16.vlgmr.msra.gmra.mxu1 %vm1029_vm1, %v1021_v36 }
  0xe7   : > { %1191 = vrot.lane.b32.xlu2 %v1026_v35, %s2064_s29  ;;  %1119 = vrot.lane.b32.xlu1 %v1026_v35, %s2065_s30 }
  0xe8   : > { %1071 = vrot.lane.b32.xlu0 %v1026_v35, %s2066_s11 }
  0xef   : > { %1215 = vrot.lane.b32.xlu1 %v1026_v35, %s2067_s12  ;;  %1240 = vperm.xlu2 %2012, %v1237_v47   ;;  %v1891_v47 = vld [vmem:[%s2301_s5 + $0xa] sm:$0x3] }
  0xf0   : > { %1143 = vrot.lane.b32.xlu0 %v1026_v35, %s2068_s14 }
  0xf8   : > { %1247 = vperm.xlu0 %2013, %v1244_v46  }
 0x139   : > { %v1168_v37 = vpop.permute.xlu2 %1167 }
 0x13a   : > { %v1173_v53 = vsel %vm1033_vm0, %v1168_v37, 0  ;;  %v1479_v37 = vld [vmem:[%s2303_s7] sm:$0xf] }
 0x141   : > { %v1192_v38 = vpop.permute.xlu2 %1191 }
 0x142   : > { %v1197_v42 = vsel %vm1033_vm0, %v1192_v38, 0  ;;  %v1258_v38 = vld [vmem:[%s2301_s5] sm:$0x3] }
 0x149   : > { %v1241_v23 = vpop.permute.xlu2 %1240 }
 0x151   : > { %v1096_v39 = vpop.permute.xlu1 %1095 }
 0x152   : > { %v1101_v40 = vsel %vm1033_vm0, %v1096_v39, 0  ;;  %v1028_v41 = vpop.permute.xlu0 %1027 }
 0x153   : > { %v1035_v43 = vsel %vm1033_vm0, %v1028_v41, 0  ;;  %1110 = vmatpush.bf16.msra.mxu3 %v1101_v40  ;;  %v1885_v41 = vld [vmem:[%s2301_s5 + $0x4] sm:$0x3] }
 0x154   : > { %1044 = vmatpush.bf16.msra.mxu0 %v1035_v43 }
 0x156   : > { %1871 = vmatmul.msk.bf16.vlgmr.msra.gmra.mxu3 %vm1029_vm1, %v1870_v44 }
 0x157   : > { %1206 = vmatpush.bf16.msrb.mxu3 %v1197_v42  ;;  %1866 = vmatmul.msk.bf16.vlgmr.msra.gmra.mxu0 %vm1029_vm1, %v1865_v45 }
 0x159   : > { %v1120_v49 = vpop.permute.xlu1 %1119 }
 0x15a   : > { %v1125_v50 = vsel %vm1033_vm0, %v1120_v49, 0  ;;  %v1072_v51 = vpop.permute.xlu0 %1071  ;;  %v1882_v49 = vld [vmem:[%s2301_s5 + $0x2] sm:$0x3] }
 0x15b   : > { %v1077_v52 = vsel %vm1033_vm0, %v1072_v51, 0  ;;  %1134 = vmatpush.bf16.msrb.mxu0 %v1125_v50  ;;  %v1472_v50 = vld [vmem:[%s2302_s6] sm:$0xf] }
 0x15c   : > { %1086 = vmatpush.bf16.msra.mxu2 %v1077_v52 }
 0x15d   : > { %v1065_v0 = vpop.f32.mrf.mxu1 }
 0x15f   : > { %1869 = vmatmul.msk.bf16.vlgmr.msra.gmra.mxu2 %vm1029_vm1, %v1868_v54 }
 0x160   : > { %1182 = vmatpush.bf16.msrb.mxu2 %v1173_v53 }
 0x161   : > { %v1216_v55 = vpop.permute.xlu1 %1215 }
 0x162   : > { %v1221_v56 = vsel %vm1033_vm0, %v1216_v55, 0  ;;  %v1144_v57 = vpop.permute.xlu0 %1143 }
 0x163   : > { %v1149_v58 = vsel %vm1033_vm0, %v1144_v57, 0  ;;  %1230 = vmatpush.bf16.msra.mxu0 %v1221_v56  ;;  %v1887_v57 = vld [vmem:[%s2301_s5 + $0x6] sm:$0x3] }
 0x164   : > { %1158 = vmatpush.bf16.msrb.mxu1 %v1149_v58 }
 0x165   : > { %v1067_v1 = vpop.f32.mrf.mxu1 }
 0x166   : > { %1879 = vmatmul.msk.bf16.vlgmr.msrb.gmra.mxu3 %vm1029_vm1, %v1878_v59 }
 0x167   : > { %1873 = vmatmul.msk.bf16.vlgmr.msrb.gmra.mxu0 %vm1029_vm1, %v1872_v60  ;;  %1875 = vmatmul.msk.bf16.vlgmr.msrb.gmra.mxu1 %vm1029_vm1, %v1874_v61  ;;  %v1889_v60 = vld [vmem:[%s2301_s5 + $0x8] sm:$0x3]  ;;  %v1893_v61 = vld [vmem:[%s2301_s5 + $0xc] sm:$0x3] }
 0x16a   : > { %v1248_v25 = vpop.permute.xlu0 %1247 }
 0x16f   : > { %1877 = vmatmul.msk.bf16.vlgmr.msrb.gmra.mxu2 %vm1029_vm1, %v1876_v62  ;;  %v1895_v62 = vld [vmem:[%s2301_s5 + $0xe] sm:$0x3] }
 0x177   : > { %1881 = vmatmul.msk.bf16.vlgmr.msra.gmra.mxu0 %vm1029_vm1, %v1880_v63  ;;  %v1897_v63 = vld [vmem:[%s2301_s5 + $0x10] sm:$0x3] }
 0x1d4   : > { %v1046_v2 = vpop.f32.mrf.mxu0 }
 0x1d5   : > { %v1066_v7 = vadd.f32 %v1065_v0, %v1046_v2 }
 0x1d9   : > { %v1112_v3 = vpop.f32.mrf.mxu3 }
 0x1dc   : > { %v1048_v4 = vpop.f32.mrf.mxu0 }
 0x1dd   : > { %v1909_v4 = vld [vmem:[%s2305_s9 + $0x10] sm:$0xf] }
 0x1e1   : > { %v1114_v5 = vpop.f32.mrf.mxu3 }
 0x1e2   : > { %v1088_v6 = vpop.f32.mrf.mxu2  ;;  %v1981_v5 = vld [vmem:[%s2305_s9 + $0x10] sm:$0x70] }
 0x1e3   : > { %v1092_v10 = vadd.f32 %v1088_v6, %v1066_v7  ;;  %v1910_v6 = vor.u32 %v1981_v5, %v1909_v4 }
 0x1e4   : > { %v1136_v8 = vpop.f32.mrf.mxu0  ;;  %v1160_v9 = vpop.f32.mrf.mxu1 }
 0x1e5   : > { %v1116_v11 = vadd.f32 %v1112_v3, %v1092_v10  ;;  %v1517_v7 = vsel %vm1515_vm2, %v1910_v6, 0 }
 0x1e7   : > { %v1140_v16 = vadd.f32 %v1136_v8, %v1116_v11  ;;  %v1979_v11 = vld [vmem:[%s2305_s9] sm:$0xff] }
 0x1e9   : > { %v1208_v12 = vpop.f32.mrf.mxu3  ;;  %v1164_v17 = vadd.f32 %v1160_v9, %v1140_v16  ;;  %v1980_v9 = vld [vmem:[%s2305_s9 + $0x8] sm:$0xff] }
 0x1ea   : > { %v1090_v13 = vpop.f32.mrf.mxu2 }
 0x1ec   : > { %v1138_v14 = vpop.f32.mrf.mxu0  ;;  %v1162_v15 = vpop.f32.mrf.mxu1 }
 0x1f1   : > { %v1210_v18 = vpop.f32.mrf.mxu3 }
 0x1f2   : > { %v1184_v19 = vpop.f32.mrf.mxu2 }
 0x1f3   : > { %v1188_v20 = vadd.f32 %v1184_v19, %v1164_v17 }
 0x1f4   : > { %v1232_v21 = vpop.f32.mrf.mxu0 }
 0x1f5   : > { %v1212_v22 = vadd.f32 %v1208_v12, %v1188_v20 }
 0x1f7   : > { %v1236_v24 = vadd.f32 %v1232_v21, %v1212_v22 }
 0x1f9   : > { %v1243_v26 = vmul.f32 %v1241_v23, %v1236_v24 }
 0x1fa   : > { %v1186_v27 = vpop.f32.mrf.mxu2 }
 0x1fb   : > { %v1250_v29 = vadd.f32 %v1248_v25, %v1243_v26 }
 0x1fc   : > { %v1234_v30 = vpop.f32.mrf.mxu0 }
 0x1fd   : > { %v1251_v31 = vmax.f32 %v1250_v29, 0.0 }
 0x1ff   : > { %v1256_v32 = vmul.f32 %v2015_v28, %v1251_v31 }
 0x201   : > { %v1257_v33 = vpack.c.bf16 %v1256_v32, %v1256_v32 }
 0x203   : > { %v1262_v34 = vunpack.c.l.b16 %v1257_v33  ;;  %v1289_v35 = vsel %vm1033_vm0, %v1257_v33, 0 }
 0x204   : > { %1298 = vmatpush.bf16.msra.mxu2 %v1289_v35 }
 0x205   : > { %v1263_v36 = vpack.c.b16 %v1262_v34, %v1262_v34 }
 0x207   : > { %1378 = vrot.lane.b32.xlu0 %v1263_v36, %s2068_s14  ;;  %1306 = vrot.lane.b32.xlu2 %v1263_v36, %s2066_s11 }
 0x208   : > { %1264 = vrot.lane.b32.xlu1 %v1263_v36, %s2063_s28  ;;  %1884 = vmatmul.msk.bf16.vlgmr.msra.gmra.mxu2 %vm1029_vm1, %v1258_v38 }
 0x20f   : > { %1450 = vrot.lane.b32.xlu0 %v1263_v36, %s2067_s12  ;;  %1354 = vrot.lane.b32.xlu2 %v1263_v36, %s2065_s30 }
 0x210   : > { %1330 = vrot.lane.b32.xlu1 %v1263_v36, %s2062_s27 }
 0x217   : > { %1426 = vrot.lane.b32.xlu2 %v1263_v36, %s2064_s29 }
 0x218   : > { %1402 = vrot.lane.b32.xlu1 %v1263_v36, %s2061_s26 }
 0x21f   : > { %1482 = vperm.xlu2 %2012, %v1479_v37  }
 0x220   : > { %1475 = vperm.xlu1 %2014, %v1472_v50  }
 0x261   : > { %v1307_v39 = vpop.permute.xlu2 %1306 }
 0x262   : > { %v1312_v40 = vsel %vm1033_vm0, %v1307_v39, 0 }
 0x263   : > { %1321 = vmatpush.bf16.msra.mxu3 %v1312_v40 }
 0x266   : > { %1886 = vmatmul.msk.bf16.vlgmr.msra.gmra.mxu3 %vm1029_vm1, %v1885_v41 }
 0x269   : > { %v1355_v42 = vpop.permute.xlu2 %1354 }
 0x26a   : > { %v1360_v48 = vsel %vm1033_vm0, %v1355_v42, 0 }
 0x271   : > { %v1427_v51 = vpop.permute.xlu2 %1426 }
 0x272   : > { %v1432_v56 = vsel %vm1033_vm0, %v1427_v51, 0 }
 0x279   : > { %v1379_v43 = vpop.permute.xlu0 %1378  ;;  %v1483_v33 = vpop.permute.xlu2 %1482 }
 0x27a   : > { %v1384_v44 = vsel %vm1033_vm0, %v1379_v43, 0  ;;  %v1265_v45 = vpop.permute.xlu1 %1264 }
 0x27b   : > { %v1270_v46 = vsel %vm1033_vm0, %v1265_v45, 0  ;;  %1393 = vmatpush.bf16.msrb.mxu2 %v1384_v44 }
 0x27c   : > { %1279 = vmatpush.bf16.msra.mxu1 %v1270_v46 }
 0x27e   : > { %1892 = vmatmul.msk.bf16.vlgmr.msrb.gmra.mxu2 %vm1029_vm1, %v1891_v47 }
 0x27f   : > { %1883 = vmatmul.msk.bf16.vlgmr.msra.gmra.mxu1 %vm1029_vm1, %v1882_v49  ;;  %1524 = vmatpush.bf16.msra.mxu2 %v1517_v7 }
 0x280   : > { %1369 = vmatpush.bf16.msrb.mxu1 %v1360_v48 }
 0x281   : > { %v1451_v52 = vpop.permute.xlu0 %1450 }
 0x282   : > { %v1456_v53 = vsel %vm1033_vm0, %v1451_v52, 0  ;;  %v1331_v54 = vpop.permute.xlu1 %1330 }
 0x283   : > { %v1336_v55 = vsel %vm1033_vm0, %v1331_v54, 0  ;;  %1525 = vmatpush.bf16.msra.mxu2 %v1980_v9 }
 0x284   : > { %1465 = vmatpush.bf16.msra.mxu1 %v1456_v53  ;;  %1345 = vmatpush.bf16.msrb.mxu0 %v1336_v55 }
 0x287   : > { %1888 = vmatmul.msk.bf16.vlgmr.msrb.gmra.mxu0 %vm1029_vm1, %v1887_v57  ;;  %1526 = vmatpush.bf16.msra.mxu2 %v1979_v11 }
 0x288   : > { %1441 = vmatpush.bf16.msra.mxu0 %v1432_v56 }
 0x28a   : > { %v1403_v58 = vpop.permute.xlu1 %1402 }
 0x28b   : > { %v1408_v59 = vsel %vm1033_vm0, %v1403_v58, 0  ;;  %v1300_v0 = vpop.f32.mrf.mxu2 }
 0x28c   : > { %1417 = vmatpush.bf16.msrb.mxu3 %v1408_v59 }
 0x28f   : > { %1890 = vmatmul.msk.bf16.vlgmr.msrb.gmra.mxu1 %vm1029_vm1, %v1889_v60  ;;  %1894 = vmatmul.msk.bf16.vlgmr.msrb.gmra.mxu3 %vm1029_vm1, %v1893_v61 }
 0x292   : > { %v1476_v28 = vpop.permute.xlu1 %1475 }
 0x293   : > { %v1302_v1 = vpop.f32.mrf.mxu2 }
 0x297   : > { %1896 = vmatmul.msk.bf16.vlgmr.msra.gmra.mxu0 %vm1029_vm1, %v1895_v62 }
 0x29f   : > { %1898 = vmatmul.msk.bf16.vlgmr.msra.gmra.mxu1 %vm1029_vm1, %v1897_v63 }
 0x2e9   : > { %v1323_v2 = vpop.f32.mrf.mxu3 }
 0x2f1   : > { %v1325_v3 = vpop.f32.mrf.mxu3 }
 0x2fc   : > { %v1281_v8 = vpop.f32.mrf.mxu1 }
 0x2fd   : > { %v1301_v14 = vadd.f32 %v1300_v0, %v1281_v8 }
 0x2ff   : > { %v1327_v18 = vadd.f32 %v1323_v2, %v1301_v14 }
 0x301   : > { %v1395_v10 = vpop.f32.mrf.mxu2 }
 0x304   : > { %v1283_v12 = vpop.f32.mrf.mxu1  ;;  %v1347_v13 = vpop.f32.mrf.mxu0 }
 0x305   : > { %v1351_v19 = vadd.f32 %v1347_v13, %v1327_v18 }
 0x309   : > { %v1397_v15 = vpop.f32.mrf.mxu2 }
 0x30c   : > { %v1371_v16 = vpop.f32.mrf.mxu1  ;;  %v1349_v17 = vpop.f32.mrf.mxu0 }
 0x30d   : > { %v1375_v20 = vadd.f32 %v1371_v16, %v1351_v19 }
 0x30f   : > { %v1399_v24 = vadd.f32 %v1395_v10, %v1375_v20 }
 0x312   : > { %v1419_v21 = vpop.f32.mrf.mxu3 }
 0x313   : > { %v1423_v25 = vadd.f32 %v1419_v21, %v1399_v24 }
 0x314   : > { %v1373_v22 = vpop.f32.mrf.mxu1  ;;  %v1443_v23 = vpop.f32.mrf.mxu0 }
 0x315   : > { %v1447_v27 = vadd.f32 %v1443_v23, %v1423_v25 }
 0x31a   : > { %v1421_v26 = vpop.f32.mrf.mxu3 }
 0x31c   : > { %v1467_v29 = vpop.f32.mrf.mxu1  ;;  %v1445_v30 = vpop.f32.mrf.mxu0 }
 0x31d   : > { %v1471_v31 = vadd.f32 %v1467_v29, %v1447_v27 }
 0x31f   : > { %v1478_v32 = vmul.f32 %v1476_v28, %v1471_v31 }
 0x321   : > { %v1485_v34 = vadd.f32 %v1483_v33, %v1478_v32 }
 0x323   : > { %v1486_v35 = vmax.f32 %v1485_v34, 0.0 }
 0x324   : > { %v1469_v36 = vpop.f32.mrf.mxu1 }
 0x325   : > { %v1487_v37 = vpack.c.bf16 %v1486_v35, %v1486_v35 }
 0x327   : > { %1911 = vmatmul.msk.bf16.vlgmr.msra.gmra.mxu2 %vm1511_vm3, %v1487_v37 }
 0x3aa   : > { %v1528_v38 = vpop.f32.mrf.mxu2 }
 0x3ab   : > { %1533 = vst.msk [vmem:[%s374_s20] sm:$0xf] %vm1532_vm4, %v1528_v38 }
 0x3b2   : > { %v1530_v39 = vpop.f32.mrf.mxu2 }
 0x3b3 PF: > { %s21_s13 = sadd.s32 1, %s2056_s13  }
 0x3b4   : > { %p18_p7 = scmp.ge.s32.totalorder %s21_s13, 4  }
 0x3b6   :  { %20 = sbr.rel (!%p18_p7) target bundleno = 1 (0x1), region = 114 }
 0x3bb   :  { %1553 = vsyncpa [#allocation3], 1 }
 0x3bc   :  { %1555 = vsyncpa [#allocation3 + $0x1], 1 }

// kernel: forward.3
= control target key start
LH: loop header
LB: loop body
LE: loop exit
PB: predicated region body
PF: predicated region fallthrough
CT: control target
= control target key end

     0   :  { %15 = vsyncpa [#allocation3], 0  ;;  %s3084_s13 = smov 0   ;;  %s3329_s0 = inlined_call_operand.vmem [shape: bf16[2,4,256], index: 0, kind: input, shape index: {}]   ;;  %s3330_s1 = inlined_call_operand.hbm [shape: bf16[4,256,170], index: 1, kind: input, shape index: {}]   ;;  %s3331_s2 = inlined_call_operand.vmem [shape: bf16[9,4,4], index: 2, kind: input, shape index: {}]   ;;  %s3332_s3 = inlined_call_operand.vmem [shape: f32[4,1], index: 3, kind: input, shape index: {}]   ;;  %s3333_s4 = inlined_call_operand.vmem [shape: f32[4,1], index: 4, kind: input, shape index: {}]   ;;  %s3334_s5 = inlined_call_operand.vmem [shape: bf16[9,4,4], index: 5, kind: input, shape index: {}]   ;;  %s3335_s6 = inlined_call_operand.vmem [shape: f32[4,1], index: 6, kind: input, shape index: {}]   ;;  %s3336_s7 = inlined_call_operand.vmem [shape: f32[4,1], index: 7, kind: input, shape index: {}]   ;;  %s3337_s8 = inlined_call_operand.vmem [shape: f32[1,144], index: 8, kind: input, shape index: {}]   ;;  %s3338_s9 = inlined_call_operand.vmem [shape: bf16[118,64], index: 9, kind: input, shape index: {}]   ;;  %s3339_s10 = inlined_call_operand.vmem [shape: f32[2,4,64], index: 10, kind: output, shape index: {}]  }
   0x1 LB: > { %s278_s16 = sshll.u32 %s3330_s1, 4  ;;  %s3093_s17 = sadd.s32 4294967295, %s3015_s13   ;;  %s3015_s13 = sphi %s3084_s13, %s21_s13   ;;  %s279_s16 = int_to_ptr.hbm [resolvable:$true] %s278_s16 }
   0x2   : > { %p2212_p0 = scmp.ge.s32.totalorder %s3015_s13, 1  ;;  %p267_p1 = scmp.lt.s32.totalorder %s3015_s13, 3 }
   0x3   : > { %p2950_p2 = scmp.eq.s32.totalorder %s3093_s17, 0  ;;  %s3017_s18 = smov [#allocation2]  }
   0x4   : > { %p268_p3 = pnand %p2212_p0, %p267_p1  ;;  %s280_s19 = sshll.u32 %s3017_s18, 4  ;;  %s281_s19 = int_to_ptr.vmem [resolvable:$true] %s280_s19 }
   0x5   : > { %s3018_s20 = smov 128   ;;  %s3019_s21 = smov 8  }
   0x6   : > { %p2946_p4 = pneg %p268_p3  ;;  %328 = sbr.rel (%p268_p3) target bundleno = 1058 (0x422), region = 60 }
   0x8   : > { %p2947_p5 = pnand %p2950_p2, %p2946_p4 }
   0xa   : > { %2949 = dma.hbm_to_vmem [thread:$0]  (!%p2947_p5), %s279_s16, 16384, %s281_s19, [#allocation3], %s3018_s20, %s3018_s20, %s3019_s21  }
   0xb   : > { %3010 = dma.done.wait (%p2950_p2), [#allocation3], 16384  }
   0xc   : > { %3012 = vsyncadd (%p2950_p2), [#allocation3], 4294950912  ;;  %v2278_v0 = vld [vmem:[#allocation2 + $0x70] sm:$0xf]  ;;  %v2822_v1 = vld [vmem:[#allocation2 + $0x74] sm:$0xf0] }
   0xd   : > { %v2342_v2 = vld [vmem:[#allocation2 + $0xf0] sm:$0xf]  ;;  %v2279_v3 = vor.u32 %v2822_v1, %v2278_v0  ;;  %v2838_v4 = vld [vmem:[#allocation2 + $0xf4] sm:$0xf0]  ;;  %v2821_v5 = vld [vmem:[#allocation2 + $0x74] sm:$0xf] }
   0xe   : > { %v2280_v6 = vld [vmem:[#allocation2 + $0x78] sm:$0xf0]  ;;  %v2343_v7 = vor.u32 %v2838_v4, %v2342_v2  ;;  %v2837_v9 = vld [vmem:[#allocation2 + $0xf4] sm:$0xf]  ;;  %v2270_v11 = vld [vmem:[#allocation2 + $0x60] sm:$0xf] }
   0xf   : > { %v2283_v8 = vor.u32 %v2821_v5, %v2280_v6  ;;  %v2344_v10 = vld [vmem:[#allocation2 + $0xf8] sm:$0xf0]  ;;  %575 = vmatpush.bf16.msra.mxu0 %v2279_v3  ;;  %v2820_v13 = vld [vmem:[#allocation2 + $0x64] sm:$0xf0]  ;;  %v2334_v14 = vld [vmem:[#allocation2 + $0xe0] sm:$0xf] }
  0x10   : > { %v2347_v12 = vor.u32 %v2837_v9, %v2344_v10  ;;  %v2836_v15 = vld [vmem:[#allocation2 + $0xe4] sm:$0xf0]  ;;  %588 = vmatpush.bf16.msra.mxu1 %v2343_v7  ;;  %v2271_v16 = vor.u32 %v2820_v13, %v2270_v11  ;;  %v2819_v18 = vld [vmem:[#allocation2 + $0x64] sm:$0xf]  ;;  %v2272_v19 = vld [vmem:[#allocation2 + $0x68] sm:$0xf0] }
  0x11   : > { %601 = vmatpush.bf16.msra.mxu2 %v2283_v8  ;;  %v2335_v17 = vor.u32 %v2836_v15, %v2334_v14  ;;  %v2835_v20 = vld [vmem:[#allocation2 + $0xe4] sm:$0xf]  ;;  %v2275_v21 = vor.u32 %v2819_v18, %v2272_v19  ;;  %v2336_v22 = vld [vmem:[#allocation2 + $0xe8] sm:$0xf0]  ;;  %v2262_v23 = vld [vmem:[#allocation2 + $0x50] sm:$0xf] }
  0x12   : > { %614 = vmatpush.bf16.msra.mxu3 %v2347_v12  ;;  %v2818_v24 = vld [vmem:[#allocation2 + $0x54] sm:$0xf0]  ;;  %v2339_v25 = vor.u32 %v2835_v20, %v2336_v22  ;;  %v2326_v26 = vld [vmem:[#allocation2 + $0xd0] sm:$0xf]  ;;  %v2817_v28 = vld [vmem:[#allocation2 + $0x54] sm:$0xf] }
  0x13   : > { %v2834_v27 = vld [vmem:[#allocation2 + $0xd4] sm:$0xf0]  ;;  %576 = vmatpush.bf16.msra.mxu0 %v2271_v16  ;;  %v2263_v29 = vor.u32 %v2818_v24, %v2262_v23  ;;  %v2264_v30 = vld [vmem:[#allocation2 + $0x58] sm:$0xf0]  ;;  %v2833_v31 = vld [vmem:[#allocation2 + $0xd4] sm:$0xf] }
  0x14   : > { %v2328_v32 = vld [vmem:[#allocation2 + $0xd8] sm:$0xf0]  ;;  %589 = vmatpush.bf16.msra.mxu1 %v2335_v17  ;;  %v2327_v33 = vor.u32 %v2834_v27, %v2326_v26  ;;  %v2267_v34 = vor.u32 %v2817_v28, %v2264_v30  ;;  %v2254_v35 = vld [vmem:[#allocation2 + $0x40] sm:$0xf]  ;;  %v2816_v36 = vld [vmem:[#allocation2 + $0x44] sm:$0xf0] }
  0x15   : > { %602 = vmatpush.bf16.msra.mxu2 %v2275_v21  ;;  %v2318_v37 = vld [vmem:[#allocation2 + $0xc0] sm:$0xf]  ;;  %v2331_v38 = vor.u32 %v2833_v31, %v2328_v32  ;;  %v2832_v39 = vld [vmem:[#allocation2 + $0xc4] sm:$0xf0]  ;;  %v2815_v40 = vld [vmem:[#allocation2 + $0x44] sm:$0xf]  ;;  %v2255_v44 = vor.u32 %v2816_v36, %v2254_v35 }
  0x16   : > { %615 = vmatpush.bf16.msra.mxu3 %v2339_v25  ;;  %v2256_v41 = vld [vmem:[#allocation2 + $0x48] sm:$0xf0]  ;;  %v2831_v42 = vld [vmem:[#allocation2 + $0xc4] sm:$0xf]  ;;  %v2319_v45 = vor.u32 %v2832_v39, %v2318_v37  ;;  %v2246_v47 = vld [vmem:[#allocation2 + $0x30] sm:$0xf] }
  0x17   : > { %v2320_v43 = vld [vmem:[#allocation2 + $0xc8] sm:$0xf0]  ;;  %577 = vmatpush.bf16.msra.mxu0 %v2263_v29  ;;  %v2259_v46 = vor.u32 %v2815_v40, %v2256_v41  ;;  %v2814_v48 = vld [vmem:[#allocation2 + $0x34] sm:$0xf0]  ;;  %v2310_v49 = vld [vmem:[#allocation2 + $0xb0] sm:$0xf] }
  0x18   : > { %590 = vmatpush.bf16.msra.mxu1 %v2327_v33  ;;  %v2323_v50 = vor.u32 %v2831_v42, %v2320_v43  ;;  %v2830_v51 = vld [vmem:[#allocation2 + $0xb4] sm:$0xf0]  ;;  %v2813_v52 = vld [vmem:[#allocation2 + $0x34] sm:$0xf]  ;;  %v2248_v53 = vld [vmem:[#allocation2 + $0x38] sm:$0xf0]  ;;  %v2247_v56 = vor.u32 %v2814_v48, %v2246_v47 }
  0x19   : > { %603 = vmatpush.bf16.msra.mxu2 %v2267_v34  ;;  %v2829_v54 = vld [vmem:[#allocation2 + $0xb4] sm:$0xf]  ;;  %v2312_v55 = vld [vmem:[#allocation2 + $0xb8] sm:$0xf0]  ;;  %p366_p6 = scmp.lt.s32.totalorder %s3093_s17, 1  ;;  %v2311_v57 = vor.u32 %v2830_v51, %v2310_v49  ;;  %v2251_v58 = vor.u32 %v2813_v52, %v2248_v53  ;;  %vm1402_vm0 = vcmask 1041408  }
  0x1a   : > { %616 = vmatpush.bf16.msra.mxu3 %v2331_v38  ;;  %v2238_v59 = vld [vmem:[#allocation2 + $0x20] sm:$0xf]  ;;  %v2812_v60 = vld [vmem:[#allocation2 + $0x24] sm:$0xf0]  ;;  %v2315_v62 = vor.u32 %v2829_v54, %v2312_v55  ;;  %v2811_v0 = vld [vmem:[#allocation2 + $0x24] sm:$0xf] }
  0x1b   : > { %578 = vmatpush.bf16.msra.mxu0 %v2255_v44  ;;  %v2302_v61 = vld [vmem:[#allocation2 + $0xa0] sm:$0xf]  ;;  %v2828_v63 = vld [vmem:[#allocation2 + $0xa4] sm:$0xf0]  ;;  %v2240_v1 = vld [vmem:[#allocation2 + $0x28] sm:$0xf0]  ;;  %v2239_v4 = vor.u32 %v2812_v60, %v2238_v59 }
  0x1c   : > { %591 = vmatpush.bf16.msra.mxu1 %v2319_v45  ;;  %v2827_v2 = vld [vmem:[#allocation2 + $0xa4] sm:$0xf]  ;;  %v2304_v3 = vld [vmem:[#allocation2 + $0xa8] sm:$0xf0]  ;;  %s3341_s17 = smov (!%p366_p6, %s3093_s17), 1  ;;  %v2303_v5 = vor.u32 %v2828_v63, %v2302_v61  ;;  %v2243_v6 = vor.u32 %v2811_v0, %v2240_v1  ;;  %s3020_s26 = smov 116  }
  0x1d   : > { %604 = vmatpush.bf16.msra.mxu2 %v2259_v46  ;;  %v2230_v7 = vld [vmem:[#allocation2 + $0x10] sm:$0xf]  ;;  %v2810_v8 = vld [vmem:[#allocation2 + $0x14] sm:$0xf0]  ;;  %v2307_v10 = vor.u32 %v2827_v2, %v2304_v3  ;;  %v2809_v12 = vld [vmem:[#allocation2 + $0x14] sm:$0xf] }
  0x1e   : > { %617 = vmatpush.bf16.msra.mxu3 %v2323_v50  ;;  %v2294_v9 = vld [vmem:[#allocation2 + $0x90] sm:$0xf]  ;;  %v2826_v11 = vld [vmem:[#allocation2 + $0x94] sm:$0xf0]  ;;  %v2232_v13 = vld [vmem:[#allocation2 + $0x18] sm:$0xf0]  ;;  %v2231_v16 = vor.u32 %v2810_v8, %v2230_v7 }
  0x1f   : > { %579 = vmatpush.bf16.msra.mxu0 %v2247_v56  ;;  %v2825_v14 = vld [vmem:[#allocation2 + $0x94] sm:$0xf]  ;;  %v2296_v15 = vld [vmem:[#allocation2 + $0x98] sm:$0xf0]  ;;  %v2222_v17 = vld [vmem:[#allocation2] sm:$0xf]  ;;  %v2295_v19 = vor.u32 %v2826_v11, %v2294_v9  ;;  %v2235_v20 = vor.u32 %v2809_v12, %v2232_v13 }
  0x20   : > { %592 = vmatpush.bf16.msra.mxu1 %v2311_v57  ;;  %v2808_v18 = vld [vmem:[#allocation2 + $0x4] sm:$0xf0]  ;;  %s2806_s22 = sshll.u32 %s3341_s17, 2  ;;  %v2286_v21 = vld [vmem:[#allocation2 + $0x80] sm:$0xf]  ;;  %v2299_v24 = vor.u32 %v2825_v14, %v2296_v15  ;;  %s3021_s27 = smov 126  }
  0x21   : > { %605 = vmatpush.bf16.msra.mxu2 %v2251_v58  ;;  %v2824_v22 = vld [vmem:[#allocation2 + $0x84] sm:$0xf0]  ;;  %v2807_v23 = vld [vmem:[#allocation2 + $0x4] sm:$0xf]  ;;  %v2224_v25 = vld [vmem:[#allocation2 + $0x8] sm:$0xf0]  ;;  %v2223_v31 = vor.u32 %v2808_v18, %v2222_v17  ;;  %s370_s25 = scalar_lea.vmem %s3329_s0, %s2806_s22 }
  0x22   : > { %618 = vmatpush.bf16.msra.mxu3 %v2315_v62  ;;  %v2823_v26 = vld [vmem:[#allocation2 + $0x84] sm:$0xf]  ;;  %v2288_v27 = vld [vmem:[#allocation2 + $0x88] sm:$0xf0]  ;;  %v2406_v28 = vld [vmem:[#allocation2 + $0x170] sm:$0xf]  ;;  %v2287_v35 = vor.u32 %v2824_v22, %v2286_v21  ;;  %v2227_v36 = vor.u32 %v2807_v23, %v2224_v25 }
  0x23   : > { %580 = vmatpush.bf16.msra.mxu0 %v2239_v4  ;;  %v2854_v29 = vld [vmem:[#allocation2 + $0x174] sm:$0xf0]  ;;  %v2470_v30 = vld [vmem:[#allocation2 + $0x1f0] sm:$0xf]  ;;  %v2853_v33 = vld [vmem:[#allocation2 + $0x174] sm:$0xf]  ;;  %v2291_v39 = vor.u32 %v2823_v26, %v2288_v27 }
  0x24   : > { %593 = vmatpush.bf16.msra.mxu1 %v2303_v5  ;;  %v2870_v32 = vld [vmem:[#allocation2 + $0x1f4] sm:$0xf0]  ;;  %v2408_v34 = vld [vmem:[#allocation2 + $0x178] sm:$0xf0]  ;;  %v2869_v37 = vld [vmem:[#allocation2 + $0x1f4] sm:$0xf]  ;;  %v2407_v40 = vor.u32 %v2854_v29, %v2406_v28 }
  0x25   : > { %606 = vmatpush.bf16.msra.mxu2 %v2243_v6  ;;  %v2472_v38 = vld [vmem:[#allocation2 + $0x1f8] sm:$0xf0]  ;;  %v2471_v41 = vor.u32 %v2870_v32, %v2470_v30  ;;  %v2411_v42 = vor.u32 %v2853_v33, %v2408_v34  ;;  %v2398_v43 = vld [vmem:[#allocation2 + $0x160] sm:$0xf]  ;;  %v2852_v44 = vld [vmem:[#allocation2 + $0x164] sm:$0xf0] }
  0x26   : > { %619 = vmatpush.bf16.msra.mxu3 %v2307_v10  ;;  %v2462_v45 = vld [vmem:[#allocation2 + $0x1e0] sm:$0xf]  ;;  %v2475_v46 = vor.u32 %v2869_v37, %v2472_v38  ;;  %v2868_v47 = vld [vmem:[#allocation2 + $0x1e4] sm:$0xf0]  ;;  %v2851_v48 = vld [vmem:[#allocation2 + $0x164] sm:$0xf]  ;;  %v2399_v53 = vor.u32 %v2852_v44, %v2398_v43 }
  0x27   : > { %581 = vmatpush.bf16.msra.mxu0 %v2231_v16  ;;  %v2400_v49 = vld [vmem:[#allocation2 + $0x168] sm:$0xf0]  ;;  %v2867_v50 = vld [vmem:[#allocation2 + $0x1e4] sm:$0xf]  ;;  %v3110_v52 = vld [vmem:[%s370_s25] sm:$0xf]  ;;  %v2463_v54 = vor.u32 %v2868_v47, %v2462_v45 }
  0x28   : > { %594 = vmatpush.bf16.msra.mxu1 %v2295_v19  ;;  %v2464_v51 = vld [vmem:[#allocation2 + $0x1e8] sm:$0xf0]  ;;  %410 = vst [vmem:[#allocation1] ss:$4 sm:$0xff] %v3110_v52  ;;  %v2403_v55 = vor.u32 %v2851_v48, %v2400_v49  ;;  %v2390_v56 = vld [vmem:[#allocation2 + $0x150] sm:$0xf] }
  0x29   : > { %607 = vmatpush.bf16.msra.mxu2 %v2235_v20  ;;  %v2850_v57 = vld [vmem:[#allocation2 + $0x154] sm:$0xf0]  ;;  %v2454_v58 = vld [vmem:[#allocation2 + $0x1d0] sm:$0xf]  ;;  %v2467_v59 = vor.u32 %v2867_v50, %v2464_v51  ;;  %v2849_v61 = vld [vmem:[#allocation2 + $0x154] sm:$0xf] }
  0x2a   : > { %620 = vmatpush.bf16.msra.mxu3 %v2299_v24  ;;  %v2866_v60 = vld [vmem:[#allocation2 + $0x1d4] sm:$0xf0]  ;;  %v2392_v62 = vld [vmem:[#allocation2 + $0x158] sm:$0xf0]  ;;  %v2865_v63 = vld [vmem:[#allocation2 + $0x1d4] sm:$0xf]  ;;  %v2391_v1 = vor.u32 %v2850_v57, %v2390_v56 }
  0x2b   : > { %582 = vmatpush.bf16.msra.mxu0 %v2223_v31  ;;  %v2456_v0 = vld [vmem:[#allocation2 + $0x1d8] sm:$0xf0]  ;;  %v2382_v2 = vld [vmem:[#allocation2 + $0x140] sm:$0xf]  ;;  %v2848_v3 = vld [vmem:[#allocation2 + $0x144] sm:$0xf0]  ;;  %v2455_v4 = vor.u32 %v2866_v60, %v2454_v58  ;;  %v2395_v5 = vor.u32 %v2849_v61, %v2392_v62 }
  0x2c   : > { %595 = vmatpush.bf16.msra.mxu1 %v2287_v35  ;;  %v2446_v6 = vld [vmem:[#allocation2 + $0x1c0] sm:$0xf]  ;;  %v2864_v7 = vld [vmem:[#allocation2 + $0x1c4] sm:$0xf0]  ;;  %v2847_v8 = vld [vmem:[#allocation2 + $0x144] sm:$0xf]  ;;  %v2459_v9 = vor.u32 %v2865_v63, %v2456_v0  ;;  %v2383_v15 = vor.u32 %v2848_v3, %v2382_v2 }
  0x2d   : > { %608 = vmatpush.bf16.msra.mxu2 %v2227_v36  ;;  %v2384_v10 = vld [vmem:[#allocation2 + $0x148] sm:$0xf0]  ;;  %v2863_v11 = vld [vmem:[#allocation2 + $0x1c4] sm:$0xf]  ;;  %v2447_v16 = vor.u32 %v2864_v7, %v2446_v6  ;;  %v2374_v18 = vld [vmem:[#allocation2 + $0x130] sm:$0xf] }
  0x2e   : > { %621 = vmatpush.bf16.msra.mxu3 %v2291_v39  ;;  %v2448_v12 = vld [vmem:[#allocation2 + $0x1c8] sm:$0xf0]  ;;  %v2387_v17 = vor.u32 %v2847_v8, %v2384_v10  ;;  %v2846_v19 = vld [vmem:[#allocation2 + $0x134] sm:$0xf0]  ;;  %v2438_v20 = vld [vmem:[#allocation2 + $0x1b0] sm:$0xf] }
  0x2f   : > { %825 = vmatpush.bf16.msrb.mxu0 %v2407_v40  ;;  %v411_v13 = vld.sshfl [vmem:[#allocation1] sm:$0xff pattern:$0x73625140]  ;;  %v412_v14 = vld.sshfl [vmem:[#allocation1 + $0x8] sm:$0xff pattern:$0x73625140]  ;;  %v2451_v21 = vor.u32 %v2863_v11, %v2448_v12  ;;  %v2375_v27 = vor.u32 %v2846_v19, %v2374_v18 }
  0x30   : > { %838 = vmatpush.bf16.msrb.mxu1 %v2471_v41  ;;  %609 = vmatmul.bf16.vlgmr.msra.gmra.mxu2 %v411_v13  ;;  %660 = vst [vmem:[#allocation1] ss:$4 sm:$0xff] %v3110_v52  ;;  %v2862_v22 = vld [vmem:[#allocation2 + $0x1b4] sm:$0xf0]  ;;  %v2845_v23 = vld [vmem:[#allocation2 + $0x134] sm:$0xf] }
  0x31   : > { %851 = vmatpush.bf16.msrb.mxu2 %v2411_v42  ;;  %v2376_v24 = vld [vmem:[#allocation2 + $0x138] sm:$0xf0]  ;;  %583 = vmatmul.bf16.vlgmr.msra.gmra.mxu0 %v411_v13  ;;  %v2861_v25 = vld [vmem:[#allocation2 + $0x1b4] sm:$0xf]  ;;  %v2366_v28 = vld [vmem:[#allocation2 + $0x120] sm:$0xf]  ;;  %v2439_v30 = vor.u32 %v2862_v22, %v2438_v20 }
  0x32   : > { %864 = vmatpush.bf16.msrb.mxu3 %v2475_v46  ;;  %v2440_v26 = vld [vmem:[#allocation2 + $0x1b8] sm:$0xf0]  ;;  %596 = vmatmul.bf16.vlgmr.msra.gmra.mxu1 %v412_v14  ;;  %v2844_v29 = vld [vmem:[#allocation2 + $0x124] sm:$0xf0]  ;;  %v2379_v31 = vor.u32 %v2845_v23, %v2376_v24  ;;  %v2430_v32 = vld [vmem:[#allocation2 + $0x1a0] sm:$0xf] }
  0x33   : > { %826 = vmatpush.bf16.msrb.mxu0 %v2399_v53  ;;  %622 = vmatmul.bf16.vlgmr.msra.gmra.mxu3 %v412_v14  ;;  %v2860_v33 = vld [vmem:[#allocation2 + $0x1a4] sm:$0xf0]  ;;  %v2843_v34 = vld [vmem:[#allocation2 + $0x124] sm:$0xf]  ;;  %v2443_v35 = vor.u32 %v2861_v25, %v2440_v26  ;;  %v2368_v36 = vld [vmem:[#allocation2 + $0x128] sm:$0xf0]  ;;  %v2367_v41 = vor.u32 %v2844_v29, %v2366_v28 }
  0x34   : > { %839 = vmatpush.bf16.msrb.mxu1 %v2463_v54  ;;  %v2859_v37 = vld [vmem:[#allocation2 + $0x1a4] sm:$0xf]  ;;  %v2432_v38 = vld [vmem:[#allocation2 + $0x1a8] sm:$0xf0]  ;;  %v2431_v42 = vor.u32 %v2860_v33, %v2430_v32  ;;  %v2371_v43 = vor.u32 %v2843_v34, %v2368_v36  ;;  %v2358_v44 = vld [vmem:[#allocation2 + $0x110] sm:$0xf] }
  0x35   : > { %852 = vmatpush.bf16.msrb.mxu2 %v2403_v55  ;;  %v2842_v45 = vld [vmem:[#allocation2 + $0x114] sm:$0xf0]  ;;  %v2422_v46 = vld [vmem:[#allocation2 + $0x190] sm:$0xf]  ;;  %v2435_v47 = vor.u32 %v2859_v37, %v2432_v38  ;;  %v2841_v49 = vld [vmem:[#allocation2 + $0x114] sm:$0xf] }
  0x36   : > { %865 = vmatpush.bf16.msrb.mxu3 %v2467_v59  ;;  %v2858_v48 = vld [vmem:[#allocation2 + $0x194] sm:$0xf0]  ;;  %v2360_v50 = vld [vmem:[#allocation2 + $0x118] sm:$0xf0]  ;;  %v2857_v51 = vld [vmem:[#allocation2 + $0x194] sm:$0xf]  ;;  %v2359_v54 = vor.u32 %v2842_v45, %v2358_v44 }
  0x37   : > { %827 = vmatpush.bf16.msrb.mxu0 %v2391_v1  ;;  %v3114_v39 = vld.sshfl [vmem:[#allocation1] sm:$0xff pattern:$0x73625140]  ;;  %v3116_v40 = vld.sshfl [vmem:[#allocation1 + $0x8] sm:$0xff pattern:$0x73625140]  ;;  %v2423_v57 = vor.u32 %v2858_v48, %v2422_v46  ;;  %v2363_v58 = vor.u32 %v2841_v49, %v2360_v50 }
  0x38   : > { %840 = vmatpush.bf16.msrb.mxu1 %v2455_v4  ;;  %910 = vst [vmem:[#allocation1] ss:$4 sm:$0xff] %v3110_v52  ;;  %v2424_v53 = vld [vmem:[#allocation2 + $0x198] sm:$0xf0]  ;;  %v2350_v55 = vld [vmem:[#allocation2 + $0x100] sm:$0xf] }
  0x39   : > { %853 = vmatpush.bf16.msrb.mxu2 %v2395_v5  ;;  %v2840_v56 = vld [vmem:[#allocation2 + $0x104] sm:$0xf0]  ;;  %v2414_v59 = vld [vmem:[#allocation2 + $0x180] sm:$0xf]  ;;  %v2839_v61 = vld [vmem:[#allocation2 + $0x104] sm:$0xf]  ;;  %v2427_v62 = vor.u32 %v2857_v51, %v2424_v53 }
  0x3a   : > { %866 = vmatpush.bf16.msrb.mxu3 %v2459_v9  ;;  %v2856_v60 = vld [vmem:[#allocation2 + $0x184] sm:$0xf0]  ;;  %v2352_v63 = vld [vmem:[#allocation2 + $0x108] sm:$0xf0]  ;;  %v2855_v0 = vld [vmem:[#allocation2 + $0x184] sm:$0xf]  ;;  %v2351_v5 = vor.u32 %v2840_v56, %v2350_v55 }
  0x3b   : > { %828 = vmatpush.bf16.msrb.mxu0 %v2383_v15  ;;  %v2416_v1 = vld [vmem:[#allocation2 + $0x188] sm:$0xf0]  ;;  %v2534_v2 = vld [vmem:[#allocation2 + $0x270] sm:$0xf]  ;;  %v2886_v3 = vld [vmem:[#allocation2 + $0x274] sm:$0xf0]  ;;  %v2415_v9 = vor.u32 %v2856_v60, %v2414_v59  ;;  %v2355_v10 = vor.u32 %v2839_v61, %v2352_v63 }
  0x3c   : > { %841 = vmatpush.bf16.msrb.mxu1 %v2447_v16  ;;  %v2598_v4 = vld [vmem:[#allocation2 + $0x2f0] sm:$0xf]  ;;  %v2902_v6 = vld [vmem:[#allocation2 + $0x2f4] sm:$0xf0]  ;;  %v2885_v7 = vld [vmem:[#allocation2 + $0x274] sm:$0xf]  ;;  %v2419_v13 = vor.u32 %v2855_v0, %v2416_v1  ;;  %v2535_v14 = vor.u32 %v2886_v3, %v2534_v2 }
  0x3d   : > { %854 = vmatpush.bf16.msrb.mxu2 %v2387_v17  ;;  %v2536_v8 = vld [vmem:[#allocation2 + $0x278] sm:$0xf0]  ;;  %v2901_v11 = vld [vmem:[#allocation2 + $0x2f4] sm:$0xf]  ;;  %v2599_v15 = vor.u32 %v2902_v6, %v2598_v4  ;;  %v2526_v17 = vld [vmem:[#allocation2 + $0x260] sm:$0xf] }
  0x3e   : > { %867 = vmatpush.bf16.msrb.mxu3 %v2451_v21  ;;  %v2600_v12 = vld [vmem:[#allocation2 + $0x2f8] sm:$0xf0]  ;;  %v2539_v16 = vor.u32 %v2885_v7, %v2536_v8  ;;  %v2884_v18 = vld [vmem:[#allocation2 + $0x264] sm:$0xf0]  ;;  %v2590_v19 = vld [vmem:[#allocation2 + $0x2e0] sm:$0xf] }
  0x3f   : > { %829 = vmatpush.bf16.msrb.mxu0 %v2375_v27  ;;  %v2603_v20 = vor.u32 %v2901_v11, %v2600_v12  ;;  %v2900_v21 = vld [vmem:[#allocation2 + $0x2e4] sm:$0xf0]  ;;  %v2883_v22 = vld [vmem:[#allocation2 + $0x264] sm:$0xf]  ;;  %v2528_v23 = vld [vmem:[#allocation2 + $0x268] sm:$0xf0]  ;;  %v2527_v26 = vor.u32 %v2884_v18, %v2526_v17 }
  0x40   : > { %842 = vmatpush.bf16.msrb.mxu1 %v2439_v30  ;;  %v2899_v24 = vld [vmem:[#allocation2 + $0x2e4] sm:$0xf]  ;;  %v2592_v25 = vld [vmem:[#allocation2 + $0x2e8] sm:$0xf0]  ;;  %v2591_v27 = vor.u32 %v2900_v21, %v2590_v19  ;;  %v2531_v28 = vor.u32 %v2883_v22, %v2528_v23  ;;  %v2518_v29 = vld [vmem:[#allocation2 + $0x250] sm:$0xf] }
  0x41   : > { %855 = vmatpush.bf16.msrb.mxu2 %v2379_v31  ;;  %v2882_v30 = vld [vmem:[#allocation2 + $0x254] sm:$0xf0]  ;;  %v2582_v31 = vld [vmem:[#allocation2 + $0x2d0] sm:$0xf]  ;;  %v2595_v32 = vor.u32 %v2899_v24, %v2592_v25  ;;  %v2881_v34 = vld [vmem:[#allocation2 + $0x254] sm:$0xf] }
  0x42   : > { %868 = vmatpush.bf16.msrb.mxu3 %v2443_v35  ;;  %v2898_v33 = vld [vmem:[#allocation2 + $0x2d4] sm:$0xf0]  ;;  %v2520_v35 = vld [vmem:[#allocation2 + $0x258] sm:$0xf0]  ;;  %v2897_v36 = vld [vmem:[#allocation2 + $0x2d4] sm:$0xf]  ;;  %v2519_v38 = vor.u32 %v2882_v30, %v2518_v29 }
  0x43   : > { %830 = vmatpush.bf16.msrb.mxu0 %v2367_v41  ;;  %v2584_v37 = vld [vmem:[#allocation2 + $0x2d8] sm:$0xf0]  ;;  %v2583_v41 = vor.u32 %v2898_v33, %v2582_v31  ;;  %v2880_v44 = vld [vmem:[#allocation2 + $0x244] sm:$0xf0]  ;;  %v2574_v45 = vld [vmem:[#allocation2 + $0x2c0] sm:$0xf] }
  0x44   : > { %843 = vmatpush.bf16.msrb.mxu1 %v2431_v42  ;;  %v2523_v42 = vor.u32 %v2881_v34, %v2520_v35  ;;  %v2587_v46 = vor.u32 %v2897_v36, %v2584_v37  ;;  %v2879_v48 = vld [vmem:[#allocation2 + $0x244] sm:$0xf]  ;;  %v2512_v49 = vld [vmem:[#allocation2 + $0x248] sm:$0xf0]  ;;  %v2502_v53 = vld [vmem:[#allocation2 + $0x230] sm:$0xf] }
  0x45   : > { %856 = vmatpush.bf16.msrb.mxu2 %v2371_v43  ;;  %v2510_v43 = vld [vmem:[#allocation2 + $0x240] sm:$0xf]  ;;  %v2895_v50 = vld [vmem:[#allocation2 + $0x2c4] sm:$0xf]  ;;  %v2515_v56 = vor.u32 %v2879_v48, %v2512_v49  ;;  %v2504_v59 = vld [vmem:[#allocation2 + $0x238] sm:$0xf0] }
  0x46   : > { %869 = vmatpush.bf16.msrb.mxu3 %v2435_v47  ;;  %v2896_v47 = vld [vmem:[#allocation2 + $0x2c4] sm:$0xf0]  ;;  %v2511_v51 = vor.u32 %v2880_v44, %v2510_v43  ;;  %v3123_v61 = vld.sshfl [vmem:[#allocation1] sm:$0xff pattern:$0x73625140]  ;;  %s3022_s28 = smov 127  }
  0x47   : > { %831 = vmatpush.bf16.msrb.mxu0 %v2359_v54  ;;  %v2878_v54 = vld [vmem:[#allocation2 + $0x234] sm:$0xf0]  ;;  %v2575_v55 = vor.u32 %v2896_v47, %v2574_v45  ;;  %v2893_v63 = vld [vmem:[#allocation2 + $0x2b4] sm:$0xf]  ;;  %v2568_v0 = vld [vmem:[#allocation2 + $0x2b8] sm:$0xf0] }
  0x48   : > { %844 = vmatpush.bf16.msrb.mxu1 %v2423_v57  ;;  %v2894_v57 = vld [vmem:[#allocation2 + $0x2b4] sm:$0xf0]  ;;  %v2503_v1 = vor.u32 %v2878_v54, %v2502_v53  ;;  %v2494_v4 = vld [vmem:[#allocation2 + $0x220] sm:$0xf]  ;;  %v2571_v7 = vor.u32 %v2893_v63, %v2568_v0  ;;  %v2892_v8 = vld [vmem:[#allocation2 + $0x2a4] sm:$0xf0] }
  0x49   : > { %857 = vmatpush.bf16.msrb.mxu2 %v2363_v58  ;;  %v2877_v58 = vld [vmem:[#allocation2 + $0x234] sm:$0xf]  ;;  %v2558_v6 = vld [vmem:[#allocation2 + $0x2a0] sm:$0xf]  ;;  %v2891_v11 = vld [vmem:[#allocation2 + $0x2a4] sm:$0xf] }
  0x4a   : > { %870 = vmatpush.bf16.msrb.mxu3 %v2427_v62  ;;  %v3125_v62 = vld.sshfl [vmem:[#allocation1 + $0x8] sm:$0xff pattern:$0x73625140]  ;;  %v2507_v3 = vor.u32 %v2877_v58, %v2504_v59  ;;  %v2560_v12 = vld [vmem:[#allocation2 + $0x2a8] sm:$0xf0]  ;;  %s3023_s29 = smov 114  }
  0x4b   : > { %832 = vmatpush.bf16.msrb.mxu0 %v2351_v5  ;;  %1160 = vst [vmem:[#allocation1] ss:$4 sm:$0xff] %v3110_v52  ;;  %v2876_v5 = vld [vmem:[#allocation2 + $0x224] sm:$0xf0]  ;;  %v2559_v52 = vor.u32 %v2892_v8, %v2558_v6  ;;  %v2550_v17 = vld [vmem:[#allocation2 + $0x290] sm:$0xf]  ;;  %v2563_v18 = vor.u32 %v2891_v11, %v2560_v12 }
  0x4c   : > { %845 = vmatpush.bf16.msrb.mxu1 %v2415_v9  ;;  %v2875_v9 = vld [vmem:[#allocation2 + $0x224] sm:$0xf]  ;;  %v2890_v19 = vld [vmem:[#allocation2 + $0x294] sm:$0xf0]  ;;  %v2488_v21 = vld [vmem:[#allocation2 + $0x218] sm:$0xf0] }
  0x4d   : > { %858 = vmatpush.bf16.msrb.mxu2 %v2355_v10  ;;  %v2496_v10 = vld [vmem:[#allocation2 + $0x228] sm:$0xf0]  ;;  %v2889_v22 = vld [vmem:[#allocation2 + $0x294] sm:$0xf]  ;;  %v2552_v23 = vld [vmem:[#allocation2 + $0x298] sm:$0xf0] }
  0x4e   : > { %871 = vmatpush.bf16.msrb.mxu3 %v2419_v13  ;;  %833 = vmatmul.bf16.vlgmr.msrb.gmra.mxu0 %v3114_v39  ;;  %v2495_v13 = vor.u32 %v2876_v5, %v2494_v4  ;;  %v2478_v25 = vld [vmem:[#allocation2 + $0x200] sm:$0xf]  ;;  %v2888_v30 = vld [vmem:[#allocation2 + $0x284] sm:$0xf0]  ;;  %v2871_v31 = vld [vmem:[#allocation2 + $0x204] sm:$0xf] }
  0x4f   : > { %1075 = vmatpush.bf16.msra.mxu0 %v2535_v14  ;;  %846 = vmatmul.bf16.vlgmr.msrb.gmra.mxu1 %v3116_v40  ;;  %v2499_v14 = vor.u32 %v2875_v9, %v2496_v10  ;;  %v2542_v29 = vld [vmem:[#allocation2 + $0x280] sm:$0xf]  ;;  %v2480_v33 = vld [vmem:[#allocation2 + $0x208] sm:$0xf0]  ;;  %v2887_v34 = vld [vmem:[#allocation2 + $0x284] sm:$0xf] }
  0x50   : > { %1088 = vmatpush.bf16.msra.mxu1 %v2599_v15  ;;  %859 = vmatmul.bf16.vlgmr.msrb.gmra.mxu2 %v3114_v39  ;;  %v2576_v39 = vld [vmem:[#allocation2 + $0x2c8] sm:$0xf0]  ;;  %v2486_v15 = vld [vmem:[#allocation2 + $0x210] sm:$0xf]  ;;  %v2918_v37 = vld [vmem:[#allocation2 + $0x374] sm:$0xf0]  ;;  %v2543_v45 = vor.u32 %v2888_v30, %v2542_v29 }
  0x51   : > { %1101 = vmatpush.bf16.msra.mxu2 %v2539_v16  ;;  %872 = vmatmul.bf16.vlgmr.msrb.gmra.mxu3 %v3116_v40  ;;  %v2566_v40 = vld [vmem:[#allocation2 + $0x2b0] sm:$0xf]  ;;  %v2579_v60 = vor.u32 %v2895_v50, %v2576_v39  ;;  %v2874_v16 = vld [vmem:[#allocation2 + $0x214] sm:$0xf0]  ;;  %v2544_v35 = vld [vmem:[#allocation2 + $0x288] sm:$0xf0] }
  0x52   : > { %1114 = vmatpush.bf16.msra.mxu3 %v2603_v20  ;;  %v2567_v2 = vor.u32 %v2894_v57, %v2566_v40  ;;  %v2873_v20 = vld [vmem:[#allocation2 + $0x214] sm:$0xf]  ;;  %v2487_v24 = vor.u32 %v2874_v16, %v2486_v15  ;;  %v2662_v36 = vld [vmem:[#allocation2 + $0x370] sm:$0xf]  ;;  %v2664_v44 = vld [vmem:[#allocation2 + $0x378] sm:$0xf0]  ;;  %v2547_v49 = vor.u32 %v2887_v34, %v2544_v35 }
  0x53   : > { %1076 = vmatpush.bf16.msra.mxu0 %v2527_v26  ;;  %v2872_v26 = vld [vmem:[#allocation2 + $0x204] sm:$0xf0]  ;;  %v2917_v43 = vld [vmem:[#allocation2 + $0x374] sm:$0xf]  ;;  %v2728_v48 = vld [vmem:[#allocation2 + $0x3f8] sm:$0xf0]  ;;  %v2663_v50 = vor.u32 %v2918_v37, %v2662_v36 }
  0x54   : > { %1089 = vmatpush.bf16.msra.mxu1 %v2591_v27  ;;  %v2551_v27 = vor.u32 %v2890_v19, %v2550_v17  ;;  %v2933_v47 = vld [vmem:[#allocation2 + $0x3f4] sm:$0xf]  ;;  %v2654_v53 = vld [vmem:[#allocation2 + $0x360] sm:$0xf]  ;;  %v2916_v54 = vld [vmem:[#allocation2 + $0x364] sm:$0xf0] }
  0x55   : > { %1102 = vmatpush.bf16.msra.mxu2 %v2531_v28  ;;  %v2491_v28 = vor.u32 %v2873_v20, %v2488_v21  ;;  %v2718_v40 = vld [vmem:[#allocation2 + $0x3e0] sm:$0xf]  ;;  %v2915_v57 = vld [vmem:[#allocation2 + $0x364] sm:$0xf]  ;;  %v2656_v58 = vld [vmem:[#allocation2 + $0x368] sm:$0xf0]  ;;  %v2655_v63 = vor.u32 %v2916_v54, %v2654_v53 }
  0x56   : > { %1115 = vmatpush.bf16.msra.mxu3 %v2595_v32  ;;  %v2555_v32 = vor.u32 %v2889_v22, %v2552_v23  ;;  %v2931_v59 = vld [vmem:[#allocation2 + $0x3e4] sm:$0xf]  ;;  %v2710_v4 = vld [vmem:[#allocation2 + $0x3d0] sm:$0xf]  ;;  %v2930_v6 = vld [vmem:[#allocation2 + $0x3d4] sm:$0xf0] }
  0x57   : > { %1077 = vmatpush.bf16.msra.mxu0 %v2519_v38  ;;  %v2726_v38 = vld [vmem:[#allocation2 + $0x3f0] sm:$0xf]  ;;  %v2648_v8 = vld [vmem:[#allocation2 + $0x358] sm:$0xf0]  ;;  %v2929_v9 = vld [vmem:[#allocation2 + $0x3d4] sm:$0xf]  ;;  %v2711_v12 = vor.u32 %v2930_v6, %v2710_v4 }
  0x58   : > { %1090 = vmatpush.bf16.msra.mxu1 %v2583_v41  ;;  %v2479_v41 = vor.u32 %v2872_v26, %v2478_v25  ;;  %v2712_v10 = vld [vmem:[#allocation2 + $0x3d8] sm:$0xf0]  ;;  %v2702_v15 = vld [vmem:[#allocation2 + $0x3c0] sm:$0xf]  ;;  %v2928_v17 = vld [vmem:[#allocation2 + $0x3c4] sm:$0xf0] }
  0x59   : > { %1103 = vmatpush.bf16.msra.mxu2 %v2523_v42  ;;  %v2934_v42 = vld [vmem:[#allocation2 + $0x3f4] sm:$0xf0]  ;;  %v2715_v16 = vor.u32 %v2929_v9, %v2712_v10  ;;  %v2640_v19 = vld [vmem:[#allocation2 + $0x348] sm:$0xf0]  ;;  %v2927_v20 = vld [vmem:[#allocation2 + $0x3c4] sm:$0xf]  ;;  %v2703_v22 = vor.u32 %v2928_v17, %v2702_v15 }
  0x5a   : > { %1116 = vmatpush.bf16.msra.mxu3 %v2587_v46  ;;  %v2483_v46 = vor.u32 %v2871_v31, %v2480_v33  ;;  %v2727_v39 = vor.u32 %v2934_v42, %v2726_v38  ;;  %v2704_v21 = vld [vmem:[#allocation2 + $0x3c8] sm:$0xf0]  ;;  %v2630_v23 = vld [vmem:[#allocation2 + $0x330] sm:$0xf]  ;;  %v2632_v29 = vld [vmem:[#allocation2 + $0x338] sm:$0xf0] }
  0x5b   : > { %1078 = vmatpush.bf16.msra.mxu0 %v2511_v51  ;;  %v2667_v51 = vor.u32 %v2917_v43, %v2664_v44  ;;  %v2694_v25 = vld [vmem:[#allocation2 + $0x3b0] sm:$0xf]  ;;  %v2707_v26 = vor.u32 %v2927_v20, %v2704_v21  ;;  %v2925_v30 = vld [vmem:[#allocation2 + $0x3b4] sm:$0xf]  ;;  %v2696_v31 = vld [vmem:[#allocation2 + $0x3b8] sm:$0xf0] }
  0x5c   : > { %1091 = vmatpush.bf16.msra.mxu1 %v2575_v55  ;;  %v2731_v55 = vor.u32 %v2933_v47, %v2728_v48  ;;  %v2622_v35 = vld [vmem:[#allocation2 + $0x320] sm:$0xf]  ;;  %v2908_v36 = vld [vmem:[#allocation2 + $0x324] sm:$0xf0]  ;;  %v2699_v38 = vor.u32 %v2925_v30, %v2696_v31  ;;  %v2907_v42 = vld [vmem:[#allocation2 + $0x324] sm:$0xf] }
  0x5d   : > { %1104 = vmatpush.bf16.msra.mxu2 %v2515_v56  ;;  %v2932_v56 = vld [vmem:[#allocation2 + $0x3e4] sm:$0xf0]  ;;  %v2686_v37 = vld [vmem:[#allocation2 + $0x3a0] sm:$0xf]  ;;  %v2624_v43 = vld [vmem:[#allocation2 + $0x328] sm:$0xf0] }
  0x5e   : > { %1117 = vmatpush.bf16.msra.mxu3 %v2579_v60  ;;  %v2720_v60 = vld [vmem:[#allocation2 + $0x3e8] sm:$0xf0]  ;;  %v2719_v0 = vor.u32 %v2932_v56, %v2718_v40  ;;  %v2923_v44 = vld [vmem:[#allocation2 + $0x3a4] sm:$0xf]  ;;  %v2627_v48 = vor.u32 %v2907_v42, %v2624_v43  ;;  %v2922_v53 = vld [vmem:[#allocation2 + $0x394] sm:$0xf0] }
  0x5f   : > { %1079 = vmatpush.bf16.msra.mxu0 %v2503_v1  ;;  %v2659_v1 = vor.u32 %v2915_v57, %v2656_v58  ;;  %v2723_v5 = vor.u32 %v2931_v59, %v2720_v60  ;;  %v2905_v54 = vld [vmem:[#allocation2 + $0x314] sm:$0xf]  ;;  %v2616_v40 = vld [vmem:[#allocation2 + $0x318] sm:$0xf0]  ;;  %v2606_v60 = vld [vmem:[#allocation2 + $0x300] sm:$0xf] }
  0x60   : > { %1092 = vmatpush.bf16.msra.mxu1 %v2567_v2  ;;  %v2646_v2 = vld [vmem:[#allocation2 + $0x350] sm:$0xf]  ;;  %v2680_v56 = vld [vmem:[#allocation2 + $0x398] sm:$0xf0]  ;;  %v2619_v59 = vor.u32 %v2905_v54, %v2616_v40  ;;  %v2608_v4 = vld [vmem:[#allocation2 + $0x308] sm:$0xf0] }
  0x61   : > { %1105 = vmatpush.bf16.msra.mxu2 %v2507_v3  ;;  %v2914_v3 = vld [vmem:[#allocation2 + $0x354] sm:$0xf0]  ;;  %v2672_v6 = vld [vmem:[#allocation2 + $0x388] sm:$0xf0]  ;;  %s3024_s30 = smov 115   ;;  %s3025_s11 = smov 104  }
  0x62   : > { %1118 = vmatpush.bf16.msra.mxu3 %v2571_v7  ;;  %v2913_v7 = vld [vmem:[#allocation2 + $0x354] sm:$0xf]  ;;  %v2647_v11 = vor.u32 %v2914_v3, %v2646_v2  ;;  %v2920_v2 = vld [vmem:[#allocation2 + $0x384] sm:$0xf0]  ;;  %v2903_v3 = vld [vmem:[#allocation2 + $0x304] sm:$0xf] }
  0x63   : > { %1080 = vmatpush.bf16.msra.mxu0 %v2495_v13  ;;  %v2651_v13 = vor.u32 %v2913_v7, %v2648_v8  ;;  %v2611_v9 = vor.u32 %v2903_v3, %v2608_v4  ;;  %s3026_s12 = smov 102   ;;  %s3027_s14 = smov 103   ;;  %vm1398_vm1 = vcmask 31744   ;;  %vm1521_vm2 = vcmask 949248  }
  0x64   : > { %1093 = vmatpush.bf16.msra.mxu1 %v2559_v52  ;;  %v2638_v52 = vld [vmem:[#allocation2 + $0x340] sm:$0xf]  ;;  %vm1476_vm3 = vcmask 1031168   ;;  %vm1396_vm4 = vcmask 1039360   ;;  %vm1566_vm5 = vcmask 941056   ;;  %vm1611_vm6 = vcmask 932864  }
  0x65   : > { %1106 = vmatpush.bf16.msra.mxu2 %v2499_v14  ;;  %v2912_v14 = vld [vmem:[#allocation2 + $0x344] sm:$0xf0]  ;;  %vm1656_vm7 = vcmask 850944   ;;  %vm1701_vm8 = vcmask 842752   ;;  %vm1746_vm9 = vcmask 834560   ;;  %vm2126_vm10 = vcmask 1042432  }
  0x66   : > { %1119 = vmatpush.bf16.msra.mxu3 %v2563_v18  ;;  %v2911_v18 = vld [vmem:[#allocation2 + $0x344] sm:$0xf]  ;;  %vm2122_vm11 = vcmask 965632   ;;  %vm2143_vm12 = vcmask 519168  }
  0x67   : > { %1081 = vmatpush.bf16.msra.mxu0 %v2487_v24  ;;  %v2910_v24 = vld [vmem:[#allocation2 + $0x334] sm:$0xf0] }
  0x68   : > { %1094 = vmatpush.bf16.msra.mxu1 %v2551_v27  ;;  %v2926_v27 = vld [vmem:[#allocation2 + $0x3b4] sm:$0xf0] }
  0x69   : > { %1107 = vmatpush.bf16.msra.mxu2 %v2491_v28  ;;  %v2909_v28 = vld [vmem:[#allocation2 + $0x334] sm:$0xf]  ;;  %v2695_v33 = vor.u32 %v2926_v27, %v2694_v25 }
  0x6a   : > { %1120 = vmatpush.bf16.msra.mxu3 %v2555_v32  ;;  %v2631_v32 = vor.u32 %v2910_v24, %v2630_v23  ;;  %v2635_v34 = vor.u32 %v2909_v28, %v2632_v29 }
  0x6b   : > { %1082 = vmatpush.bf16.msra.mxu0 %v2479_v41  ;;  %v2924_v41 = vld [vmem:[#allocation2 + $0x3a4] sm:$0xf0] }
  0x6c   : > { %1095 = vmatpush.bf16.msra.mxu1 %v2543_v45  ;;  %v2688_v45 = vld [vmem:[#allocation2 + $0x3a8] sm:$0xf0]  ;;  %v2687_v47 = vor.u32 %v2924_v41, %v2686_v37 }
  0x6d   : > { %1108 = vmatpush.bf16.msra.mxu2 %v2483_v46  ;;  %v2623_v46 = vor.u32 %v2908_v36, %v2622_v35 }
  0x6e   : > { %1121 = vmatpush.bf16.msra.mxu3 %v2547_v49  ;;  %1083 = vmatmul.bf16.vlgmr.msra.gmra.mxu0 %v3123_v61  ;;  %v2614_v49 = vld [vmem:[#allocation2 + $0x310] sm:$0xf] }
  0x6f   : > { %1325 = vmatpush.bf16.msrb.mxu0 %v2663_v50  ;;  %1096 = vmatmul.bf16.vlgmr.msra.gmra.mxu1 %v3125_v62  ;;  %v2906_v50 = vld [vmem:[#allocation2 + $0x314] sm:$0xf0] }
  0x70   : > { %1338 = vmatpush.bf16.msrb.mxu1 %v2727_v39  ;;  %1109 = vmatmul.bf16.vlgmr.msra.gmra.mxu2 %v3123_v61  ;;  %v2639_v61 = vor.u32 %v2912_v14, %v2638_v52  ;;  %v2678_v39 = vld [vmem:[#allocation2 + $0x390] sm:$0xf]  ;;  %v2615_v57 = vor.u32 %v2906_v50, %v2614_v49 }
  0x71   : > { %1351 = vmatpush.bf16.msrb.mxu2 %v2667_v51  ;;  %1122 = vmatmul.bf16.vlgmr.msra.gmra.mxu3 %v3125_v62  ;;  %v2643_v62 = vor.u32 %v2911_v18, %v2640_v19  ;;  %v2691_v51 = vor.u32 %v2923_v44, %v2688_v45  ;;  %v2679_v58 = vor.u32 %v2922_v53, %v2678_v39 }
  0x72   : > { %1364 = vmatpush.bf16.msrb.mxu3 %v2731_v55  ;;  %v2921_v55 = vld [vmem:[#allocation2 + $0x394] sm:$0xf] }
  0x73   : > { %1326 = vmatpush.bf16.msrb.mxu0 %v2655_v63  ;;  %v2904_v63 = vld [vmem:[#allocation2 + $0x304] sm:$0xf0] }
  0x74   : > { %1339 = vmatpush.bf16.msrb.mxu1 %v2719_v0  ;;  %v2670_v0 = vld [vmem:[#allocation2 + $0x380] sm:$0xf]  ;;  %v2607_v7 = vor.u32 %v2904_v63, %v2606_v60 }
  0x75   : > { %1352 = vmatpush.bf16.msrb.mxu2 %v2659_v1  ;;  %v2683_v1 = vor.u32 %v2921_v55, %v2680_v56  ;;  %v2671_v8 = vor.u32 %v2920_v2, %v2670_v0  ;;  %v1384_v2 = vld [vmem:[%s3331_s2] sm:$0x3] }
  0x76   : > { %1365 = vmatpush.bf16.msrb.mxu3 %v2723_v5  ;;  %v2919_v5 = vld [vmem:[#allocation2 + $0x384] sm:$0xf] }
  0x77   : > { %1327 = vmatpush.bf16.msrb.mxu0 %v2647_v11  ;;  %v2675_v10 = vor.u32 %v2919_v5, %v2672_v6  ;;  %v1161_v11 = vld.sshfl [vmem:[#allocation1] sm:$0xff pattern:$0x73625140] }
  0x78   : > { %1340 = vmatpush.bf16.msrb.mxu1 %v2711_v12  ;;  %v1162_v12 = vld.sshfl [vmem:[#allocation1 + $0x8] sm:$0xff pattern:$0x73625140] }
  0x79   : > { %1353 = vmatpush.bf16.msrb.mxu2 %v2651_v13 }
  0x7a   : > { %1366 = vmatpush.bf16.msrb.mxu3 %v2715_v16 }
  0x7b   : > { %1328 = vmatpush.bf16.msrb.mxu0 %v2639_v61 }
  0x7c   : > { %1341 = vmatpush.bf16.msrb.mxu1 %v2703_v22 }
  0x7d   : > { %1354 = vmatpush.bf16.msrb.mxu2 %v2643_v62 }
  0x7e   : > { %1367 = vmatpush.bf16.msrb.mxu3 %v2707_v26 }
  0x7f   : > { %1329 = vmatpush.bf16.msrb.mxu0 %v2631_v32 }
  0x80   : > { %1342 = vmatpush.bf16.msrb.mxu1 %v2695_v33 }
  0x81   : > { %1355 = vmatpush.bf16.msrb.mxu2 %v2635_v34 }
  0x82   : > { %1368 = vmatpush.bf16.msrb.mxu3 %v2699_v38 }
  0x83   : > { %1330 = vmatpush.bf16.msrb.mxu0 %v2623_v46 }
  0x84   : > { %1343 = vmatpush.bf16.msrb.mxu1 %v2687_v47 }
  0x85   : > { %1356 = vmatpush.bf16.msrb.mxu2 %v2627_v48 }
  0x86   : > { %1369 = vmatpush.bf16.msrb.mxu3 %v2691_v51 }
  0x87   : > { %1331 = vmatpush.bf16.msrb.mxu0 %v2615_v57 }
  0x88   : > { %1344 = vmatpush.bf16.msrb.mxu1 %v2679_v58 }
  0x89   : > { %1357 = vmatpush.bf16.msrb.mxu2 %v2619_v59 }
  0x8a   : > { %1370 = vmatpush.bf16.msrb.mxu3 %v2683_v1 }
  0x8b   : > { %1332 = vmatpush.bf16.msrb.mxu0 %v2607_v7 }
  0x8c   : > { %1345 = vmatpush.bf16.msrb.mxu1 %v2671_v8  ;;  %v2740_v8 = vld [vmem:[%s3331_s2 + $0x6] sm:$0x3] }
  0x8d   : > { %1358 = vmatpush.bf16.msrb.mxu2 %v2611_v9 }
  0x8e   : > { %1371 = vmatpush.bf16.msrb.mxu3 %v2675_v10  ;;  %1333 = vmatmul.bf16.vlgmr.msrb.gmra.mxu0 %v1161_v11 }
  0x8f   : > { %1346 = vmatmul.bf16.vlgmr.msrb.gmra.mxu1 %v1162_v12 }
  0x90   : > { %1359 = vmatmul.bf16.vlgmr.msrb.gmra.mxu2 %v1161_v11 }
  0x91   : > { %1372 = vmatmul.bf16.vlgmr.msrb.gmra.mxu3 %v1162_v12 }
  0xae   : > { %v584_v13 = vpop.f32.mrf.mxu0 }
  0xaf   : > { %v597_v52 = vpop.f32.mrf.mxu1 }
  0xb0   : > { %v598_v14 = vadd.f32 %v597_v52, %v584_v13 }
  0xb3   : > { %v610_v15 = vpop.f32.mrf.mxu2 }
  0xb6   : > { %v623_v16 = vpop.f32.mrf.mxu3  ;;  %v586_v18 = vpop.f32.mrf.mxu0 }
  0xb7   : > { %v624_v17 = vadd.f32 %v623_v16, %v610_v15  ;;  %v599_v19 = vpop.f32.mrf.mxu1  ;;  %v2732_v18 = vld [vmem:[%s3331_s2 + $0x2] sm:$0x3] }
  0xbb   : > { %v612_v20 = vpop.f32.mrf.mxu2 }
  0xbe   : > { %v625_v21 = vpop.f32.mrf.mxu3 }
  0xcb   : > { %v834_v61 = vpop.f32.mrf.mxu0 }
  0xcc   : > { %v847_v22 = vpop.f32.mrf.mxu1 }
  0xcd   : > { %v848_v62 = vadd.f32 %v847_v22, %v834_v61 }
  0xcf   : > { %v1377_v23 = vmax.f32 %v598_v14, %v848_v62 }
  0xd3   : > { %v860_v24 = vpop.f32.mrf.mxu2  ;;  %v836_v26 = vpop.f32.mrf.mxu0 }
  0xd4   : > { %v873_v25 = vpop.f32.mrf.mxu3  ;;  %v849_v27 = vpop.f32.mrf.mxu1 }
  0xd5   : > { %v874_v43 = vadd.f32 %v873_v25, %v860_v24 }
  0xd7   : > { %v1378_v51 = vmax.f32 %v624_v17, %v874_v43  ;;  %v2743_v43 = vld [vmem:[%s3331_s2 + $0x8] sm:$0x3] }
  0xdb   : > { %v862_v28 = vpop.f32.mrf.mxu2 }
  0xdc   : > { %v875_v29 = vpop.f32.mrf.mxu3 }
  0xdd   : > { %v2737_v29 = vld [vmem:[%s3331_s2 + $0x4] sm:$0x3] }
  0xeb   : > { %v1084_v30 = vpop.f32.mrf.mxu0 }
  0xec   : > { %v1097_v31 = vpop.f32.mrf.mxu1 }
  0xed   : > { %v1098_v44 = vadd.f32 %v1097_v31, %v1084_v30  ;;  %v2746_v30 = vld [vmem:[%s3331_s2 + $0xa] sm:$0x3] }
  0xf3   : > { %v1110_v32 = vpop.f32.mrf.mxu2  ;;  %v1086_v34 = vpop.f32.mrf.mxu0 }
  0xf4   : > { %v1123_v33 = vpop.f32.mrf.mxu3  ;;  %v1099_v35 = vpop.f32.mrf.mxu1 }
  0xf5   : > { %v1124_v48 = vadd.f32 %v1123_v33, %v1110_v32 }
  0xfb   : > { %v1112_v36 = vpop.f32.mrf.mxu2 }
  0xfc   : > { %v1125_v37 = vpop.f32.mrf.mxu3 }
 0x10b   : > { %v1334_v38 = vpop.f32.mrf.mxu0 }
 0x10c   : > { %v1347_v41 = vpop.f32.mrf.mxu1 }
 0x10d   : > { %v1348_v42 = vadd.f32 %v1347_v41, %v1334_v38 }
 0x10f   : > { %v1379_v49 = vmax.f32 %v1098_v44, %v1348_v42  ;;  %v2752_v44 = vld [vmem:[%s3331_s2 + $0xe] sm:$0x3] }
 0x111   : > { %v1381_v54 = vmax.f32 %v1377_v23, %v1379_v49  ;;  %v1793_v49 = vld [vmem:[%s3333_s4] sm:$0xf] }
 0x113   : > { %v1360_v45 = vpop.f32.mrf.mxu2  ;;  %v1336_v47 = vpop.f32.mrf.mxu0 }
 0x114   : > { %v1373_v46 = vpop.f32.mrf.mxu3  ;;  %v1349_v39 = vpop.f32.mrf.mxu1 }
 0x115   : > { %v1374_v50 = vadd.f32 %v1373_v46, %v1360_v45  ;;  %v2749_v39 = vld [vmem:[%s3331_s2 + $0xc] sm:$0x3] }
 0x117   : > { %v1380_v53 = vmax.f32 %v1124_v48, %v1374_v50  ;;  %v1785_v48 = vld [vmem:[%s3332_s3] sm:$0xf]  ;;  %v3028_v50 = vmov 0  }
 0x118   : > { %2972 = vset.pattern.permute.xlu1 %v3028_v50  ;;  %2973 = vset.pattern.permute.xlu2 %v3028_v50 }
 0x119   : > { %v1382_v40 = vmax.f32 %v1378_v51, %v1380_v53  ;;  %2974 = vset.pattern.permute.xlu0 %v3028_v50  ;;  %v2755_v51 = vld [vmem:[%s3331_s2 + $0x10] sm:$0x3] }
 0x11b   : > { %v1383_v55 = vpack.c.bf16 %v1382_v40, %v1381_v54  ;;  %v1362_v56 = vpop.f32.mrf.mxu2 }
 0x11c   : > { %v1375_v57 = vpop.f32.mrf.mxu3 }
 0x11d   : > { %v1388_v58 = vunpack.c.l.b16 %v1383_v55  ;;  %v1389_v59 = vunpack.c.h.b16 %v1383_v55 }
 0x11f   : > { %v1390_v60 = vpack.c.b16 %v1388_v58, %v1388_v58  ;;  %v1391_v63 = vpack.c.b16 %v1389_v59, %v1389_v59 }
 0x121   : > { %1517 = vrot.lane.b32.xlu2 %v1390_v60, %s3020_s26  ;;  %1472 = vrot.lane.b32.xlu1 %v1390_v60, %s3021_s27  ;;  %v1439_v0 = vsel %vm1402_vm0, %v1390_v60, 0  ;;  %v1442_v1 = vsel %vm1402_vm0, %v1391_v63, 0 }
 0x122   : > { %1392 = vrot.lane.b32.xlu0 %v1390_v60, %s3022_s28  ;;  %1451 = vmatpush.bf16.msra.mxu2 %v1439_v0 }
 0x123   : > { %1464 = vmatpush.bf16.msra.mxu3 %v1442_v1 }
 0x125   : > { %2735 = vmatmul.msk.bf16.vlgmr.msra.gmra.mxu2 %vm1398_vm1, %v1384_v2 }
 0x126   : > { %2736 = vmatmul.msk.bf16.vlgmr.msra.gmra.mxu3 %vm1398_vm1, %v1384_v2 }
 0x129   : > { %1519 = vrot.lane.b32.xlu2 %v1391_v63, %s3020_s26  ;;  %1474 = vrot.lane.b32.xlu1 %v1391_v63, %s3021_s27 }
 0x12a   : > { %1394 = vrot.lane.b32.xlu0 %v1391_v63, %s3022_s28 }
 0x131   : > { %1607 = vrot.lane.b32.xlu2 %v1390_v60, %s3023_s29  ;;  %1564 = vrot.lane.b32.xlu1 %v1391_v63, %s3024_s30 }
 0x132   : > { %1562 = vrot.lane.b32.xlu0 %v1390_v60, %s3024_s30 }
 0x139   : > { %1654 = vrot.lane.b32.xlu2 %v1391_v63, %s3025_s11  ;;  %1652 = vrot.lane.b32.xlu1 %v1390_v60, %s3025_s11 }
 0x13a   : > { %1609 = vrot.lane.b32.xlu0 %v1391_v63, %s3023_s29 }
 0x141   : > { %1742 = vrot.lane.b32.xlu2 %v1390_v60, %s3026_s12  ;;  %1699 = vrot.lane.b32.xlu1 %v1391_v63, %s3027_s14 }
 0x142   : > { %1697 = vrot.lane.b32.xlu0 %v1390_v60, %s3027_s14 }
 0x149   : > { %1788 = vperm.xlu1 %2972, %v1785_v48   ;;  %1796 = vperm.xlu2 %2973, %v1793_v49  }
 0x14a   : > { %1744 = vrot.lane.b32.xlu0 %v1391_v63, %s3026_s12 }
 0x17b   : > { %v1518_v3 = vpop.permute.xlu2 %1517 }
 0x183   : > { %v1520_v4 = vpop.permute.xlu2 %1519 }
 0x184   : > { %v1522_v5 = vsel %vm1521_vm2, %v1518_v3, %v1520_v4  ;;  %v1530_v6 = vsel %vm1402_vm0, %v1520_v4, 0 }
 0x185   : > { %v1527_v7 = vsel %vm1402_vm0, %v1522_v5, 0  ;;  %1552 = vmatpush.bf16.msrb.mxu3 %v1530_v6 }
 0x186   : > { %1539 = vmatpush.bf16.msrb.mxu2 %v1527_v7 }
 0x188   : > { %2742 = vmatmul.msk.bf16.vlgmr.msrb.gmra.mxu3 %vm1398_vm1, %v2740_v8 }
 0x189   : > { %2741 = vmatmul.msk.bf16.vlgmr.msrb.gmra.mxu2 %vm1398_vm1, %v2740_v8 }
 0x18b   : > { %v1608_v20 = vpop.permute.xlu2 %1607 }
 0x193   : > { %v1473_v9 = vpop.permute.xlu1 %1472  ;;  %v1655_v27 = vpop.permute.xlu2 %1654 }
 0x194   : > { %v1393_v10 = vpop.permute.xlu0 %1392  ;;  %v1665_v32 = vsel %vm1402_vm0, %v1655_v27, 0 }
 0x19b   : > { %v1475_v11 = vpop.permute.xlu1 %1474  ;;  %v1743_v42 = vpop.permute.xlu2 %1742 }
 0x19c   : > { %v1477_v12 = vsel %vm1476_vm3, %v1473_v9, %v1475_v11  ;;  %v1485_v13 = vsel %vm1402_vm0, %v1475_v11, 0  ;;  %v1395_v52 = vpop.permute.xlu0 %1394 }
 0x19d   : > { %v1482_v14 = vsel %vm1402_vm0, %v1477_v12, 0  ;;  %v1397_v15 = vsel %vm1396_vm4, %v1393_v10, %v1395_v52  ;;  %v1407_v16 = vsel %vm1402_vm0, %v1395_v52, 0 }
 0x19e   : > { %v1404_v17 = vsel %vm1402_vm0, %v1397_v15, 0  ;;  %1429 = vmatpush.bf16.msra.mxu1 %v1407_v16 }
 0x19f   : > { %1416 = vmatpush.bf16.msra.mxu0 %v1404_v17 }
 0x1a1   : > { %2734 = vmatmul.msk.bf16.vlgmr.msra.gmra.mxu1 %vm1398_vm1, %v2732_v18 }
 0x1a2   : > { %1507 = vmatpush.bf16.msrb.mxu1 %v1485_v13  ;;  %2733 = vmatmul.msk.bf16.vlgmr.msra.gmra.mxu0 %vm1398_vm1, %v2732_v18 }
 0x1a3   : > { %1494 = vmatpush.bf16.msrb.mxu0 %v1482_v14  ;;  %v1565_v19 = vpop.permute.xlu1 %1564 }
 0x1a4   : > { %v1575_v21 = vsel %vm1402_vm0, %v1565_v19, 0  ;;  %v1563_v61 = vpop.permute.xlu0 %1562 }
 0x1a5   : > { %v1567_v22 = vsel %vm1566_vm5, %v1563_v61, %v1565_v19 }
 0x1a6   : > { %1597 = vmatpush.bf16.msra.mxu1 %v1575_v21  ;;  %v1572_v62 = vsel %vm1402_vm0, %v1567_v22, 0 }
 0x1a7   : > { %1584 = vmatpush.bf16.msra.mxu0 %v1572_v62 }
 0x1a8   : > { %v1453_v53 = vpop.f32.mrf.mxu2 }
 0x1a9   : > { %v1466_v54 = vpop.f32.mrf.mxu3 }
 0x1ab   : > { %v1653_v23 = vpop.permute.xlu1 %1652 }
 0x1ac   : > { %v1610_v24 = vpop.permute.xlu0 %1609  ;;  %v1657_v31 = vsel %vm1656_vm7, %v1653_v23, %v1655_v27 }
 0x1ad   : > { %v1612_v25 = vsel %vm1611_vm6, %v1608_v20, %v1610_v24  ;;  %v1620_v26 = vsel %vm1402_vm0, %v1610_v24, 0  ;;  %v1662_v33 = vsel %vm1402_vm0, %v1657_v31, 0 }
 0x1ae   : > { %v1617_v28 = vsel %vm1402_vm0, %v1612_v25, 0  ;;  %1642 = vmatpush.bf16.msra.mxu3 %v1620_v26 }
 0x1af   : > { %1629 = vmatpush.bf16.msra.mxu2 %v1617_v28 }
 0x1b0   : > { %v1455_v40 = vpop.f32.mrf.mxu2 }
 0x1b1   : > { %2739 = vmatmul.msk.bf16.vlgmr.msrb.gmra.mxu1 %vm1398_vm1, %v2737_v29  ;;  %2748 = vmatmul.msk.bf16.vlgmr.msra.gmra.mxu3 %vm1398_vm1, %v2746_v30  ;;  %v1468_v55 = vpop.f32.mrf.mxu3 }
 0x1b2   : > { %1687 = vmatpush.bf16.msrb.mxu1 %v1665_v32  ;;  %2738 = vmatmul.msk.bf16.vlgmr.msrb.gmra.mxu0 %vm1398_vm1, %v2737_v29 }
 0x1b3   : > { %1674 = vmatpush.bf16.msrb.mxu0 %v1662_v33  ;;  %v1700_v34 = vpop.permute.xlu1 %1699  ;;  %2747 = vmatmul.msk.bf16.vlgmr.msra.gmra.mxu2 %vm1398_vm1, %v2746_v30 }
 0x1b4   : > { %v1710_v35 = vsel %vm1402_vm0, %v1700_v34, 0  ;;  %v1698_v36 = vpop.permute.xlu0 %1697 }
 0x1b5   : > { %v1702_v37 = vsel %vm1701_vm8, %v1698_v36, %v1700_v34  ;;  %1732 = vmatpush.bf16.msrb.mxu3 %v1710_v35 }
 0x1b6   : > { %v1707_v38 = vsel %vm1402_vm0, %v1702_v37, 0 }
 0x1b7   : > { %1719 = vmatpush.bf16.msrb.mxu2 %v1707_v38  ;;  %v1803_v38 = vld [vmem:[%s3337_s8] sm:$0x3] }
 0x1bb   : > { %v1789_v34 = vpop.permute.xlu1 %1788 }
 0x1bc   : > { %v1745_v41 = vpop.permute.xlu0 %1744 }
 0x1bd   : > { %v1747_v45 = vsel %vm1746_vm9, %v1743_v42, %v1745_v41  ;;  %v1755_v46 = vsel %vm1402_vm0, %v1745_v41, 0  ;;  %v1797_v41 = vpop.permute.xlu2 %1796 }
 0x1be   : > { %v1752_v47 = vsel %vm1402_vm0, %v1747_v45, 0 }
 0x1c1   : > { %2745 = vmatmul.msk.bf16.vlgmr.msra.gmra.mxu1 %vm1398_vm1, %v2743_v43  ;;  %2754 = vmatmul.msk.bf16.vlgmr.msrb.gmra.mxu3 %vm1398_vm1, %v2752_v44 }
 0x1c2   : > { %1777 = vmatpush.bf16.msra.mxu1 %v1755_v46  ;;  %2744 = vmatmul.msk.bf16.vlgmr.msra.gmra.mxu0 %vm1398_vm1, %v2743_v43  ;;  %v1805_v46 = vperm.slane %v1803_v38, 0 }
 0x1c3   : > { %1764 = vmatpush.bf16.msra.mxu0 %v1752_v47  ;;  %2753 = vmatmul.msk.bf16.vlgmr.msrb.gmra.mxu2 %vm1398_vm1, %v2752_v44  ;;  %v1806_v44 = vperm.slane %v1803_v38, 1 }
 0x1d1   : > { %2751 = vmatmul.msk.bf16.vlgmr.msrb.gmra.mxu1 %vm1398_vm1, %v2749_v39 }
 0x1d2   : > { %2750 = vmatmul.msk.bf16.vlgmr.msrb.gmra.mxu0 %vm1398_vm1, %v2749_v39 }
 0x1e1   : > { %2757 = vmatmul.msk.bf16.vlgmr.msra.gmra.mxu1 %vm1398_vm1, %v2755_v51 }
 0x1e2   : > { %2756 = vmatmul.msk.bf16.vlgmr.msra.gmra.mxu0 %vm1398_vm1, %v2755_v51 }
 0x20b   : > { %v1554_v56 = vpop.f32.mrf.mxu3 }
 0x20c   : > { %v1541_v57 = vpop.f32.mrf.mxu2 }
 0x213   : > { %v1556_v58 = vpop.f32.mrf.mxu3 }
 0x214   : > { %v1543_v59 = vpop.f32.mrf.mxu2 }
 0x215   : > { %v2046_v59 = vld [vmem:[%s3335_s6] sm:$0xf] }
 0x21e   : > { %v1431_v60 = vpop.f32.mrf.mxu1 }
 0x21f   : > { %v1418_v63 = vpop.f32.mrf.mxu0  ;;  %v1467_v2 = vadd.f32 %v1466_v54, %v1431_v60  ;;  %v1812_v60 = vld [vmem:[%s3334_s5] sm:$0x3] }
 0x220   : > { %v1454_v3 = vadd.f32 %v1453_v53, %v1418_v63 }
 0x226   : > { %v1433_v0 = vpop.f32.mrf.mxu1 }
 0x227   : > { %v1420_v1 = vpop.f32.mrf.mxu0 }
 0x22e   : > { %v1509_v4 = vpop.f32.mrf.mxu1 }
 0x22f   : > { %v1514_v5 = vadd.f32 %v1509_v4, %v1467_v2  ;;  %v1496_v6 = vpop.f32.mrf.mxu0 }
 0x230   : > { %v1513_v7 = vadd.f32 %v1496_v6, %v1454_v3 }
 0x231   : > { %v1559_v8 = vadd.f32 %v1554_v56, %v1514_v5  ;;  %v2758_v5 = vld [vmem:[%s3334_s5 + $0x2] sm:$0x3] }
 0x232   : > { %v1558_v9 = vadd.f32 %v1541_v57, %v1513_v7  ;;  %v2053_v7 = vld [vmem:[%s3336_s7] sm:$0xf] }
 0x234   : > { %v1644_v10 = vpop.f32.mrf.mxu3 }
 0x236   : > { %v1511_v11 = vpop.f32.mrf.mxu1  ;;  %v1631_v12 = vpop.f32.mrf.mxu2 }
 0x237   : > { %v1498_v13 = vpop.f32.mrf.mxu0 }
 0x238   : > { %v2761_v13 = vld [vmem:[%s3334_s5 + $0x4] sm:$0x3] }
 0x23c   : > { %v1646_v52 = vpop.f32.mrf.mxu3 }
 0x23d   : > { %v2763_v52 = vld [vmem:[%s3334_s5 + $0x6] sm:$0x3] }
 0x23e   : > { %v1599_v14 = vpop.f32.mrf.mxu1  ;;  %v1633_v15 = vpop.f32.mrf.mxu2 }
 0x23f   : > { %v1586_v16 = vpop.f32.mrf.mxu0  ;;  %v1604_v23 = vadd.f32 %v1599_v14, %v1559_v8 }
 0x240   : > { %v1603_v24 = vadd.f32 %v1586_v16, %v1558_v9 }
 0x241   : > { %v1649_v26 = vadd.f32 %v1644_v10, %v1604_v23 }
 0x242   : > { %v1648_v28 = vadd.f32 %v1631_v12, %v1603_v24 }
 0x244   : > { %v1734_v17 = vpop.f32.mrf.mxu3 }
 0x246   : > { %v1601_v18 = vpop.f32.mrf.mxu1  ;;  %v1721_v19 = vpop.f32.mrf.mxu2 }
 0x247   : > { %v1588_v20 = vpop.f32.mrf.mxu0 }
 0x248   : > { %v2767_v20 = vld [vmem:[%s3334_s5 + $0xa] sm:$0x3] }
 0x24c   : > { %v1736_v21 = vpop.f32.mrf.mxu3 }
 0x24e   : > { %v1689_v61 = vpop.f32.mrf.mxu1  ;;  %v1723_v22 = vpop.f32.mrf.mxu2 }
 0x24f   : > { %v1676_v62 = vpop.f32.mrf.mxu0  ;;  %v1694_v29 = vadd.f32 %v1689_v61, %v1649_v26  ;;  %v2769_v26 = vld [vmem:[%s3334_s5 + $0xc] sm:$0x3] }
 0x250   : > { %v1693_v30 = vadd.f32 %v1676_v62, %v1648_v28 }
 0x251   : > { %v1739_v31 = vadd.f32 %v1734_v17, %v1694_v29 }
 0x252   : > { %v1738_v32 = vadd.f32 %v1721_v19, %v1693_v30  ;;  %v2765_v19 = vld [vmem:[%s3334_s5 + $0x8] sm:$0x3] }
 0x256   : > { %v1691_v25 = vpop.f32.mrf.mxu1 }
 0x257   : > { %v1678_v27 = vpop.f32.mrf.mxu0 }
 0x25e   : > { %v1779_v33 = vpop.f32.mrf.mxu1 }
 0x25f   : > { %v1784_v35 = vadd.f32 %v1779_v33, %v1739_v31  ;;  %v1766_v36 = vpop.f32.mrf.mxu0  ;;  %v2773_v31 = vld [vmem:[%s3334_s5 + $0x10] sm:$0x3] }
 0x260   : > { %v1783_v37 = vadd.f32 %v1766_v36, %v1738_v32  ;;  %v2771_v32 = vld [vmem:[%s3334_s5 + $0xe] sm:$0x3] }
 0x261   : > { %v1792_v42 = vmul.f32 %v1789_v34, %v1784_v35 }
 0x262   : > { %v1791_v43 = vmul.f32 %v1789_v34, %v1783_v37  ;;  %v2076_v34 = vld [vmem:[%s3338_s9 + $0x38] sm:$0x7] }
 0x263   : > { %v1800_v45 = vadd.f32 %v1797_v41, %v1792_v42  ;;  %v2106_v35 = vunpack.c.l.b16 %v2076_v34  ;;  %v2940_v42 = vld [vmem:[%s3338_s9 + $0x28] sm:$0xff] }
 0x264   : > { %v1799_v47 = vadd.f32 %v1797_v41, %v1791_v43  ;;  %v2941_v41 = vld [vmem:[%s3338_s9 + $0x30] sm:$0xff]  ;;  %v2939_v43 = vld [vmem:[%s3338_s9 + $0x20] sm:$0xff] }
 0x265   : > { %v1802_v48 = vmax.f32 %v1800_v45, 0.0  ;;  %v2114_v37 = vpack.c.b16 %v2106_v35, %v2106_v35  ;;  %v2937_v45 = vld [vmem:[%s3338_s9 + $0x10] sm:$0xff] }
 0x266   : > { %v1801_v49 = vmax.f32 %v1799_v47, 0.0  ;;  %v1781_v50 = vpop.f32.mrf.mxu1  ;;  %v2936_v47 = vld [vmem:[%s3338_s9 + $0x8] sm:$0xff] }
 0x267   : > { %v1810_v39 = vmul.f32 %v1806_v44, %v1802_v48  ;;  %v1768_v51 = vpop.f32.mrf.mxu0  ;;  %v2128_v38 = vsel %vm2126_vm10, %v2114_v37, 0  ;;  %v2938_v44 = vld [vmem:[%s3338_s9 + $0x18] sm:$0xff]  ;;  %v2935_v50 = vld [vmem:[%s3338_s9] sm:$0xff] }
 0x268   : > { %v1809_v53 = vmul.f32 %v1805_v46, %v1801_v49 }
 0x26a   : > { %v1811_v54 = vpack.c.bf16 %v1810_v39, %v1809_v53 }
 0x26c   : > { %v1816_v40 = vunpack.c.l.b16 %v1811_v54  ;;  %v1884_v55 = vunpack.c.h.b16 %v1811_v54  ;;  %v1843_v56 = vsel %vm1402_vm0, %v1811_v54, 0 }
 0x26d   : > { %1852 = vmatpush.bf16.msra.mxu3 %v1843_v56 }
 0x26e   : > { %v1817_v57 = vpack.c.b16 %v1816_v40, %v1816_v40  ;;  %v1885_v58 = vpack.c.b16 %v1884_v55, %v1884_v55 }
 0x270   : > { %1915 = vrot.lane.b32.xlu2 %v1885_v58, %s3024_s30  ;;  %1913 = vrot.lane.b32.xlu1 %v1817_v57, %s3024_s30 }
 0x271   : > { %1818 = vrot.lane.b32.xlu0 %v1817_v57, %s3022_s28  ;;  %2760 = vmatmul.msk.bf16.vlgmr.msra.gmra.mxu3 %vm1398_vm1, %v1812_v60 }
 0x278   : > { %1888 = vrot.lane.b32.xlu2 %v1885_v58, %s3020_s26  ;;  %1886 = vrot.lane.b32.xlu1 %v1817_v57, %s3020_s26 }
 0x279   : > { %1860 = vrot.lane.b32.xlu0 %v1817_v57, %s3021_s27 }
 0x280   : > { %2021 = vrot.lane.b32.xlu2 %v1817_v57, %s3026_s12  ;;  %1942 = vrot.lane.b32.xlu1 %v1885_v58, %s3023_s29 }
 0x281   : > { %1940 = vrot.lane.b32.xlu0 %v1817_v57, %s3023_s29 }
 0x288   : > { %1969 = vrot.lane.b32.xlu2 %v1885_v58, %s3025_s11  ;;  %1967 = vrot.lane.b32.xlu1 %v1817_v57, %s3025_s11 }
 0x289   : > { %2023 = vrot.lane.b32.xlu0 %v1885_v58, %s3026_s12  ;;  %s374_s12 = scalar_lea.vmem %s3339_s10, %s2806_s22 }
 0x290   : > { %2049 = vperm.xlu2 %2973, %v2046_v59   ;;  %1996 = vrot.lane.b32.xlu1 %v1885_v58, %s3027_s14 }
 0x291   : > { %1994 = vrot.lane.b32.xlu0 %v1817_v57, %s3027_s14 }
 0x299   : > { %2056 = vperm.xlu0 %2974, %v2053_v7  }
 0x2ca   : > { %v1916_v63 = vpop.permute.xlu2 %1915 }
 0x2d2   : > { %v1889_v6 = vpop.permute.xlu2 %1888 }
 0x2da   : > { %v2022_v14 = vpop.permute.xlu2 %2021 }
 0x2e2   : > { %v1914_v0 = vpop.permute.xlu1 %1913  ;;  %v1970_v21 = vpop.permute.xlu2 %1969 }
 0x2e3   : > { %v1917_v1 = vsel %vm1566_vm5, %v1914_v0, %v1916_v63  ;;  %v1819_v2 = vpop.permute.xlu0 %1818 }
 0x2e4   : > { %v1922_v3 = vsel %vm1402_vm0, %v1917_v1, 0  ;;  %v1824_v4 = vsel %vm1402_vm0, %v1819_v2, 0 }
 0x2e5   : > { %1833 = vmatpush.bf16.msra.mxu2 %v1824_v4 }
 0x2e8   : > { %2759 = vmatmul.msk.bf16.vlgmr.msra.gmra.mxu2 %vm1398_vm1, %v2758_v5 }
 0x2e9   : > { %1931 = vmatpush.bf16.msrb.mxu2 %v1922_v3 }
 0x2ea   : > { %v1887_v8 = vpop.permute.xlu1 %1886  ;;  %v2050_v7 = vpop.permute.xlu2 %2049 }
 0x2eb   : > { %v1890_v9 = vsel %vm1521_vm2, %v1887_v8, %v1889_v6  ;;  %v1861_v10 = vpop.permute.xlu0 %1860 }
 0x2ec   : > { %v1895_v11 = vsel %vm1402_vm0, %v1890_v9, 0  ;;  %v1866_v12 = vsel %vm1402_vm0, %v1861_v10, 0 }
 0x2ed   : > { %1875 = vmatpush.bf16.msrb.mxu0 %v1866_v12  ;;  %1904 = vmatpush.bf16.msrb.mxu1 %v1895_v11 }
 0x2f0   : > { %2762 = vmatmul.msk.bf16.vlgmr.msrb.gmra.mxu0 %vm1398_vm1, %v2761_v13  ;;  %2764 = vmatmul.msk.bf16.vlgmr.msrb.gmra.mxu1 %vm1398_vm1, %v2763_v52 }
 0x2f2   : > { %v1943_v15 = vpop.permute.xlu1 %1942 }
 0x2f3   : > { %v1941_v16 = vpop.permute.xlu0 %1940 }
 0x2f4   : > { %v1944_v17 = vsel %vm1611_vm6, %v1941_v16, %v1943_v15  ;;  %v1854_v33 = vpop.f32.mrf.mxu3 }
 0x2f5   : > { %v1949_v18 = vsel %vm1402_vm0, %v1944_v17, 0 }
 0x2f6   : > { %1958 = vmatpush.bf16.msrb.mxu3 %v1949_v18 }
 0x2f8   : > { %2766 = vmatmul.msk.bf16.vlgmr.msrb.gmra.mxu2 %vm1398_vm1, %v2765_v19 }
 0x2f9   : > { %2768 = vmatmul.msk.bf16.vlgmr.msrb.gmra.mxu3 %vm1398_vm1, %v2767_v20 }
 0x2fa   : > { %v1968_v61 = vpop.permute.xlu1 %1967  ;;  %2130 = vmatpush.bf16.msra.mxu3 %v2128_v38 }
 0x2fb   : > { %v1971_v22 = vsel %vm1656_vm7, %v1968_v61, %v1970_v21  ;;  %v2024_v62 = vpop.permute.xlu0 %2023 }
 0x2fc   : > { %v1976_v23 = vsel %vm1402_vm0, %v1971_v22, 0  ;;  %v2025_v24 = vsel %vm1746_vm9, %v2022_v14, %v2024_v62  ;;  %v1856_v36 = vpop.f32.mrf.mxu3 }
 0x2fd   : > { %v2030_v25 = vsel %vm1402_vm0, %v2025_v24, 0  ;;  %1985 = vmatpush.bf16.msra.mxu0 %v1976_v23 }
 0x2fe   : > { %2039 = vmatpush.bf16.msra.mxu2 %v2030_v25  ;;  %2131 = vmatpush.bf16.msra.mxu3 %v2941_v41 }
 0x300   : > { %2770 = vmatmul.msk.bf16.vlgmr.msra.gmra.mxu0 %vm1398_vm1, %v2769_v26 }
 0x302   : > { %v1997_v27 = vpop.permute.xlu1 %1996  ;;  %2132 = vmatpush.bf16.msra.mxu3 %v2940_v42 }
 0x303   : > { %v1995_v28 = vpop.permute.xlu0 %1994 }
 0x304   : > { %v1998_v29 = vsel %vm1701_vm8, %v1995_v28, %v1997_v27 }
 0x305   : > { %v2003_v30 = vsel %vm1402_vm0, %v1998_v29, 0 }
 0x306   : > { %2012 = vmatpush.bf16.msra.mxu1 %v2003_v30  ;;  %2133 = vmatpush.bf16.msra.mxu3 %v2939_v43 }
 0x308   : > { %2774 = vmatmul.msk.bf16.vlgmr.msra.gmra.mxu2 %vm1398_vm1, %v2773_v31 }
 0x309   : > { %2772 = vmatmul.msk.bf16.vlgmr.msra.gmra.mxu1 %vm1398_vm1, %v2771_v32 }
 0x30a   : > { %2134 = vmatpush.bf16.msra.mxu3 %v2938_v44 }
 0x30b   : > { %v2057_v8 = vpop.permute.xlu0 %2056 }
 0x30e   : > { %2135 = vmatpush.bf16.msra.mxu3 %v2937_v45 }
 0x312   : > { %2136 = vmatpush.bf16.msra.mxu3 %v2936_v47 }
 0x316   : > { %2137 = vmatpush.bf16.msra.mxu3 %v2935_v50 }
 0x36b   : > { %v1835_v46 = vpop.f32.mrf.mxu2 }
 0x36c   : > { %v1855_v54 = vadd.f32 %v1854_v33, %v1835_v46 }
 0x36d   : > { %v1877_v48 = vpop.f32.mrf.mxu0  ;;  %v1906_v49 = vpop.f32.mrf.mxu1 }
 0x36e   : > { %v1881_v40 = vadd.f32 %v1877_v48, %v1855_v54 }
 0x370   : > { %v1910_v58 = vadd.f32 %v1906_v49, %v1881_v40 }
 0x373   : > { %v1837_v39 = vpop.f32.mrf.mxu2 }
 0x375   : > { %v1879_v51 = vpop.f32.mrf.mxu0  ;;  %v1908_v53 = vpop.f32.mrf.mxu1 }
 0x37b   : > { %v1933_v55 = vpop.f32.mrf.mxu2 }
 0x37c   : > { %v1960_v56 = vpop.f32.mrf.mxu3  ;;  %v1937_v59 = vadd.f32 %v1933_v55, %v1910_v58 }
 0x37d   : > { %v1987_v57 = vpop.f32.mrf.mxu0 }
 0x37e   : > { %v1964_v63 = vadd.f32 %v1960_v56, %v1937_v59 }
 0x380   : > { %v1991_v3 = vadd.f32 %v1987_v57, %v1964_v63 }
 0x383   : > { %v1935_v60 = vpop.f32.mrf.mxu2 }
 0x384   : > { %v1962_v0 = vpop.f32.mrf.mxu3 }
 0x385   : > { %v1989_v1 = vpop.f32.mrf.mxu0 }
 0x386   : > { %v2014_v2 = vpop.f32.mrf.mxu1 }
 0x387   : > { %v2018_v4 = vadd.f32 %v2014_v2, %v1991_v3 }
 0x38b   : > { %v2041_v5 = vpop.f32.mrf.mxu2 }
 0x38c   : > { %v2045_v6 = vadd.f32 %v2041_v5, %v2018_v4 }
 0x38e   : > { %v2052_v9 = vmul.f32 %v2050_v7, %v2045_v6  ;;  %v2016_v10 = vpop.f32.mrf.mxu1 }
 0x390   : > { %v2059_v11 = vadd.f32 %v2057_v8, %v2052_v9 }
 0x392   : > { %v2060_v12 = vmax.f32 %v2059_v11, 0.0 }
 0x393   : > { %v2043_v13 = vpop.f32.mrf.mxu2 }
 0x394   : > { %v2061_v52 = vpack.c.bf16 %v2060_v12, %v2060_v12 }
 0x396   : > { %2803 = vmatmul.msk.bf16.vlgmr.msra.gmra.mxu3 %vm2122_vm11, %v2061_v52 }
 0x419   : > { %v2139_v14 = vpop.f32.mrf.mxu3 }
 0x41a   : > { %2144 = vst.msk [vmem:[%s374_s12] sm:$0xf] %vm2143_vm12, %v2139_v14 }
 0x421   : > { %v2141_v15 = vpop.f32.mrf.mxu3 }
 0x422 PF: > { %s21_s13 = sadd.s32 1, %s3015_s13  }
 0x423   : > { %p18_p7 = scmp.ge.s32.totalorder %s21_s13, 4  }
 0x425   :  { %20 = sbr.rel (!%p18_p7) target bundleno = 1 (0x1), region = 114 }
 0x42a   :  { %2164 = vsyncpa [#allocation3], 1 }
 0x42b   :  { %2166 = vsyncpa [#allocation3 + $0x1], 1 }

// kernel: forward.5
= control target key start
LH: loop header
LB: loop body
LE: loop exit
PB: predicated region body
PF: predicated region fallthrough
CT: control target
= control target key end

     0   :  { %15 = vsyncpa [#allocation3], 0  ;;  %s2104_s13 = smov 0   ;;  %s2269_s0 = inlined_call_operand.vmem [shape: bf16[2,4,256], index: 0, kind: input, shape index: {}]   ;;  %s2270_s1 = inlined_call_operand.hbm [shape: bf16[4,256,50], index: 1, kind: input, shape index: {}]   ;;  %s2271_s2 = inlined_call_operand.vmem [shape: bf16[9,4,4], index: 2, kind: input, shape index: {}]   ;;  %s2272_s3 = inlined_call_operand.vmem [shape: f32[4,1], index: 3, kind: input, shape index: {}]   ;;  %s2273_s4 = inlined_call_operand.vmem [shape: f32[4,1], index: 4, kind: input, shape index: {}]   ;;  %s2274_s5 = inlined_call_operand.vmem [shape: bf16[9,4,4], index: 5, kind: input, shape index: {}]   ;;  %s2275_s6 = inlined_call_operand.vmem [shape: f32[4,1], index: 6, kind: input, shape index: {}]   ;;  %s2276_s7 = inlined_call_operand.vmem [shape: f32[4,1], index: 7, kind: input, shape index: {}]   ;;  %s2277_s8 = inlined_call_operand.vmem [shape: f32[1,36], index: 8, kind: input, shape index: {}]   ;;  %s2278_s9 = inlined_call_operand.vmem [shape: bf16[22,64], index: 9, kind: input, shape index: {}]   ;;  %s2279_s10 = inlined_call_operand.vmem [shape: f32[2,4,64], index: 10, kind: output, shape index: {}]  }
   0x1 LB: > { %s278_s16 = sshll.u32 %s2270_s1, 4  ;;  %s2113_s17 = sadd.s32 4294967295, %s2035_s13   ;;  %s2035_s13 = sphi %s2104_s13, %s21_s13   ;;  %s279_s16 = int_to_ptr.hbm [resolvable:$true] %s278_s16 }
   0x2   : > { %p1590_p0 = scmp.ge.s32.totalorder %s2035_s13, 1  ;;  %p267_p1 = scmp.lt.s32.totalorder %s2035_s13, 3 }
   0x3   : > { %p1969_p2 = scmp.eq.s32.totalorder %s2113_s17, 0  ;;  %s2037_s18 = smov [#allocation2]  }
   0x4   : > { %p268_p3 = pnand %p1590_p0, %p267_p1  ;;  %s280_s19 = sshll.u32 %s2037_s18, 4  ;;  %s281_s19 = int_to_ptr.vmem [resolvable:$true] %s280_s19 }
   0x5   : > { %s2038_s20 = smov 64   ;;  %s2039_s21 = smov 4  }
   0x6   : > { %p1965_p4 = pneg %p268_p3  ;;  %328 = sbr.rel (%p268_p3) target bundleno = 947 (0x3b3), region = 60 }
   0x8   : > { %p1966_p5 = pnand %p1969_p2, %p1965_p4 }
   0xa   : > { %1968 = dma.hbm_to_vmem [thread:$0]  (!%p1966_p5), %s279_s16, 8192, %s281_s19, [#allocation3], %s2038_s20, %s2038_s20, %s2039_s21  }
   0xb   : > { %2030 = dma.done.wait (%p1969_p2), [#allocation3], 8192  }
   0xc   : > { %2032 = vsyncadd (%p1969_p2), [#allocation3], 4294959104  ;;  %p366_p6 = scmp.lt.s32.totalorder %s2113_s17, 1  ;;  %v1903_v0 = vld [vmem:[#allocation2 + $0x38] sm:$0xff]  ;;  %v1902_v4 = vld [vmem:[#allocation2 + $0x30] sm:$0xff]  ;;  %vm1033_vm0 = vcmask 1041408  }
   0xd   : > { %v1911_v1 = vld [vmem:[#allocation2 + $0x78] sm:$0xff]  ;;  %511 = vmatpush.bf16.msra.mxu0 %v1903_v0  ;;  %v1910_v5 = vld [vmem:[#allocation2 + $0x70] sm:$0xff]  ;;  %v1901_v8 = vld [vmem:[#allocation2 + $0x28] sm:$0xff]  ;;  %s2040_s26 = smov 116   ;;  %s2041_s27 = smov 122   ;;  %vm1029_vm1 = vcmask 31744  }
   0xe   : > { %v1919_v2 = vld [vmem:[#allocation2 + $0xb8] sm:$0xff]  ;;  %524 = vmatpush.bf16.msra.mxu1 %v1911_v1  ;;  %v1918_v6 = vld [vmem:[#allocation2 + $0xb0] sm:$0xff]  ;;  %s2281_s17 = smov (!%p366_p6, %s2113_s17), 1  ;;  %v1909_v9 = vld [vmem:[#allocation2 + $0x68] sm:$0xff]  ;;  %s2042_s28 = smov 127   ;;  %vm1504_vm2 = vcmask 1042432  }
   0xf   : > { %v1927_v3 = vld [vmem:[#allocation2 + $0xf8] sm:$0xff]  ;;  %671 = vmatpush.bf16.msra.mxu2 %v1919_v2  ;;  %v1926_v7 = vld [vmem:[#allocation2 + $0xf0] sm:$0xff]  ;;  %v1917_v10 = vld [vmem:[#allocation2 + $0xa8] sm:$0xff]  ;;  %s1895_s22 = sshll.u32 %s2281_s17, 2  ;;  %s2043_s29 = smov 115   ;;  %vm1500_vm3 = vcmask 179200  }
  0x10   : > { %684 = vmatpush.bf16.msra.mxu3 %v1927_v3  ;;  %v1925_v11 = vld [vmem:[#allocation2 + $0xe8] sm:$0xff]  ;;  %v1900_v12 = vld [vmem:[#allocation2 + $0x20] sm:$0xff]  ;;  %s370_s25 = scalar_lea.vmem %s2269_s0, %s1895_s22  ;;  %v1899_v17 = vld [vmem:[#allocation2 + $0x18] sm:$0xff]  ;;  %s2044_s30 = smov 121   ;;  %vm1521_vm4 = vcmask 519168  }
  0x11   : > { %512 = vmatpush.bf16.msra.mxu0 %v1902_v4  ;;  %v1908_v13 = vld [vmem:[#allocation2 + $0x60] sm:$0xff]  ;;  %v2128_v16 = vld [vmem:[%s370_s25] sm:$0xf]  ;;  %v1898_v21 = vld [vmem:[#allocation2 + $0x10] sm:$0xff]  ;;  %s2045_s11 = smov 126   ;;  %s2046_s12 = smov 114  }
  0x12   : > { %525 = vmatpush.bf16.msra.mxu1 %v1910_v5  ;;  %v1916_v14 = vld [vmem:[#allocation2 + $0xa0] sm:$0xff]  ;;  %v1907_v18 = vld [vmem:[#allocation2 + $0x58] sm:$0xff]  ;;  %410 = vst [vmem:[#allocation1] ss:$4 sm:$0xff] %v2128_v16  ;;  %v1906_v22 = vld [vmem:[#allocation2 + $0x50] sm:$0xff]  ;;  %s2047_s14 = smov 120   ;;  %s374_s15 = scalar_lea.vmem %s2279_s10, %s1895_s22 }
  0x13   : > { %672 = vmatpush.bf16.msra.mxu2 %v1918_v6  ;;  %v1924_v15 = vld [vmem:[#allocation2 + $0xe0] sm:$0xff]  ;;  %v1915_v19 = vld [vmem:[#allocation2 + $0x98] sm:$0xff]  ;;  %v1914_v23 = vld [vmem:[#allocation2 + $0x90] sm:$0xff] }
  0x14   : > { %685 = vmatpush.bf16.msra.mxu3 %v1926_v7  ;;  %v1923_v20 = vld [vmem:[#allocation2 + $0xd8] sm:$0xff]  ;;  %v1922_v24 = vld [vmem:[#allocation2 + $0xd0] sm:$0xff]  ;;  %v1897_v27 = vld [vmem:[#allocation2 + $0x8] sm:$0xff] }
  0x15   : > { %513 = vmatpush.bf16.msra.mxu0 %v1901_v8  ;;  %v1905_v28 = vld [vmem:[#allocation2 + $0x48] sm:$0xff]  ;;  %v1896_v31 = vld [vmem:[#allocation2] sm:$0xff]  ;;  %v1935_v35 = vld [vmem:[#allocation2 + $0x138] sm:$0xff] }
  0x16   : > { %526 = vmatpush.bf16.msra.mxu1 %v1909_v9  ;;  %v1913_v29 = vld [vmem:[#allocation2 + $0x88] sm:$0xff]  ;;  %v1904_v32 = vld [vmem:[#allocation2 + $0x40] sm:$0xff]  ;;  %v1943_v36 = vld [vmem:[#allocation2 + $0x178] sm:$0xff] }
  0x17   : > { %673 = vmatpush.bf16.msra.mxu2 %v1917_v10  ;;  %v1921_v30 = vld [vmem:[#allocation2 + $0xc8] sm:$0xff]  ;;  %v1912_v33 = vld [vmem:[#allocation2 + $0x80] sm:$0xff]  ;;  %v1951_v37 = vld [vmem:[#allocation2 + $0x1b8] sm:$0xff] }
  0x18   : > { %686 = vmatpush.bf16.msra.mxu3 %v1925_v11  ;;  %v1920_v34 = vld [vmem:[#allocation2 + $0xc0] sm:$0xff]  ;;  %v1959_v38 = vld [vmem:[#allocation2 + $0x1f8] sm:$0xff]  ;;  %v1934_v41 = vld [vmem:[#allocation2 + $0x130] sm:$0xff] }
  0x19   : > { %514 = vmatpush.bf16.msra.mxu0 %v1900_v12  ;;  %v411_v25 = vld.sshfl [vmem:[#allocation1] sm:$0xff pattern:$0x73625140]  ;;  %v412_v26 = vld.sshfl [vmem:[#allocation1 + $0x8] sm:$0xff pattern:$0x73625140] }
  0x1a   : > { %527 = vmatpush.bf16.msra.mxu1 %v1908_v13  ;;  %570 = vst [vmem:[#allocation1] ss:$4 sm:$0xff] %v2128_v16  ;;  %v1942_v42 = vld [vmem:[#allocation2 + $0x170] sm:$0xff]  ;;  %v1933_v45 = vld [vmem:[#allocation2 + $0x128] sm:$0xff]  ;;  %v1932_v51 = vld [vmem:[#allocation2 + $0x120] sm:$0xff] }
  0x1b   : > { %674 = vmatpush.bf16.msra.mxu2 %v1916_v14  ;;  %v1950_v43 = vld [vmem:[#allocation2 + $0x1b0] sm:$0xff]  ;;  %v1941_v46 = vld [vmem:[#allocation2 + $0x168] sm:$0xff]  ;;  %v1940_v52 = vld [vmem:[#allocation2 + $0x160] sm:$0xff] }
  0x1c   : > { %687 = vmatpush.bf16.msra.mxu3 %v1924_v15  ;;  %v1958_v44 = vld [vmem:[#allocation2 + $0x1f0] sm:$0xff]  ;;  %v1949_v47 = vld [vmem:[#allocation2 + $0x1a8] sm:$0xff]  ;;  %v1948_v53 = vld [vmem:[#allocation2 + $0x1a0] sm:$0xff] }
  0x1d   : > { %515 = vmatpush.bf16.msra.mxu0 %v1899_v17  ;;  %v1957_v48 = vld [vmem:[#allocation2 + $0x1e8] sm:$0xff]  ;;  %v1956_v54 = vld [vmem:[#allocation2 + $0x1e0] sm:$0xff]  ;;  %v1931_v55 = vld [vmem:[#allocation2 + $0x118] sm:$0xff] }
  0x1e   : > { %528 = vmatpush.bf16.msra.mxu1 %v1907_v18  ;;  %v1939_v56 = vld [vmem:[#allocation2 + $0x158] sm:$0xff]  ;;  %v1930_v59 = vld [vmem:[#allocation2 + $0x110] sm:$0xff]  ;;  %v1929_v63 = vld [vmem:[#allocation2 + $0x108] sm:$0xff] }
  0x1f   : > { %675 = vmatpush.bf16.msra.mxu2 %v1915_v19  ;;  %v1947_v57 = vld [vmem:[#allocation2 + $0x198] sm:$0xff]  ;;  %v1938_v60 = vld [vmem:[#allocation2 + $0x150] sm:$0xff]  ;;  %v1937_v0 = vld [vmem:[#allocation2 + $0x148] sm:$0xff] }
  0x20   : > { %688 = vmatpush.bf16.msra.mxu3 %v1923_v20  ;;  %v1955_v58 = vld [vmem:[#allocation2 + $0x1d8] sm:$0xff]  ;;  %v1946_v61 = vld [vmem:[#allocation2 + $0x190] sm:$0xff]  ;;  %v1945_v1 = vld [vmem:[#allocation2 + $0x188] sm:$0xff] }
  0x21   : > { %516 = vmatpush.bf16.msra.mxu0 %v1898_v21  ;;  %v571_v39 = vld.sshfl [vmem:[#allocation1] sm:$0xff pattern:$0x73625140]  ;;  %v572_v40 = vld.sshfl [vmem:[#allocation1 + $0x8] sm:$0xff pattern:$0x73625140] }
  0x22   : > { %529 = vmatpush.bf16.msra.mxu1 %v1906_v22  ;;  %730 = vst [vmem:[#allocation1] ss:$4 sm:$0xff] %v2128_v16  ;;  %v1954_v62 = vld [vmem:[#allocation2 + $0x1d0] sm:$0xff]  ;;  %v1953_v2 = vld [vmem:[#allocation2 + $0x1c8] sm:$0xff]  ;;  %v1928_v3 = vld [vmem:[#allocation2 + $0x100] sm:$0xff] }
  0x23   : > { %676 = vmatpush.bf16.msra.mxu2 %v1914_v23  ;;  %v1936_v4 = vld [vmem:[#allocation2 + $0x140] sm:$0xff] }
  0x24   : > { %689 = vmatpush.bf16.msra.mxu3 %v1922_v24  ;;  %v1944_v5 = vld [vmem:[#allocation2 + $0x180] sm:$0xff] }
  0x25   : > { %517 = vmatpush.bf16.msra.mxu0 %v1897_v27  ;;  %v1952_v6 = vld [vmem:[#allocation2 + $0x1c0] sm:$0xff] }
  0x26   : > { %530 = vmatpush.bf16.msra.mxu1 %v1905_v28 }
  0x27   : > { %677 = vmatpush.bf16.msra.mxu2 %v1913_v29 }
  0x28   : > { %690 = vmatpush.bf16.msra.mxu3 %v1921_v30 }
  0x29   : > { %518 = vmatpush.bf16.msra.mxu0 %v1896_v31  ;;  %v731_v49 = vld.sshfl [vmem:[#allocation1] sm:$0xff pattern:$0x73625140]  ;;  %v732_v50 = vld.sshfl [vmem:[#allocation1 + $0x8] sm:$0xff pattern:$0x73625140] }
  0x2a   : > { %531 = vmatpush.bf16.msra.mxu1 %v1904_v32  ;;  %890 = vst [vmem:[#allocation1] ss:$4 sm:$0xff] %v2128_v16 }
  0x2b   : > { %678 = vmatpush.bf16.msra.mxu2 %v1912_v33 }
  0x2c   : > { %691 = vmatpush.bf16.msra.mxu3 %v1920_v34  ;;  %519 = vmatmul.bf16.vlgmr.msra.gmra.mxu0 %v411_v25 }
  0x2d   : > { %831 = vmatpush.bf16.msrb.mxu0 %v1935_v35  ;;  %532 = vmatmul.bf16.vlgmr.msra.gmra.mxu1 %v412_v26 }
  0x2e   : > { %844 = vmatpush.bf16.msrb.mxu1 %v1943_v36  ;;  %679 = vmatmul.bf16.vlgmr.msra.gmra.mxu2 %v571_v39  ;;  %v1021_v36 = vld [vmem:[%s2271_s2] sm:$0x3] }
  0x2f   : > { %991 = vmatpush.bf16.msrb.mxu2 %v1951_v37  ;;  %692 = vmatmul.bf16.vlgmr.msra.gmra.mxu3 %v572_v40 }
  0x30   : > { %1004 = vmatpush.bf16.msrb.mxu3 %v1959_v38 }
  0x31   : > { %832 = vmatpush.bf16.msrb.mxu0 %v1934_v41  ;;  %v891_v7 = vld.sshfl [vmem:[#allocation1] sm:$0xff pattern:$0x73625140]  ;;  %v892_v8 = vld.sshfl [vmem:[#allocation1 + $0x8] sm:$0xff pattern:$0x73625140] }
  0x32   : > { %845 = vmatpush.bf16.msrb.mxu1 %v1942_v42 }
  0x33   : > { %992 = vmatpush.bf16.msrb.mxu2 %v1950_v43 }
  0x34   : > { %1005 = vmatpush.bf16.msrb.mxu3 %v1958_v44  ;;  %v1859_v44 = vld [vmem:[%s2271_s2 + $0x6] sm:$0x3] }
  0x35   : > { %833 = vmatpush.bf16.msrb.mxu0 %v1933_v45  ;;  %v1854_v45 = vld [vmem:[%s2271_s2 + $0x2] sm:$0x3] }
  0x36   : > { %846 = vmatpush.bf16.msrb.mxu1 %v1941_v46  ;;  %v1244_v46 = vld [vmem:[%s2273_s4] sm:$0xf] }
  0x37   : > { %993 = vmatpush.bf16.msrb.mxu2 %v1949_v47  ;;  %v1237_v47 = vld [vmem:[%s2272_s3] sm:$0xf] }
  0x38   : > { %1006 = vmatpush.bf16.msrb.mxu3 %v1957_v48  ;;  %v2048_v48 = vmov 0  }
  0x39   : > { %834 = vmatpush.bf16.msrb.mxu0 %v1932_v51  ;;  %1992 = vset.pattern.permute.xlu0 %v2048_v48 }
  0x3a   : > { %847 = vmatpush.bf16.msrb.mxu1 %v1940_v52  ;;  %1991 = vset.pattern.permute.xlu2 %v2048_v48 }
  0x3b   : > { %994 = vmatpush.bf16.msrb.mxu2 %v1948_v53  ;;  %1993 = vset.pattern.permute.xlu1 %v2048_v48 }
  0x3c   : > { %1007 = vmatpush.bf16.msrb.mxu3 %v1956_v54  ;;  %v1857_v54 = vld [vmem:[%s2271_s2 + $0x4] sm:$0x3] }
  0x3d   : > { %835 = vmatpush.bf16.msrb.mxu0 %v1931_v55 }
  0x3e   : > { %848 = vmatpush.bf16.msrb.mxu1 %v1939_v56 }
  0x3f   : > { %995 = vmatpush.bf16.msrb.mxu2 %v1947_v57 }
  0x40   : > { %1008 = vmatpush.bf16.msrb.mxu3 %v1955_v58 }
  0x41   : > { %836 = vmatpush.bf16.msrb.mxu0 %v1930_v59  ;;  %v1867_v59 = vld [vmem:[%s2271_s2 + $0xe] sm:$0x3] }
  0x42   : > { %849 = vmatpush.bf16.msrb.mxu1 %v1938_v60  ;;  %v1861_v60 = vld [vmem:[%s2271_s2 + $0x8] sm:$0x3] }
  0x43   : > { %996 = vmatpush.bf16.msrb.mxu2 %v1946_v61  ;;  %v1863_v61 = vld [vmem:[%s2271_s2 + $0xa] sm:$0x3] }
  0x44   : > { %1009 = vmatpush.bf16.msrb.mxu3 %v1954_v62  ;;  %v1865_v62 = vld [vmem:[%s2271_s2 + $0xc] sm:$0x3] }
  0x45   : > { %837 = vmatpush.bf16.msrb.mxu0 %v1929_v63  ;;  %v1869_v63 = vld [vmem:[%s2271_s2 + $0x10] sm:$0x3] }
  0x46   : > { %850 = vmatpush.bf16.msrb.mxu1 %v1937_v0 }
  0x47   : > { %997 = vmatpush.bf16.msrb.mxu2 %v1945_v1 }
  0x48   : > { %1010 = vmatpush.bf16.msrb.mxu3 %v1953_v2 }
  0x49   : > { %838 = vmatpush.bf16.msrb.mxu0 %v1928_v3 }
  0x4a   : > { %851 = vmatpush.bf16.msrb.mxu1 %v1936_v4 }
  0x4b   : > { %998 = vmatpush.bf16.msrb.mxu2 %v1944_v5 }
  0x4c   : > { %1011 = vmatpush.bf16.msrb.mxu3 %v1952_v6  ;;  %839 = vmatmul.bf16.vlgmr.msrb.gmra.mxu0 %v731_v49 }
  0x4d   : > { %852 = vmatmul.bf16.vlgmr.msrb.gmra.mxu1 %v732_v50 }
  0x4e   : > { %999 = vmatmul.bf16.vlgmr.msrb.gmra.mxu2 %v891_v7 }
  0x4f   : > { %1012 = vmatmul.bf16.vlgmr.msrb.gmra.mxu3 %v892_v8 }
  0xa9   : > { %v520_v9 = vpop.f32.mrf.mxu0 }
  0xaa   : > { %v533_v10 = vpop.f32.mrf.mxu1 }
  0xab   : > { %v534_v19 = vadd.f32 %v533_v10, %v520_v9 }
  0xb1   : > { %v680_v11 = vpop.f32.mrf.mxu2  ;;  %v522_v13 = vpop.f32.mrf.mxu0 }
  0xb2   : > { %v693_v12 = vpop.f32.mrf.mxu3  ;;  %v535_v14 = vpop.f32.mrf.mxu1 }
  0xb3   : > { %v694_v20 = vadd.f32 %v693_v12, %v680_v11 }
  0xb5   : > { %v1017_v27 = vmax.f32 %v534_v19, %v694_v20 }
  0xb9   : > { %v682_v15 = vpop.f32.mrf.mxu2 }
  0xba   : > { %v695_v16 = vpop.f32.mrf.mxu3 }
  0xc9   : > { %v840_v17 = vpop.f32.mrf.mxu0 }
  0xca   : > { %v853_v18 = vpop.f32.mrf.mxu1 }
  0xcb   : > { %v854_v21 = vadd.f32 %v853_v18, %v840_v17 }
  0xd1   : > { %v1000_v22 = vpop.f32.mrf.mxu2  ;;  %v842_v25 = vpop.f32.mrf.mxu0 }
  0xd2   : > { %v1013_v23 = vpop.f32.mrf.mxu3  ;;  %v855_v26 = vpop.f32.mrf.mxu1 }
  0xd3   : > { %v1014_v24 = vadd.f32 %v1013_v23, %v1000_v22 }
  0xd5   : > { %v1018_v28 = vmax.f32 %v854_v21, %v1014_v24 }
  0xd7   : > { %v1019_v29 = vmax.f32 %v1017_v27, %v1018_v28  ;;  %v1994_v28 = vld [vmem:[%s2277_s8] ss:$0 sm:$0xff] }
  0xd9   : > { %v1020_v30 = vpack.c.bf16 %v1019_v29, %v1019_v29  ;;  %v1002_v31 = vpop.f32.mrf.mxu2 }
  0xda   : > { %v1015_v32 = vpop.f32.mrf.mxu3 }
  0xdb   : > { %v1025_v33 = vunpack.c.l.b16 %v1020_v30  ;;  %v1054_v34 = vsel %vm1033_vm0, %v1020_v30, 0 }
  0xdc   : > { %1063 = vmatpush.bf16.msra.mxu1 %v1054_v34 }
  0xdd   : > { %v1026_v35 = vpack.c.b16 %v1025_v33, %v1025_v33 }
  0xdf   : > { %1167 = vrot.lane.b32.xlu2 %v1026_v35, %s2040_s26  ;;  %1095 = vrot.lane.b32.xlu1 %v1026_v35, %s2041_s27 }
  0xe0   : > { %1027 = vrot.lane.b32.xlu0 %v1026_v35, %s2042_s28  ;;  %1856 = vmatmul.msk.bf16.vlgmr.msra.gmra.mxu1 %vm1029_vm1, %v1021_v36 }
  0xe7   : > { %1191 = vrot.lane.b32.xlu2 %v1026_v35, %s2043_s29  ;;  %1119 = vrot.lane.b32.xlu1 %v1026_v35, %s2044_s30 }
  0xe8   : > { %1071 = vrot.lane.b32.xlu0 %v1026_v35, %s2045_s11 }
  0xef   : > { %1215 = vrot.lane.b32.xlu1 %v1026_v35, %s2046_s12  ;;  %1240 = vperm.xlu2 %1991, %v1237_v47   ;;  %v1880_v47 = vld [vmem:[%s2274_s5 + $0xa] sm:$0x3] }
  0xf0   : > { %1143 = vrot.lane.b32.xlu0 %v1026_v35, %s2047_s14 }
  0xf8   : > { %1247 = vperm.xlu0 %1992, %v1244_v46  }
 0x139   : > { %v1168_v37 = vpop.permute.xlu2 %1167 }
 0x13a   : > { %v1173_v53 = vsel %vm1033_vm0, %v1168_v37, 0  ;;  %v1479_v37 = vld [vmem:[%s2276_s7] sm:$0xf] }
 0x141   : > { %v1192_v38 = vpop.permute.xlu2 %1191 }
 0x142   : > { %v1197_v42 = vsel %vm1033_vm0, %v1192_v38, 0  ;;  %v1258_v38 = vld [vmem:[%s2274_s5] sm:$0x3] }
 0x149   : > { %v1241_v23 = vpop.permute.xlu2 %1240 }
 0x151   : > { %v1096_v39 = vpop.permute.xlu1 %1095 }
 0x152   : > { %v1101_v40 = vsel %vm1033_vm0, %v1096_v39, 0  ;;  %v1028_v41 = vpop.permute.xlu0 %1027 }
 0x153   : > { %v1035_v43 = vsel %vm1033_vm0, %v1028_v41, 0  ;;  %1110 = vmatpush.bf16.msra.mxu3 %v1101_v40  ;;  %v1874_v41 = vld [vmem:[%s2274_s5 + $0x4] sm:$0x3] }
 0x154   : > { %1044 = vmatpush.bf16.msra.mxu0 %v1035_v43 }
 0x156   : > { %1860 = vmatmul.msk.bf16.vlgmr.msra.gmra.mxu3 %vm1029_vm1, %v1859_v44 }
 0x157   : > { %1206 = vmatpush.bf16.msrb.mxu3 %v1197_v42  ;;  %1855 = vmatmul.msk.bf16.vlgmr.msra.gmra.mxu0 %vm1029_vm1, %v1854_v45 }
 0x159   : > { %v1120_v49 = vpop.permute.xlu1 %1119 }
 0x15a   : > { %v1125_v50 = vsel %vm1033_vm0, %v1120_v49, 0  ;;  %v1072_v51 = vpop.permute.xlu0 %1071  ;;  %v1871_v49 = vld [vmem:[%s2274_s5 + $0x2] sm:$0x3] }
 0x15b   : > { %v1077_v52 = vsel %vm1033_vm0, %v1072_v51, 0  ;;  %1134 = vmatpush.bf16.msrb.mxu0 %v1125_v50  ;;  %v1472_v50 = vld [vmem:[%s2275_s6] sm:$0xf] }
 0x15c   : > { %1086 = vmatpush.bf16.msra.mxu2 %v1077_v52 }
 0x15d   : > { %v1065_v0 = vpop.f32.mrf.mxu1 }
 0x15f   : > { %1858 = vmatmul.msk.bf16.vlgmr.msra.gmra.mxu2 %vm1029_vm1, %v1857_v54 }
 0x160   : > { %1182 = vmatpush.bf16.msrb.mxu2 %v1173_v53 }
 0x161   : > { %v1216_v55 = vpop.permute.xlu1 %1215 }
 0x162   : > { %v1221_v56 = vsel %vm1033_vm0, %v1216_v55, 0  ;;  %v1144_v57 = vpop.permute.xlu0 %1143 }
 0x163   : > { %v1149_v58 = vsel %vm1033_vm0, %v1144_v57, 0  ;;  %1230 = vmatpush.bf16.msra.mxu0 %v1221_v56  ;;  %v1876_v57 = vld [vmem:[%s2274_s5 + $0x6] sm:$0x3] }
 0x164   : > { %1158 = vmatpush.bf16.msrb.mxu1 %v1149_v58 }
 0x165   : > { %v1067_v1 = vpop.f32.mrf.mxu1 }
 0x166   : > { %1868 = vmatmul.msk.bf16.vlgmr.msrb.gmra.mxu3 %vm1029_vm1, %v1867_v59 }
 0x167   : > { %1862 = vmatmul.msk.bf16.vlgmr.msrb.gmra.mxu0 %vm1029_vm1, %v1861_v60  ;;  %1864 = vmatmul.msk.bf16.vlgmr.msrb.gmra.mxu1 %vm1029_vm1, %v1863_v61  ;;  %v1878_v60 = vld [vmem:[%s2274_s5 + $0x8] sm:$0x3]  ;;  %v1882_v61 = vld [vmem:[%s2274_s5 + $0xc] sm:$0x3] }
 0x16a   : > { %v1248_v25 = vpop.permute.xlu0 %1247 }
 0x16f   : > { %1866 = vmatmul.msk.bf16.vlgmr.msrb.gmra.mxu2 %vm1029_vm1, %v1865_v62  ;;  %v1884_v62 = vld [vmem:[%s2274_s5 + $0xe] sm:$0x3] }
 0x177   : > { %1870 = vmatmul.msk.bf16.vlgmr.msra.gmra.mxu0 %vm1029_vm1, %v1869_v63  ;;  %v1886_v63 = vld [vmem:[%s2274_s5 + $0x10] sm:$0x3] }
 0x1d4   : > { %v1046_v2 = vpop.f32.mrf.mxu0 }
 0x1d5   : > { %v1066_v7 = vadd.f32 %v1065_v0, %v1046_v2 }
 0x1d9   : > { %v1112_v3 = vpop.f32.mrf.mxu3 }
 0x1dc   : > { %v1048_v4 = vpop.f32.mrf.mxu0 }
 0x1dd   : > { %v1490_v4 = vld [vmem:[%s2278_s9 + $0x8] sm:$0x7] }
 0x1e1   : > { %v1114_v5 = vpop.f32.mrf.mxu3 }
 0x1e2   : > { %v1088_v6 = vpop.f32.mrf.mxu2  ;;  %v1496_v5 = vunpack.c.l.b16 %v1490_v4 }
 0x1e3   : > { %v1092_v10 = vadd.f32 %v1088_v6, %v1066_v7 }
 0x1e4   : > { %v1136_v8 = vpop.f32.mrf.mxu0  ;;  %v1160_v9 = vpop.f32.mrf.mxu1  ;;  %v1498_v7 = vpack.c.b16 %v1496_v5, %v1496_v5 }
 0x1e5   : > { %v1116_v11 = vadd.f32 %v1112_v3, %v1092_v10  ;;  %v1960_v10 = vld [vmem:[%s2278_s9] sm:$0xff] }
 0x1e7   : > { %v1140_v16 = vadd.f32 %v1136_v8, %v1116_v11  ;;  %v1506_v8 = vsel %vm1504_vm2, %v1498_v7, 0 }
 0x1e9   : > { %v1208_v12 = vpop.f32.mrf.mxu3  ;;  %v1164_v17 = vadd.f32 %v1160_v9, %v1140_v16 }
 0x1ea   : > { %v1090_v13 = vpop.f32.mrf.mxu2 }
 0x1ec   : > { %v1138_v14 = vpop.f32.mrf.mxu0  ;;  %v1162_v15 = vpop.f32.mrf.mxu1 }
 0x1f1   : > { %v1210_v18 = vpop.f32.mrf.mxu3 }
 0x1f2   : > { %v1184_v19 = vpop.f32.mrf.mxu2 }
 0x1f3   : > { %v1188_v20 = vadd.f32 %v1184_v19, %v1164_v17 }
 0x1f4   : > { %v1232_v21 = vpop.f32.mrf.mxu0 }
 0x1f5   : > { %v1212_v22 = vadd.f32 %v1208_v12, %v1188_v20 }
 0x1f7   : > { %v1236_v24 = vadd.f32 %v1232_v21, %v1212_v22 }
 0x1f9   : > { %v1243_v26 = vmul.f32 %v1241_v23, %v1236_v24 }
 0x1fa   : > { %v1186_v27 = vpop.f32.mrf.mxu2 }
 0x1fb   : > { %v1250_v29 = vadd.f32 %v1248_v25, %v1243_v26 }
 0x1fc   : > { %v1234_v30 = vpop.f32.mrf.mxu0 }
 0x1fd   : > { %v1251_v31 = vmax.f32 %v1250_v29, 0.0 }
 0x1ff   : > { %v1256_v32 = vmul.f32 %v1994_v28, %v1251_v31 }
 0x201   : > { %v1257_v33 = vpack.c.bf16 %v1256_v32, %v1256_v32 }
 0x203   : > { %v1262_v34 = vunpack.c.l.b16 %v1257_v33  ;;  %v1289_v35 = vsel %vm1033_vm0, %v1257_v33, 0 }
 0x204   : > { %1298 = vmatpush.bf16.msra.mxu2 %v1289_v35 }
 0x205   : > { %v1263_v36 = vpack.c.b16 %v1262_v34, %v1262_v34 }
 0x207   : > { %1378 = vrot.lane.b32.xlu0 %v1263_v36, %s2047_s14  ;;  %1306 = vrot.lane.b32.xlu2 %v1263_v36, %s2045_s11 }
 0x208   : > { %1264 = vrot.lane.b32.xlu1 %v1263_v36, %s2042_s28  ;;  %1873 = vmatmul.msk.bf16.vlgmr.msra.gmra.mxu2 %vm1029_vm1, %v1258_v38 }
 0x20f   : > { %1450 = vrot.lane.b32.xlu0 %v1263_v36, %s2046_s12  ;;  %1354 = vrot.lane.b32.xlu2 %v1263_v36, %s2044_s30 }
 0x210   : > { %1330 = vrot.lane.b32.xlu1 %v1263_v36, %s2041_s27 }
 0x217   : > { %1426 = vrot.lane.b32.xlu2 %v1263_v36, %s2043_s29 }
 0x218   : > { %1402 = vrot.lane.b32.xlu1 %v1263_v36, %s2040_s26 }
 0x21f   : > { %1482 = vperm.xlu2 %1991, %v1479_v37  }
 0x220   : > { %1475 = vperm.xlu1 %1993, %v1472_v50  }
 0x261   : > { %v1307_v39 = vpop.permute.xlu2 %1306 }
 0x262   : > { %v1312_v40 = vsel %vm1033_vm0, %v1307_v39, 0 }
 0x263   : > { %1321 = vmatpush.bf16.msra.mxu3 %v1312_v40 }
 0x266   : > { %1875 = vmatmul.msk.bf16.vlgmr.msra.gmra.mxu3 %vm1029_vm1, %v1874_v41 }
 0x269   : > { %v1355_v42 = vpop.permute.xlu2 %1354 }
 0x26a   : > { %v1360_v48 = vsel %vm1033_vm0, %v1355_v42, 0 }
 0x271   : > { %v1427_v51 = vpop.permute.xlu2 %1426 }
 0x272   : > { %v1432_v56 = vsel %vm1033_vm0, %v1427_v51, 0 }
 0x279   : > { %v1379_v43 = vpop.permute.xlu0 %1378  ;;  %v1483_v32 = vpop.permute.xlu2 %1482 }
 0x27a   : > { %v1384_v44 = vsel %vm1033_vm0, %v1379_v43, 0  ;;  %v1265_v45 = vpop.permute.xlu1 %1264 }
 0x27b   : > { %v1270_v46 = vsel %vm1033_vm0, %v1265_v45, 0  ;;  %1393 = vmatpush.bf16.msrb.mxu2 %v1384_v44 }
 0x27c   : > { %1279 = vmatpush.bf16.msra.mxu1 %v1270_v46 }
 0x27e   : > { %1881 = vmatmul.msk.bf16.vlgmr.msrb.gmra.mxu2 %vm1029_vm1, %v1880_v47 }
 0x27f   : > { %1872 = vmatmul.msk.bf16.vlgmr.msra.gmra.mxu1 %vm1029_vm1, %v1871_v49  ;;  %1514 = vmatpush.bf16.msra.mxu2 %v1506_v8 }
 0x280   : > { %1369 = vmatpush.bf16.msrb.mxu1 %v1360_v48 }
 0x281   : > { %v1451_v52 = vpop.permute.xlu0 %1450 }
 0x282   : > { %v1456_v53 = vsel %vm1033_vm0, %v1451_v52, 0  ;;  %v1331_v54 = vpop.permute.xlu1 %1330 }
 0x283   : > { %v1336_v55 = vsel %vm1033_vm0, %v1331_v54, 0  ;;  %1515 = vmatpush.bf16.msra.mxu2 %v1960_v10 }
 0x284   : > { %1465 = vmatpush.bf16.msra.mxu1 %v1456_v53  ;;  %1345 = vmatpush.bf16.msrb.mxu0 %v1336_v55 }
 0x287   : > { %1877 = vmatmul.msk.bf16.vlgmr.msrb.gmra.mxu0 %vm1029_vm1, %v1876_v57 }
 0x288   : > { %1441 = vmatpush.bf16.msra.mxu0 %v1432_v56 }
 0x28a   : > { %v1403_v58 = vpop.permute.xlu1 %1402 }
 0x28b   : > { %v1408_v59 = vsel %vm1033_vm0, %v1403_v58, 0  ;;  %v1300_v0 = vpop.f32.mrf.mxu2 }
 0x28c   : > { %1417 = vmatpush.bf16.msrb.mxu3 %v1408_v59 }
 0x28f   : > { %1879 = vmatmul.msk.bf16.vlgmr.msrb.gmra.mxu1 %vm1029_vm1, %v1878_v60  ;;  %1883 = vmatmul.msk.bf16.vlgmr.msrb.gmra.mxu3 %vm1029_vm1, %v1882_v61 }
 0x292   : > { %v1476_v27 = vpop.permute.xlu1 %1475 }
 0x293   : > { %v1302_v1 = vpop.f32.mrf.mxu2 }
 0x297   : > { %1885 = vmatmul.msk.bf16.vlgmr.msra.gmra.mxu0 %vm1029_vm1, %v1884_v62 }
 0x29f   : > { %1887 = vmatmul.msk.bf16.vlgmr.msra.gmra.mxu1 %vm1029_vm1, %v1886_v63 }
 0x2e9   : > { %v1323_v2 = vpop.f32.mrf.mxu3 }
 0x2f1   : > { %v1325_v3 = vpop.f32.mrf.mxu3 }
 0x2fc   : > { %v1281_v6 = vpop.f32.mrf.mxu1 }
 0x2fd   : > { %v1301_v13 = vadd.f32 %v1300_v0, %v1281_v6 }
 0x2ff   : > { %v1327_v17 = vadd.f32 %v1323_v2, %v1301_v13 }
 0x301   : > { %v1395_v9 = vpop.f32.mrf.mxu2 }
 0x304   : > { %v1283_v11 = vpop.f32.mrf.mxu1  ;;  %v1347_v12 = vpop.f32.mrf.mxu0 }
 0x305   : > { %v1351_v18 = vadd.f32 %v1347_v12, %v1327_v17 }
 0x309   : > { %v1397_v14 = vpop.f32.mrf.mxu2 }
 0x30c   : > { %v1371_v15 = vpop.f32.mrf.mxu1  ;;  %v1349_v16 = vpop.f32.mrf.mxu0 }
 0x30d   : > { %v1375_v19 = vadd.f32 %v1371_v15, %v1351_v18 }
 0x30f   : > { %v1399_v23 = vadd.f32 %v1395_v9, %v1375_v19 }
 0x312   : > { %v1419_v20 = vpop.f32.mrf.mxu3 }
 0x313   : > { %v1423_v24 = vadd.f32 %v1419_v20, %v1399_v23 }
 0x314   : > { %v1373_v21 = vpop.f32.mrf.mxu1  ;;  %v1443_v22 = vpop.f32.mrf.mxu0 }
 0x315   : > { %v1447_v26 = vadd.f32 %v1443_v22, %v1423_v24 }
 0x31a   : > { %v1421_v25 = vpop.f32.mrf.mxu3 }
 0x31c   : > { %v1467_v28 = vpop.f32.mrf.mxu1  ;;  %v1445_v29 = vpop.f32.mrf.mxu0 }
 0x31d   : > { %v1471_v30 = vadd.f32 %v1467_v28, %v1447_v26 }
 0x31f   : > { %v1478_v31 = vmul.f32 %v1476_v27, %v1471_v30 }
 0x321   : > { %v1485_v33 = vadd.f32 %v1483_v32, %v1478_v31 }
 0x323   : > { %v1486_v34 = vmax.f32 %v1485_v33, 0.0 }
 0x324   : > { %v1469_v35 = vpop.f32.mrf.mxu1 }
 0x325   : > { %v1487_v36 = vpack.c.bf16 %v1486_v34, %v1486_v34 }
 0x327   : > { %1892 = vmatmul.msk.bf16.vlgmr.msra.gmra.mxu2 %vm1500_vm3, %v1487_v36 }
 0x3aa   : > { %v1517_v37 = vpop.f32.mrf.mxu2 }
 0x3ab   : > { %1522 = vst.msk [vmem:[%s374_s15] sm:$0xf] %vm1521_vm4, %v1517_v37 }
 0x3b2   : > { %v1519_v38 = vpop.f32.mrf.mxu2 }
 0x3b3 PF: > { %s21_s13 = sadd.s32 1, %s2035_s13  }
 0x3b4   : > { %p18_p7 = scmp.ge.s32.totalorder %s21_s13, 4  }
 0x3b6   :  { %20 = sbr.rel (!%p18_p7) target bundleno = 1 (0x1), region = 114 }
 0x3bb   :  { %1542 = vsyncpa [#allocation3], 1 }
 0x3bc   :  { %1544 = vsyncpa [#allocation3 + $0x1], 1 }

</bundles_post_ra>
